<compile_context>
chip_gen: v5e
topology: v5e:2x2
jax: 0.10.0
libtpu: 0.0.40
codegen_flags: <defaults>
</compile_context>

<pallas_src>
import functools
import math
import numpy as np
import jax
import jax.numpy as jnp
from jax import lax
from jax.experimental import pallas as pl
from jax.experimental.pallas import tpu as pltpu

EPS = 1e-12  # matches F.normalize eps


def _l2norm(x, axis=-1):
    n = jnp.sqrt(jnp.sum(x * x, axis=axis, keepdims=True))
    return x / jnp.maximum(n, EPS)


def _dot(a, b):
    # contract last dim of a with first dim of b, f32 accumulation on the MXU
    return lax.dot_general(a, b, (((1,), (0,)), ((), ())),
                           preferred_element_type=jnp.float32)


def _l2n(x):
    # F.normalize(x, dim=-1) with eps=1e-12, expressed with rsqrt (EUP slot).
    sq = jnp.sum(x * x, axis=-1, keepdims=True)
    return x * lax.rsqrt(jnp.maximum(sq, EPS * EPS))


def _kernel(s_ref, o_ref, slab_ref, relraw_ref,
            un_w1_ref, un_w2_ref, rp_w2_ref, cls_ref,
            w1p_ref, w2p_ref, bias_ref,
            out_ref, *, n_cls, n_groups, nc_all, cls_stride, oh_off):
    BP, Q, Dt = s_ref.shape
    inv_sqrt2 = 1.0 / math.sqrt(2.0)
    bf16 = jnp.bfloat16

    slab = slab_ref[...]                                   # (BP, 128) f32
    # lanes 0:12 relpos_feat, 12:15 giou_tags, oh_off:oh_off+NG one-hot group
    x16 = slab[:, 0:16]                                    # (BP, 16)

    # ---- all three tiny-K first layers fused into ONE small matmul ----
    # w1p rows 0..11 carry rp_w1|rp1_w1|0, rows 12..14 carry 0|0|gi_w1.
    act = jnp.maximum(_dot(x16, w1p_ref[...]) + bias_ref[0:1, :], 0.0)   # (BP, 512)
    h = act[:, 0:Dt]                                       # relpos2embd hidden (256)
    h1 = act[:, Dt:Dt + 128]                               # relpos2embd_1 hidden (128)
    hg = act[:, Dt + 128:Dt + 256]                         # relgiou2embd hidden (128)

    # relpos2embd second layer (bias=False), l2-normalized
    rpe = _l2n(_dot(h.astype(bf16), rp_w2_ref[...]))       # (BP, 512)
    rpe_lo = rpe[:, :Dt]
    rpe_hi = rpe[:, Dt:]

    # ---- subject/object pair branch (split halves; the 512-lane so-concat never
    #      materializes).  Elementwise math in f32 (v5e VPU has no bf16). ----
    s = s_ref[...].astype(jnp.float32)                     # (BP, Q, 256)
    o = o_ref[...].astype(jnp.float32)
    c_lo = s * inv_sqrt2 + rpe_lo[:, None, :]
    c_hi = o * inv_sqrt2 + rpe_hi[:, None, :]
    sq = (jnp.sum(c_lo * c_lo, axis=-1, keepdims=True) +
          jnp.sum(c_hi * c_hi, axis=-1, keepdims=True))    # (BP, Q, 1)
    inv_n = lax.rsqrt(jnp.maximum(sq, EPS * EPS))
    # mean over Q commutes with the (linear) classifier dot -> pre-reduce over Q.
    cbar_lo = jnp.mean(c_lo * inv_n, axis=1)               # (BP, 256)
    cbar_hi = jnp.mean(c_hi * inv_n, axis=1)               # (BP, 256)

    # ---- relation branch second layers (packed weight, 128-aligned lane slices) ----
    pe = _l2n(_dot(h1.astype(bf16), w2p_ref[:, 0:Dt]) + bias_ref[1:2, 0:Dt])
    ge = _l2n(_dot(hg.astype(bf16), w2p_ref[:, Dt:2 * Dt]) + bias_ref[1:2, Dt:2 * Dt])
    pg = pe + ge                                           # (BP, 256)

    # pair-invariant union MLP.  Recomputed per pair-block (cheap) so the grid can
    # stay "parallel" / megacore-splittable; its weights are VMEM-resident.
    hu = jnp.maximum(_dot(relraw_ref[...], un_w1_ref[...]) + bias_ref[2:3, :], 0.0)   # (Q, 512)
    rf = _l2n(_dot(hu.astype(bf16), un_w2_ref[...]) + bias_ref[3:4, 0:Dt])            # (Q, 256)

    rel = rf[None, :, :] + pg[:, None, :]                  # (BP, Q, 256)
    rsq = jnp.sum(rel * rel, axis=-1, keepdims=True)
    relbar = jnp.mean(rel * lax.rsqrt(jnp.maximum(rsq, EPS * EPS)), axis=1)           # (BP, 256)

    # ---- classifier matmuls against all NG*n_cls classes (temps folded in) ----
    logits_all = (_dot(cbar_lo.astype(bf16), cls_ref[:, 0:nc_all]) +
                  _dot(cbar_hi.astype(bf16), cls_ref[:, cls_stride:cls_stride + nc_all]))
    rel_logits_all = _dot(relbar.astype(bf16),
                          cls_ref[:, 2 * cls_stride:2 * cls_stride + nc_all])

    # ---- per-pair giou-tag group select BEFORE the sigmoids (6x fewer EUP pushes) ----
    oh = slab[:, oh_off:oh_off + n_groups]                 # (BP, NG)
    sel = jnp.zeros((BP, n_cls), jnp.float32)
    rsel = jnp.zeros((BP, n_cls), jnp.float32)
    for g in range(n_groups):
        w = oh[:, g:g + 1]
        sel = sel + w * logits_all[:, g * n_cls:(g + 1) * n_cls]
        rsel = rsel + w * rel_logits_all[:, g * n_cls:(g + 1) * n_cls]
    out_ref[...] = jax.nn.sigmoid(sel) + jax.nn.sigmoid(rsel)


def pack_finetune_weights(classifier_weights, single_classifier_weights, params,
                          temperature, rel_temperature):
    """One-time weight packing (hoisted out of the per-call path):
    transposes, bf16 casts, temperature folding, small-param slabs."""
    NG, n_cls, D2 = classifier_weights.shape
    Dt = D2 // 2
    NC = NG * n_cls
    cls_stride = pl.cdiv(NC, 128) * 128

    cw_flat = classifier_weights.reshape(NC, D2).astype(jnp.float32)
    cw_lo_t = jnp.transpose(cw_flat[:, :Dt]) * (1.0 / temperature)       # (Dt, NC)
    cw_hi_t = jnp.transpose(cw_flat[:, Dt:]) * (1.0 / temperature)       # (Dt, NC)
    scw_t = (jnp.transpose(single_classifier_weights.reshape(NC, Dt).astype(jnp.float32))
             * (1.0 / rel_temperature))                                  # (Dt, NC)
    cls_tab = jnp.zeros((Dt, 3 * cls_stride), jnp.float32)
    cls_tab = cls_tab.at[:, 0:NC].set(cw_lo_t)
    cls_tab = cls_tab.at[:, cls_stride:cls_stride + NC].set(cw_hi_t)
    cls_tab = cls_tab.at[:, 2 * cls_stride:2 * cls_stride + NC].set(scw_t)
    cls_tab = cls_tab.astype(jnp.bfloat16)

    # fused first-layer weight slab: rows 0..11 = [rp_w1 | rp1_w1 | 0],
    # rows 12..14 = [0 | 0 | gi_w1], row 15 = 0   -> one K=16 matmul in-kernel.
    w1p = jnp.zeros((16, 512), jnp.float32)
    w1p = w1p.at[0:12, 0:256].set(params["rp_w1"])
    w1p = w1p.at[0:12, 256:384].set(params["rp1_w1"])
    w1p = w1p.at[12:15, 384:512].set(params["gi_w1"])

    # second-layer weights for the relation branch, packed along lanes.
    w2p = jnp.concatenate([params["rp1_w2"], params["gi_w2"]], axis=-1).astype(jnp.bfloat16)

    # all biases packed into one (8, 512) slab.
    bias = jnp.concatenate([
        jnp.concatenate([params["rp_b1"], params["rp1_b1"], params["gi_b1"]], axis=-1),
        jnp.concatenate([params["rp1_b2"], params["gi_b2"]], axis=-1),
        params["un_b1"],
        jnp.concatenate([params["un_b2"], jnp.zeros((1, 256), jnp.float32)], axis=-1),
        jnp.zeros((4, 512), jnp.float32),
    ], axis=0)

    return dict(
        un_w1=params["un_w1"].astype(jnp.bfloat16),
        un_w2=params["un_w2"].astype(jnp.bfloat16),
        rp_w2=params["rp_w2"].astype(jnp.bfloat16),
        cls_tab=cls_tab, w1p=w1p, w2p=w2p, bias=bias,
        n_cls=int(n_cls), n_groups=int(NG), nc_all=int(NC),
        cls_stride=int(cls_stride), d_txt=int(Dt),
    )


def finetune_qformer_v4_pred_probs(s_embds, o_embds, rel_feats_raw, relpos_feat,
                                   rel_gious, packed, giou_th, block_pairs=256):
    P, Q, Dt = s_embds.shape
    Du = rel_feats_raw.shape[-1]
    n_cls = packed["n_cls"]
    NG = packed["n_groups"]
    NC = packed["nc_all"]
    cls_stride = packed["cls_stride"]
    assert Dt == packed["d_txt"]

    # get_giou_tags -> prompt ids (glue: scalar boolean logic).
    # TODO(synk): assumes the real model's giou-tag dict is the lexicographic
    # [FFF,FFT,FTT,TFF,TTF,TTT] ordering produced by sorted torch.unique.
    g0, g1 = rel_gious[:, 0], rel_gious[:, 1]
    s_tag = (g0 >= giou_th).astype(jnp.int32)
    e_tag = (g1 >= giou_th).astype(jnp.int32)
    d_tag = ((g1 - g0) >= 0.0).astype(jnp.int32)
    prompt_ids = 3 * s_tag + e_tag + d_tag
    onehot = jax.nn.one_hot(prompt_ids, NG, dtype=jnp.float32)           # (P, NG)
    giou_tags = jnp.stack([g0, g1, g1 - g0], axis=-1)                    # (P, 3)

    # single lane-padded per-pair slab: relpos | giou_tags | pad | one-hot | pad
    OH_OFF = 16
    slab = jnp.concatenate([
        relpos_feat.astype(jnp.float32),                                 # lanes 0:12
        giou_tags.astype(jnp.float32),                                   # lanes 12:15
        jnp.zeros((P, 1), jnp.float32),                                  # lane 15
        onehot,                                                          # lanes 16:16+NG
        jnp.zeros((P, 128 - OH_OFF - NG), jnp.float32),
    ], axis=-1)                                                          # (P, 128)

    # pair-block tiling (multiple of 8 sublanes); pad P up to a block multiple.
    bp = max(8, min(block_pairs, pl.cdiv(P, 8) * 8))
    bp = (bp // 8) * 8
    P_pad = pl.cdiv(P, bp) * bp
    n_blocks = P_pad // bp
    pad = P_pad - P

    s_bf = jnp.pad(s_embds, ((0, pad), (0, 0), (0, 0))).astype(jnp.bfloat16)
    o_bf = jnp.pad(o_embds, ((0, pad), (0, 0), (0, 0))).astype(jnp.bfloat16)
    slab_p = jnp.pad(slab, ((0, pad), (0, 0)))
    relraw_bf = rel_feats_raw.astype(jnp.bfloat16)

    kernel = functools.partial(_kernel, n_cls=n_cls, n_groups=NG, nc_all=NC,
                               cls_stride=cls_stride, oh_off=OH_OFF)

    in_specs = [
        pl.BlockSpec((bp, Q, Dt), lambda i: (i, 0, 0)),          # s_embds (bf16)
        pl.BlockSpec((bp, Q, Dt), lambda i: (i, 0, 0)),          # o_embds (bf16)
        pl.BlockSpec((bp, 128), lambda i: (i, 0)),               # per-pair slab (f32)
        pl.BlockSpec((Q, Du), lambda i: (0, 0)),                 # union q-former feats (bf16)
        pl.BlockSpec((Du, 512), lambda i: (0, 0)),               # un_w1 (bf16, resident)
        pl.BlockSpec((512, Dt), lambda i: (0, 0)),               # un_w2 (bf16, resident)
        pl.BlockSpec((Dt, 2 * Dt), lambda i: (0, 0)),            # rp_w2 (bf16, resident)
        pl.BlockSpec((Dt, 3 * cls_stride), lambda i: (0, 0)),    # classifier tables (bf16)
        pl.BlockSpec((16, 512), lambda i: (0, 0)),               # fused first-layer weights
        pl.BlockSpec((128, 2 * Dt), lambda i: (0, 0)),           # rp1_w2 | gi_w2 (bf16)
        pl.BlockSpec((8, 512), lambda i: (0, 0)),                # bias slab (f32)
    ]
    out_specs = pl.BlockSpec((bp, n_cls), lambda i: (i, 0))

    pred = pl.pallas_call(
        kernel,
        out_shape=jax.ShapeDtypeStruct((P_pad, n_cls), jnp.float32),
        grid=(n_blocks,),
        in_specs=in_specs,
        out_specs=out_specs,
        compiler_params=pltpu.CompilerParams(
            dimension_semantics=("parallel",),
            vmem_limit_bytes=32 * 1024 * 1024),
    )(s_bf, o_bf, slab_p, relraw_bf,
      packed["un_w1"], packed["un_w2"], packed["rp_w2"], packed["cls_tab"],
      packed["w1p"], packed["w2p"], packed["bias"])

    return pred[:P], prompt_ids


def reference_pred_probs(s_embds, o_embds, rel_feats_raw, relpos_feat, rel_gious,
                         cw_all, scw_all, p, temperature, rel_temperature, giou_th):
    so = jnp.concatenate([s_embds, o_embds], axis=-1) / math.sqrt(2.0)          # (P,Q,512)
    h = jax.nn.relu(relpos_feat @ p["rp_w1"] + p["rp_b1"])
    rpe = _l2norm(h @ p["rp_w2"])                                               # (P,512)
    combined = _l2norm(so + rpe[:, None, :])                                    # (P,Q,512)

    s_tag = (rel_gious[:, 0] >= giou_th).astype(jnp.int32)
    e_tag = (rel_gious[:, 1] >= giou_th).astype(jnp.int32)
    d_tag = ((rel_gious[:, 1] - rel_gious[:, 0]) >= 0.0).astype(jnp.int32)
    prompt_ids = 3 * s_tag + e_tag + d_tag

    cw = cw_all[prompt_ids]                                                     # (P,n_cls,512)
    logits = jnp.einsum("pcd,pqd->pcq", cw, combined).mean(-1) / temperature

    giou_tags = jnp.stack(
        [rel_gious[:, 0], rel_gious[:, 1], rel_gious[:, 1] - rel_gious[:, 0]], axis=-1)
    rge = _l2norm(jax.nn.relu(giou_tags @ p["gi_w1"] + p["gi_b1"]) @ p["gi_w2"] + p["gi_b2"])[:, None, :]
    rf = _l2norm(jax.nn.relu(rel_feats_raw @ p["un_w1"] + p["un_b1"]) @ p["un_w2"] + p["un_b2"])
    rpe1 = _l2norm(jax.nn.relu(relpos_feat @ p["rp1_w1"] + p["rp1_b1"]) @ p["rp1_w2"] + p["rp1_b2"])[:, None, :]
    rel_feats = _l2norm(rf[None, :, :] + rpe1 + rge)                            # (P,Q,256)
    scw = scw_all[prompt_ids]
    rel_logits = jnp.einsum("pcd,pqd->pcq", scw, rel_feats).mean(-1) / rel_temperature

    return jax.nn.sigmoid(logits) + jax.nn.sigmoid(rel_logits)


if __name__ == "__main__":
    key = jax.random.PRNGKey(0)
    ks = list(jax.random.split(key, 32))

    # -------- sizes (small, consistent with the module) --------
    n_det = 4            # trajectories -> P = n_det*(n_det-1) ordered pairs
    Q = 8                # qformer query tokens
    Dt = 256             # text/vision projection dim (so-dim = 512)
    Du = 768             # union / vit feature dim
    num_base, num_novel = 16, 8
    n_cls = num_base     # cls_split = 'base'
    n_groups = 6
    temperature = 0.07
    rel_temperature = 0.07
    giou_th = -0.3
    pred_topk = 5

    # -------- trajid2pairid (glue) --------
    ii, jj = np.meshgrid(np.arange(n_det), np.arange(n_det), indexing="ij")
    mask = ii != jj
    pair_ids = jnp.asarray(np.stack([ii[mask], jj[mask]], axis=-1), dtype=jnp.int32)
    P = pair_ids.shape[0]

    # -------- synthetic qformer outputs (stand-in for TrajFormer+LoRA) --------
    # TODO(synk): finetune_qformer(det_feats, vit_feats) replaced by deterministic embeddings
    traj_q_embds = 0.1 * jax.random.normal(ks[0], (n_det, Q, Dt), jnp.float32)
    s_embds = traj_q_embds[pair_ids[:, 0]]            # (P, Q, 256)
    o_embds = traj_q_embds[pair_ids[:, 1]]            # (P, Q, 256)
    rel_feats_raw = 0.1 * jax.random.normal(ks[1], (Q, Du), jnp.float32)

    relpos_feat = jax.random.normal(ks[2], (P, 12), jnp.float32)
    rel_gious = jax.random.uniform(ks[3], (P, 2), jnp.float32, minval=-1.0, maxval=1.0)

    # -------- classifier weights (stand-in for prompter/text_encoder output) --------
    subj_w = _l2norm(jax.random.normal(ks[4], (n_groups, n_cls, Dt), jnp.float32))
    obj_w = _l2norm(jax.random.normal(ks[5], (n_groups, n_cls, Dt), jnp.float32))
    classifier_weights = jnp.concatenate([subj_w, obj_w], axis=-1) / math.sqrt(2.0)   # (6, n_cls, 512)
    single_classifier_weights = _l2norm(
        jax.random.normal(ks[6], (n_groups, n_cls, Dt), jnp.float32))                  # (6, n_cls, 256)

    # -------- MLP parameters (deterministic init; biases kept as (1, C)) --------
    def w(k, shape, std=0.02):
        return std * jax.random.normal(k, shape, jnp.float32)

    params = {
        # relpos2embd: Linear(12,256)+ReLU+Linear(256,512, bias=False)
        "rp_w1": w(ks[7], (12, 256)),  "rp_b1": w(ks[8], (1, 256)),  "rp_w2": w(ks[9], (256, 512)),
        # relpos2embd_1: Linear(12,128)+ReLU+Linear(128,256)
        "rp1_w1": w(ks[10], (12, 128)), "rp1_b1": w(ks[11], (1, 128)),
        "rp1_w2": w(ks[12], (128, 256)), "rp1_b2": w(ks[13], (1, 256)),
        # relgiou2embd: Linear(3,128)+ReLU+Linear(128,256)
        "gi_w1": w(ks[14], (3, 128)), "gi_b1": w(ks[15], (1, 128)),
        "gi_w2": w(ks[16], (128, 256)), "gi_b2": w(ks[17], (1, 256)),
        # union2embd: Linear(768,512)+ReLU+Linear(512,256)
        "un_w1": w(ks[18], (768, 512)), "un_b1": w(ks[19], (1, 512)),
        "un_w2": w(ks[20], (512, 256)), "un_b2": w(ks[21], (1, 256)),
    }

    # -------- pack weights once (hoisted out of the per-call path) --------
    packed = pack_finetune_weights(classifier_weights, single_classifier_weights,
                                   params, temperature, rel_temperature)
    packed = jax.tree_util.tree_map(
        lambda a: jax.block_until_ready(a) if isinstance(a, jax.Array) else a, packed)

    # -------- run Pallas kernel (block of 8 pairs -> grid=(2,) at P=12) --------
    pred_probs, prompt_ids = finetune_qformer_v4_pred_probs(
        s_embds, o_embds, rel_feats_raw, relpos_feat, rel_gious,
        packed, giou_th, block_pairs=8)
    pred_probs = jax.block_until_ready(pred_probs)

    # _to_predict_cls_ids (glue): topk + class-id offset for split='base'
    scores, cls_ids = lax.top_k(pred_probs, pred_topk)
    cls_ids = cls_ids + 1
    scores = jax.block_until_ready(scores)
    cls_ids = jax.block_until_ready(cls_ids)

    # -------- validate against pure-JAX f32 reference (kernel uses bf16 weights) --------
    ref = reference_pred_probs(s_embds, o_embds, rel_feats_raw, relpos_feat, rel_gious,
                               classifier_weights, single_classifier_weights, params,
                               temperature, rel_temperature, giou_th)
    np.testing.assert_allclose(np.asarray(pred_probs), np.asarray(ref), rtol=2e-2, atol=2e-2)
    assert pred_probs.shape == (P, n_cls)
    assert scores.shape == (P, pred_topk) and cls_ids.shape == (P, pred_topk)
    assert pair_ids.shape == (P, 2)

    print("KERNEL_OK")
</pallas_src>

<mosaic_0001>
module attributes {stable_mosaic.version = 11 : i64} {
  func.func @_kernel(%arg0: i32, %arg1: memref<8x8x256xbf16, #tpu.memory_space<vmem>>, %arg2: memref<8x8x256xbf16, #tpu.memory_space<vmem>>, %arg3: memref<8x128xf32, #tpu.memory_space<vmem>>, %arg4: memref<8x768xbf16, #tpu.memory_space<vmem>>, %arg5: memref<768x512xbf16, #tpu.memory_space<vmem>>, %arg6: memref<512x256xbf16, #tpu.memory_space<vmem>>, %arg7: memref<256x512xbf16, #tpu.memory_space<vmem>>, %arg8: memref<256x384xbf16, #tpu.memory_space<vmem>>, %arg9: memref<16x512xf32, #tpu.memory_space<vmem>>, %arg10: memref<128x512xbf16, #tpu.memory_space<vmem>>, %arg11: memref<8x512xf32, #tpu.memory_space<vmem>>, %arg12: memref<8x16xf32, #tpu.memory_space<vmem>>) attributes {dimension_semantics = [#tpu.dimension_semantics<parallel>], iteration_bounds = array<i64: 2>, scalar_prefetch = 0 : i64, scratch_operands = 0 : i64, tpu.core_type = #tpu.core_type<tc>, window_params = [{transform_indices = @transform_0, window_bounds = array<i64: 8, 8, 256>}, {transform_indices = @transform_1, window_bounds = array<i64: 8, 8, 256>}, {transform_indices = @transform_2, window_bounds = array<i64: 8, 128>}, {pipeline_mode = #tpu.pipeline_mode<synchronous>, transform_indices = @transform_3, window_bounds = array<i64: 8, 768>}, {pipeline_mode = #tpu.pipeline_mode<synchronous>, transform_indices = @transform_4, window_bounds = array<i64: 768, 512>}, {pipeline_mode = #tpu.pipeline_mode<synchronous>, transform_indices = @transform_5, window_bounds = array<i64: 512, 256>}, {pipeline_mode = #tpu.pipeline_mode<synchronous>, transform_indices = @transform_6, window_bounds = array<i64: 256, 512>}, {pipeline_mode = #tpu.pipeline_mode<synchronous>, transform_indices = @transform_7, window_bounds = array<i64: 256, 384>}, {pipeline_mode = #tpu.pipeline_mode<synchronous>, transform_indices = @transform_8, window_bounds = array<i64: 16, 512>}, {pipeline_mode = #tpu.pipeline_mode<synchronous>, transform_indices = @transform_9, window_bounds = array<i64: 128, 512>}, {pipeline_mode = #tpu.pipeline_mode<synchronous>, transform_indices = @transform_10, window_bounds = array<i64: 8, 512>}, {transform_indices = @transform_11, window_bounds = array<i64: 8, 16>}]} {
    %c0 = arith.constant 0 : index
    %c0_0 = arith.constant 0 : index
    %0 = vector.load %arg3[%c0, %c0_0] : memref<8x128xf32, #tpu.memory_space<vmem>>, vector<8x128xf32>
    %1 = vector.extract_strided_slice %0 {offsets = [0, 0], sizes = [8, 16], strides = [1, 1]} : vector<8x128xf32> to vector<8x16xf32>
    %c0_1 = arith.constant 0 : index
    %c0_2 = arith.constant 0 : index
    %2 = vector.load %arg9[%c0_1, %c0_2] : memref<16x512xf32, #tpu.memory_space<vmem>>, vector<16x512xf32>
    %cst = arith.constant dense<0.000000e+00> : vector<8x512xf32>
    %3 = tpu.matmul %1, %2, %cst {dimension_numbers = #tpu.dot_dimension_numbers<[1], [0], [0], [1], [0, 0, 1, 1], [], []>} : vector<8x16xf32>, vector<16x512xf32>, vector<8x512xf32> -> vector<8x512xf32>
    %c0_3 = arith.constant 0 : index
    %c0_4 = arith.constant 0 : index
    %4 = vector.load %arg11[%c0_3, %c0_4] : memref<8x512xf32, #tpu.memory_space<vmem>>, vector<1x512xf32>
    %5 = vector.broadcast %4 : vector<1x512xf32> to vector<8x512xf32>
    %6 = arith.addf %3, %5 : vector<8x512xf32>
    %cst_5 = arith.constant 0.000000e+00 : f32
    %7 = vector.broadcast %cst_5 : f32 to vector<8x512xf32>
    %8 = arith.maximumf %6, %7 : vector<8x512xf32>
    %9 = vector.extract_strided_slice %8 {offsets = [0, 0], sizes = [8, 256], strides = [1, 1]} : vector<8x512xf32> to vector<8x256xf32>
    %10 = vector.extract_strided_slice %8 {offsets = [0, 256], sizes = [8, 128], strides = [1, 1]} : vector<8x512xf32> to vector<8x128xf32>
    %11 = vector.extract_strided_slice %8 {offsets = [0, 384], sizes = [8, 128], strides = [1, 1]} : vector<8x512xf32> to vector<8x128xf32>
    %12 = arith.truncf %9 : vector<8x256xf32> to vector<8x256xbf16>
    %c0_6 = arith.constant 0 : index
    %c0_7 = arith.constant 0 : index
    %13 = vector.load %arg7[%c0_6, %c0_7] : memref<256x512xbf16, #tpu.memory_space<vmem>>, vector<256x512xbf16>
    %cst_8 = arith.constant dense<0.000000e+00> : vector<8x512xf32>
    %14 = tpu.matmul %12, %13, %cst_8 {dimension_numbers = #tpu.dot_dimension_numbers<[1], [0], [0], [1], [0, 0, 1, 1], [], []>} : vector<8x256xbf16>, vector<256x512xbf16>, vector<8x512xf32> -> vector<8x512xf32>
    %15 = arith.mulf %14, %14 : vector<8x512xf32>
    %cst_9 = arith.constant dense<0.000000e+00> : vector<8xf32>
    %16 = vector.multi_reduction <add>, %15, %cst_9 [1] : vector<8x512xf32> to vector<8xf32>
    %17 = vector.shape_cast %16 : vector<8xf32> to vector<8x1xf32>
    %cst_10 = arith.constant 1.000000e-24 : f32
    %18 = vector.broadcast %cst_10 : f32 to vector<8x1xf32>
    %19 = arith.maximumf %17, %18 : vector<8x1xf32>
    %20 = math.rsqrt %19 : vector<8x1xf32>
    %21 = vector.broadcast %20 : vector<8x1xf32> to vector<8x512xf32>
    %22 = arith.mulf %14, %21 : vector<8x512xf32>
    %23 = vector.extract_strided_slice %22 {offsets = [0, 0], sizes = [8, 256], strides = [1, 1]} : vector<8x512xf32> to vector<8x256xf32>
    %24 = vector.extract_strided_slice %22 {offsets = [0, 256], sizes = [8, 256], strides = [1, 1]} : vector<8x512xf32> to vector<8x256xf32>
    %c0_11 = arith.constant 0 : index
    %c0_12 = arith.constant 0 : index
    %c0_13 = arith.constant 0 : index
    %25 = vector.load %arg1[%c0_11, %c0_12, %c0_13] : memref<8x8x256xbf16, #tpu.memory_space<vmem>>, vector<8x8x256xbf16>
    %26 = arith.extf %25 : vector<8x8x256xbf16> to vector<8x8x256xf32>
    %c0_14 = arith.constant 0 : index
    %c0_15 = arith.constant 0 : index
    %c0_16 = arith.constant 0 : index
    %27 = vector.load %arg2[%c0_14, %c0_15, %c0_16] : memref<8x8x256xbf16, #tpu.memory_space<vmem>>, vector<8x8x256xbf16>
    %28 = arith.extf %27 : vector<8x8x256xbf16> to vector<8x8x256xf32>
    %cst_17 = arith.constant 0.707106769 : f32
    %29 = vector.broadcast %cst_17 : f32 to vector<8x8x256xf32>
    %30 = arith.mulf %26, %29 : vector<8x8x256xf32>
    %31 = vector.shape_cast %23 : vector<8x256xf32> to vector<8x1x256xf32>
    %32 = vector.broadcast %31 : vector<8x1x256xf32> to vector<8x8x256xf32>
    %33 = arith.addf %30, %32 : vector<8x8x256xf32>
    %cst_18 = arith.constant 0.707106769 : f32
    %34 = vector.broadcast %cst_18 : f32 to vector<8x8x256xf32>
    %35 = arith.mulf %28, %34 : vector<8x8x256xf32>
    %36 = vector.shape_cast %24 : vector<8x256xf32> to vector<8x1x256xf32>
    %37 = vector.broadcast %36 : vector<8x1x256xf32> to vector<8x8x256xf32>
    %38 = arith.addf %35, %37 : vector<8x8x256xf32>
    %39 = arith.mulf %33, %33 : vector<8x8x256xf32>
    %cst_19 = arith.constant dense<0.000000e+00> : vector<8x8xf32>
    %40 = vector.multi_reduction <add>, %39, %cst_19 [2] : vector<8x8x256xf32> to vector<8x8xf32>
    %41 = vector.shape_cast %40 : vector<8x8xf32> to vector<8x8x1xf32>
    %42 = arith.mulf %38, %38 : vector<8x8x256xf32>
    %cst_20 = arith.constant dense<0.000000e+00> : vector<8x8xf32>
    %43 = vector.multi_reduction <add>, %42, %cst_20 [2] : vector<8x8x256xf32> to vector<8x8xf32>
    %44 = vector.shape_cast %43 : vector<8x8xf32> to vector<8x8x1xf32>
    %45 = arith.addf %41, %44 : vector<8x8x1xf32>
    %cst_21 = arith.constant 1.000000e-24 : f32
    %46 = vector.broadcast %cst_21 : f32 to vector<8x8x1xf32>
    %47 = arith.maximumf %45, %46 : vector<8x8x1xf32>
    %48 = math.rsqrt %47 : vector<8x8x1xf32>
    %49 = vector.broadcast %48 : vector<8x8x1xf32> to vector<8x8x256xf32>
    %50 = arith.mulf %33, %49 : vector<8x8x256xf32>
    %cst_22 = arith.constant dense<0.000000e+00> : vector<8x256xf32>
    %51 = vector.multi_reduction <add>, %50, %cst_22 [1] : vector<8x8x256xf32> to vector<8x256xf32>
    %cst_23 = arith.constant 8.000000e+00 : f32
    %52 = vector.broadcast %cst_23 : f32 to vector<8x256xf32>
    %53 = arith.divf %51, %52 : vector<8x256xf32>
    %54 = vector.broadcast %48 : vector<8x8x1xf32> to vector<8x8x256xf32>
    %55 = arith.mulf %38, %54 : vector<8x8x256xf32>
    %cst_24 = arith.constant dense<0.000000e+00> : vector<8x256xf32>
    %56 = vector.multi_reduction <add>, %55, %cst_24 [1] : vector<8x8x256xf32> to vector<8x256xf32>
    %cst_25 = arith.constant 8.000000e+00 : f32
    %57 = vector.broadcast %cst_25 : f32 to vector<8x256xf32>
    %58 = arith.divf %56, %57 : vector<8x256xf32>
    %59 = arith.truncf %10 : vector<8x128xf32> to vector<8x128xbf16>
    %c0_26 = arith.constant 0 : index
    %c0_27 = arith.constant 0 : index
    %60 = vector.load %arg10[%c0_26, %c0_27] : memref<128x512xbf16, #tpu.memory_space<vmem>>, vector<128x256xbf16>
    %cst_28 = arith.constant dense<0.000000e+00> : vector<8x256xf32>
    %61 = tpu.matmul %59, %60, %cst_28 {dimension_numbers = #tpu.dot_dimension_numbers<[1], [0], [0], [1], [0, 0, 1, 1], [], []>} : vector<8x128xbf16>, vector<128x256xbf16>, vector<8x256xf32> -> vector<8x256xf32>
    %c1 = arith.constant 1 : index
    %c0_29 = arith.constant 0 : index
    %62 = vector.load %arg11[%c1, %c0_29] : memref<8x512xf32, #tpu.memory_space<vmem>>, vector<1x256xf32>
    %63 = vector.broadcast %62 : vector<1x256xf32> to vector<8x256xf32>
    %64 = arith.addf %61, %63 : vector<8x256xf32>
    %65 = arith.mulf %64, %64 : vector<8x256xf32>
    %cst_30 = arith.constant dense<0.000000e+00> : vector<8xf32>
    %66 = vector.multi_reduction <add>, %65, %cst_30 [1] : vector<8x256xf32> to vector<8xf32>
    %67 = vector.shape_cast %66 : vector<8xf32> to vector<8x1xf32>
    %cst_31 = arith.constant 1.000000e-24 : f32
    %68 = vector.broadcast %cst_31 : f32 to vector<8x1xf32>
    %69 = arith.maximumf %67, %68 : vector<8x1xf32>
    %70 = math.rsqrt %69 : vector<8x1xf32>
    %71 = vector.broadcast %70 : vector<8x1xf32> to vector<8x256xf32>
    %72 = arith.mulf %64, %71 : vector<8x256xf32>
    %73 = arith.truncf %11 : vector<8x128xf32> to vector<8x128xbf16>
    %c0_32 = arith.constant 0 : index
    %c256 = arith.constant 256 : index
    %74 = vector.load %arg10[%c0_32, %c256] : memref<128x512xbf16, #tpu.memory_space<vmem>>, vector<128x256xbf16>
    %cst_33 = arith.constant dense<0.000000e+00> : vector<8x256xf32>
    %75 = tpu.matmul %73, %74, %cst_33 {dimension_numbers = #tpu.dot_dimension_numbers<[1], [0], [0], [1], [0, 0, 1, 1], [], []>} : vector<8x128xbf16>, vector<128x256xbf16>, vector<8x256xf32> -> vector<8x256xf32>
    %c1_34 = arith.constant 1 : index
    %c256_35 = arith.constant 256 : index
    %76 = vector.load %arg11[%c1_34, %c256_35] : memref<8x512xf32, #tpu.memory_space<vmem>>, vector<1x256xf32>
    %77 = vector.broadcast %76 : vector<1x256xf32> to vector<8x256xf32>
    %78 = arith.addf %75, %77 : vector<8x256xf32>
    %79 = arith.mulf %78, %78 : vector<8x256xf32>
    %cst_36 = arith.constant dense<0.000000e+00> : vector<8xf32>
    %80 = vector.multi_reduction <add>, %79, %cst_36 [1] : vector<8x256xf32> to vector<8xf32>
    %81 = vector.shape_cast %80 : vector<8xf32> to vector<8x1xf32>
    %cst_37 = arith.constant 1.000000e-24 : f32
    %82 = vector.broadcast %cst_37 : f32 to vector<8x1xf32>
    %83 = arith.maximumf %81, %82 : vector<8x1xf32>
    %84 = math.rsqrt %83 : vector<8x1xf32>
    %85 = vector.broadcast %84 : vector<8x1xf32> to vector<8x256xf32>
    %86 = arith.mulf %78, %85 : vector<8x256xf32>
    %87 = arith.addf %72, %86 : vector<8x256xf32>
    %c0_38 = arith.constant 0 : index
    %c0_39 = arith.constant 0 : index
    %88 = vector.load %arg4[%c0_38, %c0_39] : memref<8x768xbf16, #tpu.memory_space<vmem>>, vector<8x768xbf16>
    %c0_40 = arith.constant 0 : index
    %c0_41 = arith.constant 0 : index
    %89 = vector.load %arg5[%c0_40, %c0_41] : memref<768x512xbf16, #tpu.memory_space<vmem>>, vector<768x512xbf16>
    %cst_42 = arith.constant dense<0.000000e+00> : vector<8x512xf32>
    %90 = tpu.matmul %88, %89, %cst_42 {dimension_numbers = #tpu.dot_dimension_numbers<[1], [0], [0], [1], [0, 0, 1, 1], [], []>} : vector<8x768xbf16>, vector<768x512xbf16>, vector<8x512xf32> -> vector<8x512xf32>
    %c2 = arith.constant 2 : index
    %c0_43 = arith.constant 0 : index
    %91 = vector.load %arg11[%c2, %c0_43] : memref<8x512xf32, #tpu.memory_space<vmem>>, vector<1x512xf32>
    %92 = vector.broadcast %91 : vector<1x512xf32> to vector<8x512xf32>
    %93 = arith.addf %90, %92 : vector<8x512xf32>
    %cst_44 = arith.constant 0.000000e+00 : f32
    %94 = vector.broadcast %cst_44 : f32 to vector<8x512xf32>
    %95 = arith.maximumf %93, %94 : vector<8x512xf32>
    %96 = arith.truncf %95 : vector<8x512xf32> to vector<8x512xbf16>
    %c0_45 = arith.constant 0 : index
    %c0_46 = arith.constant 0 : index
    %97 = vector.load %arg6[%c0_45, %c0_46] : memref<512x256xbf16, #tpu.memory_space<vmem>>, vector<512x256xbf16>
    %cst_47 = arith.constant dense<0.000000e+00> : vector<8x256xf32>
    %98 = tpu.matmul %96, %97, %cst_47 {dimension_numbers = #tpu.dot_dimension_numbers<[1], [0], [0], [1], [0, 0, 1, 1], [], []>} : vector<8x512xbf16>, vector<512x256xbf16>, vector<8x256xf32> -> vector<8x256xf32>
    %c3 = arith.constant 3 : index
    %c0_48 = arith.constant 0 : index
    %99 = vector.load %arg11[%c3, %c0_48] : memref<8x512xf32, #tpu.memory_space<vmem>>, vector<1x256xf32>
    %100 = vector.broadcast %99 : vector<1x256xf32> to vector<8x256xf32>
    %101 = arith.addf %98, %100 : vector<8x256xf32>
    %102 = arith.mulf %101, %101 : vector<8x256xf32>
    %cst_49 = arith.constant dense<0.000000e+00> : vector<8xf32>
    %103 = vector.multi_reduction <add>, %102, %cst_49 [1] : vector<8x256xf32> to vector<8xf32>
    %104 = vector.shape_cast %103 : vector<8xf32> to vector<8x1xf32>
    %cst_50 = arith.constant 1.000000e-24 : f32
    %105 = vector.broadcast %cst_50 : f32 to vector<8x1xf32>
    %106 = arith.maximumf %104, %105 : vector<8x1xf32>
    %107 = math.rsqrt %106 : vector<8x1xf32>
    %108 = vector.broadcast %107 : vector<8x1xf32> to vector<8x256xf32>
    %109 = arith.mulf %101, %108 : vector<8x256xf32>
    %110 = vector.shape_cast %109 : vector<8x256xf32> to vector<1x8x256xf32>
    %111 = vector.shape_cast %87 : vector<8x256xf32> to vector<8x1x256xf32>
    %112 = vector.broadcast %110 : vector<1x8x256xf32> to vector<8x8x256xf32>
    %113 = vector.broadcast %111 : vector<8x1x256xf32> to vector<8x8x256xf32>
    %114 = arith.addf %112, %113 : vector<8x8x256xf32>
    %115 = arith.mulf %114, %114 : vector<8x8x256xf32>
    %cst_51 = arith.constant dense<0.000000e+00> : vector<8x8xf32>
    %116 = vector.multi_reduction <add>, %115, %cst_51 [2] : vector<8x8x256xf32> to vector<8x8xf32>
    %117 = vector.shape_cast %116 : vector<8x8xf32> to vector<8x8x1xf32>
    %cst_52 = arith.constant 1.000000e-24 : f32
    %118 = vector.broadcast %cst_52 : f32 to vector<8x8x1xf32>
    %119 = arith.maximumf %117, %118 : vector<8x8x1xf32>
    %120 = math.rsqrt %119 : vector<8x8x1xf32>
    %121 = vector.broadcast %120 : vector<8x8x1xf32> to vector<8x8x256xf32>
    %122 = arith.mulf %114, %121 : vector<8x8x256xf32>
    %cst_53 = arith.constant dense<0.000000e+00> : vector<8x256xf32>
    %123 = vector.multi_reduction <add>, %122, %cst_53 [1] : vector<8x8x256xf32> to vector<8x256xf32>
    %cst_54 = arith.constant 8.000000e+00 : f32
    %124 = vector.broadcast %cst_54 : f32 to vector<8x256xf32>
    %125 = arith.divf %123, %124 : vector<8x256xf32>
    %126 = arith.truncf %53 : vector<8x256xf32> to vector<8x256xbf16>
    %c0_55 = arith.constant 0 : index
    %c0_56 = arith.constant 0 : index
    %127 = vector.load %arg8[%c0_55, %c0_56] : memref<256x384xbf16, #tpu.memory_space<vmem>>, vector<256x96xbf16>
    %cst_57 = arith.constant dense<0.000000e+00> : vector<8x96xf32>
    %128 = tpu.matmul %126, %127, %cst_57 {dimension_numbers = #tpu.dot_dimension_numbers<[1], [0], [0], [1], [0, 0, 1, 1], [], []>} : vector<8x256xbf16>, vector<256x96xbf16>, vector<8x96xf32> -> vector<8x96xf32>
    %129 = arith.truncf %58 : vector<8x256xf32> to vector<8x256xbf16>
    %c0_58 = arith.constant 0 : index
    %c128 = arith.constant 128 : index
    %130 = vector.load %arg8[%c0_58, %c128] : memref<256x384xbf16, #tpu.memory_space<vmem>>, vector<256x96xbf16>
    %cst_59 = arith.constant dense<0.000000e+00> : vector<8x96xf32>
    %131 = tpu.matmul %129, %130, %cst_59 {dimension_numbers = #tpu.dot_dimension_numbers<[1], [0], [0], [1], [0, 0, 1, 1], [], []>} : vector<8x256xbf16>, vector<256x96xbf16>, vector<8x96xf32> -> vector<8x96xf32>
    %132 = arith.addf %128, %131 : vector<8x96xf32>
    %133 = arith.truncf %125 : vector<8x256xf32> to vector<8x256xbf16>
    %c0_60 = arith.constant 0 : index
    %c256_61 = arith.constant 256 : index
    %134 = vector.load %arg8[%c0_60, %c256_61] : memref<256x384xbf16, #tpu.memory_space<vmem>>, vector<256x96xbf16>
    %cst_62 = arith.constant dense<0.000000e+00> : vector<8x96xf32>
    %135 = tpu.matmul %133, %134, %cst_62 {dimension_numbers = #tpu.dot_dimension_numbers<[1], [0], [0], [1], [0, 0, 1, 1], [], []>} : vector<8x256xbf16>, vector<256x96xbf16>, vector<8x96xf32> -> vector<8x96xf32>
    %136 = vector.extract_strided_slice %0 {offsets = [0, 16], sizes = [8, 6], strides = [1, 1]} : vector<8x128xf32> to vector<8x6xf32>
    %cst_63 = arith.constant 0.000000e+00 : f32
    %137 = vector.broadcast %cst_63 : f32 to vector<8x16xf32>
    %cst_64 = arith.constant 0.000000e+00 : f32
    %138 = vector.broadcast %cst_64 : f32 to vector<8x16xf32>
    %139 = vector.extract_strided_slice %136 {offsets = [0, 0], sizes = [8, 1], strides = [1, 1]} : vector<8x6xf32> to vector<8x1xf32>
    %140 = vector.extract_strided_slice %132 {offsets = [0, 0], sizes = [8, 16], strides = [1, 1]} : vector<8x96xf32> to vector<8x16xf32>
    %141 = vector.broadcast %139 : vector<8x1xf32> to vector<8x16xf32>
    %142 = arith.mulf %141, %140 : vector<8x16xf32>
    %143 = arith.addf %137, %142 : vector<8x16xf32>
    %144 = vector.extract_strided_slice %135 {offsets = [0, 0], sizes = [8, 16], strides = [1, 1]} : vector<8x96xf32> to vector<8x16xf32>
    %145 = vector.broadcast %139 : vector<8x1xf32> to vector<8x16xf32>
    %146 = arith.mulf %145, %144 : vector<8x16xf32>
    %147 = arith.addf %138, %146 : vector<8x16xf32>
    %148 = vector.extract_strided_slice %136 {offsets = [0, 1], sizes = [8, 1], strides = [1, 1]} : vector<8x6xf32> to vector<8x1xf32>
    %149 = vector.extract_strided_slice %132 {offsets = [0, 16], sizes = [8, 16], strides = [1, 1]} : vector<8x96xf32> to vector<8x16xf32>
    %150 = vector.broadcast %148 : vector<8x1xf32> to vector<8x16xf32>
    %151 = arith.mulf %150, %149 : vector<8x16xf32>
    %152 = arith.addf %143, %151 : vector<8x16xf32>
    %153 = vector.extract_strided_slice %135 {offsets = [0, 16], sizes = [8, 16], strides = [1, 1]} : vector<8x96xf32> to vector<8x16xf32>
    %154 = vector.broadcast %148 : vector<8x1xf32> to vector<8x16xf32>
    %155 = arith.mulf %154, %153 : vector<8x16xf32>
    %156 = arith.addf %147, %155 : vector<8x16xf32>
    %157 = vector.extract_strided_slice %136 {offsets = [0, 2], sizes = [8, 1], strides = [1, 1]} : vector<8x6xf32> to vector<8x1xf32>
    %158 = vector.extract_strided_slice %132 {offsets = [0, 32], sizes = [8, 16], strides = [1, 1]} : vector<8x96xf32> to vector<8x16xf32>
    %159 = vector.broadcast %157 : vector<8x1xf32> to vector<8x16xf32>
    %160 = arith.mulf %159, %158 : vector<8x16xf32>
    %161 = arith.addf %152, %160 : vector<8x16xf32>
    %162 = vector.extract_strided_slice %135 {offsets = [0, 32], sizes = [8, 16], strides = [1, 1]} : vector<8x96xf32> to vector<8x16xf32>
    %163 = vector.broadcast %157 : vector<8x1xf32> to vector<8x16xf32>
    %164 = arith.mulf %163, %162 : vector<8x16xf32>
    %165 = arith.addf %156, %164 : vector<8x16xf32>
    %166 = vector.extract_strided_slice %136 {offsets = [0, 3], sizes = [8, 1], strides = [1, 1]} : vector<8x6xf32> to vector<8x1xf32>
    %167 = vector.extract_strided_slice %132 {offsets = [0, 48], sizes = [8, 16], strides = [1, 1]} : vector<8x96xf32> to vector<8x16xf32>
    %168 = vector.broadcast %166 : vector<8x1xf32> to vector<8x16xf32>
    %169 = arith.mulf %168, %167 : vector<8x16xf32>
    %170 = arith.addf %161, %169 : vector<8x16xf32>
    %171 = vector.extract_strided_slice %135 {offsets = [0, 48], sizes = [8, 16], strides = [1, 1]} : vector<8x96xf32> to vector<8x16xf32>
    %172 = vector.broadcast %166 : vector<8x1xf32> to vector<8x16xf32>
    %173 = arith.mulf %172, %171 : vector<8x16xf32>
    %174 = arith.addf %165, %173 : vector<8x16xf32>
    %175 = vector.extract_strided_slice %136 {offsets = [0, 4], sizes = [8, 1], strides = [1, 1]} : vector<8x6xf32> to vector<8x1xf32>
    %176 = vector.extract_strided_slice %132 {offsets = [0, 64], sizes = [8, 16], strides = [1, 1]} : vector<8x96xf32> to vector<8x16xf32>
    %177 = vector.broadcast %175 : vector<8x1xf32> to vector<8x16xf32>
    %178 = arith.mulf %177, %176 : vector<8x16xf32>
    %179 = arith.addf %170, %178 : vector<8x16xf32>
    %180 = vector.extract_strided_slice %135 {offsets = [0, 64], sizes = [8, 16], strides = [1, 1]} : vector<8x96xf32> to vector<8x16xf32>
    %181 = vector.broadcast %175 : vector<8x1xf32> to vector<8x16xf32>
    %182 = arith.mulf %181, %180 : vector<8x16xf32>
    %183 = arith.addf %174, %182 : vector<8x16xf32>
    %184 = vector.extract_strided_slice %136 {offsets = [0, 5], sizes = [8, 1], strides = [1, 1]} : vector<8x6xf32> to vector<8x1xf32>
    %185 = vector.extract_strided_slice %132 {offsets = [0, 80], sizes = [8, 16], strides = [1, 1]} : vector<8x96xf32> to vector<8x16xf32>
    %186 = vector.broadcast %184 : vector<8x1xf32> to vector<8x16xf32>
    %187 = arith.mulf %186, %185 : vector<8x16xf32>
    %188 = arith.addf %179, %187 : vector<8x16xf32>
    %189 = vector.extract_strided_slice %135 {offsets = [0, 80], sizes = [8, 16], strides = [1, 1]} : vector<8x96xf32> to vector<8x16xf32>
    %190 = vector.broadcast %184 : vector<8x1xf32> to vector<8x16xf32>
    %191 = arith.mulf %190, %189 : vector<8x16xf32>
    %192 = arith.addf %183, %191 : vector<8x16xf32>
    %193 = arith.negf %188 : vector<8x16xf32>
    %194 = math.exp %193 : vector<8x16xf32>
    %cst_65 = arith.constant 1.000000e+00 : f32
    %195 = vector.broadcast %cst_65 : f32 to vector<8x16xf32>
    %196 = arith.addf %195, %194 : vector<8x16xf32>
    %197 = arith.divf %195, %196 : vector<8x16xf32>
    %198 = arith.negf %192 : vector<8x16xf32>
    %199 = math.exp %198 : vector<8x16xf32>
    %cst_66 = arith.constant 1.000000e+00 : f32
    %200 = vector.broadcast %cst_66 : f32 to vector<8x16xf32>
    %201 = arith.addf %200, %199 : vector<8x16xf32>
    %202 = arith.divf %200, %201 : vector<8x16xf32>
    %203 = arith.addf %197, %202 : vector<8x16xf32>
    %c0_67 = arith.constant 0 : index
    %c0_68 = arith.constant 0 : index
    %204 = vector.load %arg12[%c0_67, %c0_68] : memref<8x16xf32, #tpu.memory_space<vmem>>, vector<8x16xf32>
    tpu.vector_store %arg12[%c0_67, %c0_68], %203 {strides = array<i32>} : memref<8x16xf32, #tpu.memory_space<vmem>>, vector<8x16xf32>,
    return
  }
  func.func @transform_0(%arg0: i32) -> (i32, i32, i32) {
    %c0_i32 = arith.constant 0 : i32
    %c0_i32_0 = arith.constant 0 : i32
    %c0_i32_1 = arith.constant 0 : i32
    return %arg0, %c0_i32, %c0_i32_0 : i32, i32, i32
  }
  func.func @transform_1(%arg0: i32) -> (i32, i32, i32) {
    %c0_i32 = arith.constant 0 : i32
    %c0_i32_0 = arith.constant 0 : i32
    %c0_i32_1 = arith.constant 0 : i32
    return %arg0, %c0_i32, %c0_i32_0 : i32, i32, i32
  }
  func.func @transform_2(%arg0: i32) -> (i32, i32) {
    %c0_i32 = arith.constant 0 : i32
    %c0_i32_0 = arith.constant 0 : i32
    return %arg0, %c0_i32 : i32, i32
  }
  func.func @transform_3(%arg0: i32) -> (i32, i32) {
    %c0_i32 = arith.constant 0 : i32
    %c0_i32_0 = arith.constant 0 : i32
    %c0_i32_1 = arith.constant 0 : i32
    return %c0_i32, %c0_i32_0 : i32, i32
  }
  func.func @transform_4(%arg0: i32) -> (i32, i32) {
    %c0_i32 = arith.constant 0 : i32
    %c0_i32_0 = arith.constant 0 : i32
    %c0_i32_1 = arith.constant 0 : i32
    return %c0_i32, %c0_i32_0 : i32, i32
  }
  func.func @transform_5(%arg0: i32) -> (i32, i32) {
    %c0_i32 = arith.constant 0 : i32
    %c0_i32_0 = arith.constant 0 : i32
    %c0_i32_1 = arith.constant 0 : i32
    return %c0_i32, %c0_i32_0 : i32, i32
  }
  func.func @transform_6(%arg0: i32) -> (i32, i32) {
    %c0_i32 = arith.constant 0 : i32
    %c0_i32_0 = arith.constant 0 : i32
    %c0_i32_1 = arith.constant 0 : i32
    return %c0_i32, %c0_i32_0 : i32, i32
  }
  func.func @transform_7(%arg0: i32) -> (i32, i32) {
    %c0_i32 = arith.constant 0 : i32
    %c0_i32_0 = arith.constant 0 : i32
    %c0_i32_1 = arith.constant 0 : i32
    return %c0_i32, %c0_i32_0 : i32, i32
  }
  func.func @transform_8(%arg0: i32) -> (i32, i32) {
    %c0_i32 = arith.constant 0 : i32
    %c0_i32_0 = arith.constant 0 : i32
    %c0_i32_1 = arith.constant 0 : i32
    return %c0_i32, %c0_i32_0 : i32, i32
  }
  func.func @transform_9(%arg0: i32) -> (i32, i32) {
    %c0_i32 = arith.constant 0 : i32
    %c0_i32_0 = arith.constant 0 : i32
    %c0_i32_1 = arith.constant 0 : i32
    return %c0_i32, %c0_i32_0 : i32, i32
  }
  func.func @transform_10(%arg0: i32) -> (i32, i32) {
    %c0_i32 = arith.constant 0 : i32
    %c0_i32_0 = arith.constant 0 : i32
    %c0_i32_1 = arith.constant 0 : i32
    return %c0_i32, %c0_i32_0 : i32, i32
  }
  func.func @transform_11(%arg0: i32) -> (i32, i32) {
    %c0_i32 = arith.constant 0 : i32
    %c0_i32_0 = arith.constant 0 : i32
    return %arg0, %c0_i32 : i32, i32
  }
}

</mosaic_0001>

<bundles_post_ra>
// kernel: tpu_custom_call.1
= control target key start
LH: loop header
LB: loop body
LE: loop exit
PB: predicated region body
PF: predicated region fallthrough
CT: control target
= control target key end

     0   :  { %s9740_s0 = inlined_call_operand.hbm [shape: bf16[16,8,256], index: 0, kind: input, shape index: {}]   ;;  %s9741_s1 = inlined_call_operand.hbm [shape: bf16[16,8,256], index: 1, kind: input, shape index: {}]   ;;  %s9742_s2 = inlined_call_operand.hbm [shape: f32[16,128], index: 2, kind: input, shape index: {}]   ;;  %s9743_s3 = inlined_call_operand.hbm [shape: bf16[8,768], index: 3, kind: input, shape index: {}]   ;;  %s9744_s4 = inlined_call_operand.hbm [shape: bf16[768,512], index: 4, kind: input, shape index: {}]   ;;  %s9745_s5 = inlined_call_operand.hbm [shape: bf16[512,256], index: 5, kind: input, shape index: {}]   ;;  %s9746_s6 = inlined_call_operand.hbm [shape: bf16[256,512], index: 6, kind: input, shape index: {}]   ;;  %s9747_s7 = inlined_call_operand.hbm [shape: bf16[256,384], index: 7, kind: input, shape index: {}]   ;;  %s9748_s8 = inlined_call_operand.hbm [shape: f32[16,512], index: 8, kind: input, shape index: {}]   ;;  %s9749_s9 = inlined_call_operand.hbm [shape: bf16[128,512], index: 9, kind: input, shape index: {}]   ;;  %s9750_s10 = inlined_call_operand.hbm [shape: f32[8,512], index: 10, kind: input, shape index: {}]   ;;  %s9751_s11 = inlined_call_operand.hbm [shape: f32[16,16], index: 11, kind: output, shape index: {}]  }
   0x1   :  { %9798 = sst [smem:[#allocation65_spill]] %s9741_s1 }
   0x2   :  { %9799 = sst [smem:[#allocation66_spill]] %s9743_s3 }
   0x3   :  { %9800 = sst [smem:[#allocation67_spill]] %s9744_s4 }
   0x4   :  { %9801 = sst [smem:[#allocation68_spill]] %s9745_s5 }
   0x5   :  { %9802 = sst [smem:[#allocation69_spill]] %s9746_s6 }
   0x6   :  { %9803 = sst [smem:[#allocation70_spill]] %s9747_s7 }
   0x7   :  { %9804 = sst [smem:[#allocation71_spill]] %s9748_s8 }
   0x8   :  { %9805 = sst [smem:[#allocation72_spill]] %s9749_s9 }
   0x9   :  { %16 = vsyncpa [#allocation3], 0 }
   0xa   :  { %18 = vsyncpa [#allocation3 + $0x1], 0 }
   0xb   :  { %19 = vsyncpa [#allocation6], 0 }
   0xc   :  { %21 = vsyncpa [#allocation6 + $0x1], 0 }
   0xd   :  { %22 = vsyncpa [#allocation9], 0 }
   0xe   :  { %23 = vsyncpa [#allocation12], 0 }
   0xf   :  { %24 = vsyncpa [#allocation15], 0 }
  0x10   :  { %25 = vsyncpa [#allocation18], 0 }
  0x11   :  { %26 = vsyncpa [#allocation4], 0 }
  0x12   :  { %28 = vsyncpa [#allocation4 + $0x1], 0  ;;  %s8300_s17 = smov 0   ;;  %s8302_s18 = smov 0  }
  0x13   :  { %s8304_s19 = smov 0   ;;  %s8306_s20 = smov 0  }
  0x14 LB: > { %9806 = sst [smem:[#allocation28_spill]] %s8198_s17  ;;  %s8324_s24 = sadd.s32 4294967295, %s8210_s20   ;;  %s8210_s20 = sphi %s8306_s20, %s9932_s20   ;;  %s8206_s19 = sphi %s8304_s19, %s9934_s19   ;;  %s8202_s18 = sphi %s8302_s18, %s9936_s18   ;;  %s8198_s17 = sphi %s8300_s17, %s9935_s17  }
  0x15   : > { %9807 = sst [smem:[#allocation29_spill]] %s8206_s19  ;;  %p5532_p0 = scmp.ge.s32.totalorder %s8210_s20, 1 }
  0x16   : > { %s9808_s3 = sld [smem:[#allocation66_spill]]  ;;  %p9764_p1 = scmp.eq.s32.totalorder %s8324_s24, 0 }
  0x17   : > { %p311_p2 = scmp.lt.s32.totalorder %s8210_s20, 3  ;;  %s8212_s26 = smov [#allocation8]  }
  0x18   : > { %s325_s27 = sshll.u32 %s8212_s26, 4  ;;  %s9810_s5 = sld [smem:[#allocation68_spill]]  ;;  %s326_s27 = int_to_ptr.vmem [resolvable:$true] %s325_s27 }
  0x19   : > { %p8329_p3 = pnand %p5532_p0, %p311_p2  ;;  %s8213_s13 = smov [#allocation11]  }
  0x1a   : > { %s350_s14 = sshll.u32 %s8213_s13, 4  ;;  %s9752_s15 = smov 128   ;;  %s351_s14 = int_to_ptr.vmem [resolvable:$true] %s350_s14 }
  0x1b   : > { %p7619_p5 = pneg %p8329_p3  ;;  %s9758_s16 = smov 8  }
  0x1c   : > { %s323_s23 = sshll.u32 %s9808_s3, 4  ;;  %s9812_s7 = sld [smem:[#allocation70_spill]]  ;;  %s324_s23 = int_to_ptr.hbm [resolvable:$true] %s323_s23 }
  0x1d   : > { %p8341_p6 = pnand %p7619_p5, %p9764_p1  ;;  %s8216_s28 = smov [#allocation14]  }
  0x1e   : > { %s348_s30 = sshll.u32 %s9810_s5, 4  ;;  %s378_s29 = sshll.u32 %s8216_s28, 4  ;;  %s349_s30 = int_to_ptr.hbm [resolvable:$true] %s348_s30  ;;  %s379_s29 = int_to_ptr.vmem [resolvable:$true] %s378_s29 }
  0x1f   : > { %7622 = dma.hbm_to_vmem [thread:$0]  (!%p8341_p6), %s324_s23, 384, %s326_s27, [#allocation9]  }
  0x20   : > { %7628 = dma.hbm_to_vmem [thread:$0]  (!%p8341_p6), %s349_s30, 8192, %s351_s14, [#allocation12], %s9752_s15, %s9752_s15, %s9758_s16  }
  0x21   : > { %s8217_s23 = smov 192   ;;  %s8218_s27 = smov 12  }
  0x22   : > { %s376_s26 = sshll.u32 %s9812_s7, 4  ;;  %s9813_s9 = sld [smem:[#allocation72_spill]]  ;;  %s377_s26 = int_to_ptr.hbm [resolvable:$true] %s376_s26 }
  0x23   : > { %7634 = dma.hbm_to_vmem [thread:$0]  (!%p8341_p6), %s377_s26, 6144, %s379_s29, [#allocation15], %s8217_s23, %s8217_s23, %s8218_s27  }
  0x24   : > { %s8219_s21 = smov [#allocation17]   ;;  %s9754_s28 = smov 256  }
  0x25   : > { %s406_s22 = sshll.u32 %s8219_s21, 4  ;;  %s9756_s15 = smov 16   ;;  %s407_s22 = int_to_ptr.vmem [resolvable:$true] %s406_s22 }
  0x26   : > { %s5531_s26 = sadd.s32 4294967294, %s8210_s20   ;;  %s8367_s29 = sadd.s32 1, %s8210_s20  }
  0x27   : > { %9814 = sst [smem:[#allocation30_spill]] %s8367_s29  ;;  %s38_s23 = ssub.s32 %s8210_s20, %s8367_s29 }
  0x28   : > { %s404_s14 = sshll.u32 %s9813_s9, 4  ;;  %s41_s27 = sadd.s32 1, %s8206_s19  ;;  %s405_s14 = int_to_ptr.hbm [resolvable:$true] %s404_s14 }
  0x29   : > { %7640 = dma.hbm_to_vmem [thread:$0]  (!%p8341_p6), %s405_s14, 4096, %s407_s22, [#allocation18], %s9754_s28, %s9754_s28, %s9756_s15  }
  0x2a   : > { %p39_p7 = scmp.eq.s32.totalorder %s38_s23, 0  ;;  %p48_p8 = scmp.ne.s32.totalorder %s8206_s19, %s8202_s18 }
  0x2b   : > { %p49_p9 = scmp.eq.s32.totalorder %s8210_s20, 0  ;;  %p54_p10 = scmp.ne.s32.totalorder %s8202_s18, %s8198_s17 }
  0x2c   : > { %s8378_s30 = scalar_select %p39_p7, %s8206_s19, %s41_s27  }
  0x2d   : > { %p50_p11 = por %p49_p9, %p48_p8  ;;  %p8382_p12 = por %p9764_p1, %p54_p10 }
  0x2e   : > { %9815 = sst [smem:[#allocation31_spill]] %s8378_s30  ;;  %p298_p13 = scmp.eq.s32.totalorder %s8324_s24, 1 }
  0x2f   : > { %p304_p0 = scmp.eq.s32.totalorder %s5531_s26, 1  ;;  %p7666_p2 = scmp.lt.s32.totalorder %s8210_s20, 2 }
  0x30   : > { %s8389_s14 = sand.u32 1, %s8206_s19   ;;  %p8391_p5 = por %p298_p13, %p48_p8 }
  0x31   : > { %p8395_p4 = por %p304_p0, %p54_p10  ;;  %s9763_s23 = sshll.u32 %s8389_s14, 6 }
  0x32   : > { %s9817_s21 = scalar_select %p8391_p5, 1, 0 }
  0x33   : > { %s9819_s22 = scalar_select %p8395_p4, 1, 0 }
  0x34   : > { %9818 = sst [smem:[#allocation32_spill]] %s9817_s21  ;;  %s9765_s27 = sshll.u32 %s8210_s20, 6 }
  0x35   : > { %9820 = sst [smem:[#allocation33_spill]] %s9819_s22  ;;  %p8401_p7 = pnand %p7666_p2, %p50_p11 }
  0x36   : > { %s455_s26 = sand.u32 1, %s8210_s20   ;;  %s9822_s1 = sld [smem:[#allocation65_spill]] }
  0x37   : > { %s459_s7 = scalar_lea.vmem [#allocation5], %s9763_s23  ;;  %s8413_s30 = scalar_lea.sflag [#allocation6], %s455_s26 }
  0x38   : > { %s468_s9 = sshll.u32 %s459_s7, 4  ;;  %p7918_p9 = pneg %p8401_p7  ;;  %s469_s9 = int_to_ptr.vmem [resolvable:$true] %s468_s9 }
  0x3c   : > { %s465_s3 = scalar_lea.hbm %s9822_s1, %s9765_s27 }
  0x3d   : > { %s466_s5 = sshll.u32 %s465_s3, 4  ;;  %s7921_s3 = scalar_lea.hbm %s9822_s1, 128  ;;  %s467_s5 = int_to_ptr.hbm [resolvable:$true] %s466_s5 }
  0x3e   : > { %s7914_s19 = sshra.s32 %s467_s5, 4  ;;  %s7915_s19 = int_to_ptr.hbm [resolvable:$true] %s7914_s19 }
  0x3f   : > { %s7916_s29 = scalar_lea.hbm %s7915_s19, 64  ;;  %p7922_p13 = scmp.lt.s32.totalorder %s7915_s19, %s9822_s1 }
  0x40   : > { %p7917_p8 = scmp.ne.s32.totalorder %s7915_s19, %s7916_s29  ;;  %p7923_p0 = scmp.lt.s32.totalorder %s7921_s3, %s7916_s29 }
  0x42   : > { %p7919_p10 = pnand %p7918_p9, %p7917_p8  ;;  %p7924_p2 = por %p7923_p0, %p7922_p13 }
  0x44   : > { %p7920_p11 = pneg %p7919_p10 }
  0x46   : > { %p7925_p1 = pnand %p7924_p2, %p7920_p11 }
  0x48   : > { %7928 = shalt.err (!%p7925_p1)
}
  0x49   : > { %s9823_s26 = smov 8   ;;  %s9824_s27 = smov 128  }
  0x4a   : > { %7650 = dma.hbm_to_vmem [thread:$0]  (!%p8401_p7), %s467_s5, 1024, %s469_s9, %s8413_s30, %s9824_s27, %s9824_s27, %s9823_s26  }
  0x4b   : > { %s9825_s4 = sld [smem:[#allocation67_spill]]  ;;  %s8222_s23 = smov [#allocation10]  }
  0x4c   : > { %s336_s19 = sshll.u32 %s8222_s23, 4  ;;  %s9826_s6 = sld [smem:[#allocation69_spill]]  ;;  %s337_s19 = int_to_ptr.vmem [resolvable:$true] %s336_s19 }
  0x4d   : > { %s9827_s1 = smov 16   ;;  %s9828_s17 = smov 256  }
  0x4e   : > { %s8223_s5 = smov [#allocation13]   ;;  %s9829_s8 = sld [smem:[#allocation71_spill]] }
  0x4f   : > { %s364_s9 = sshll.u32 %s8223_s5, 4  ;;  %s8224_s23 = smov [#allocation16]   ;;  %s365_s9 = int_to_ptr.vmem [resolvable:$true] %s364_s9 }
  0x50   : > { %s392_s29 = sshll.u32 %s8224_s23, 4  ;;  %s419_s3 = sshll.u32 %s9750_s10, 4  ;;  %s393_s29 = int_to_ptr.vmem [resolvable:$true] %s392_s29  ;;  %s420_s3 = int_to_ptr.hbm [resolvable:$true] %s419_s3 }
  0x51   : > { %s334_s16 = sshll.u32 %s9825_s4, 4  ;;  %s8225_s21 = smov 512   ;;  %s335_s16 = int_to_ptr.hbm [resolvable:$true] %s334_s16 }
  0x52   : > { %s362_s7 = sshll.u32 %s9826_s6, 4  ;;  %s8226_s5 = smov 32   ;;  %s363_s7 = int_to_ptr.hbm [resolvable:$true] %s362_s7 }
  0x53   : > { %7625 = dma.hbm_to_vmem [thread:$0]  (!%p8341_p6), %s335_s16, 24576, %s337_s19, [#allocation9], %s9828_s17, %s9828_s17, %s9827_s1  }
  0x54   : > { %s390_s15 = sshll.u32 %s9829_s8, 4  ;;  %s8227_s22 = smov [#allocation19]   ;;  %s391_s15 = int_to_ptr.hbm [resolvable:$true] %s390_s15 }
  0x55   : > { %7631 = dma.hbm_to_vmem [thread:$0]  (!%p8341_p6), %s363_s7, 8192, %s365_s9, [#allocation12], %s9828_s17, %s9828_s17, %s9827_s1  }
  0x56   : > { %7637 = dma.hbm_to_vmem [thread:$0]  (!%p8341_p6), %s391_s15, 1024, %s393_s29, [#allocation15], %s8225_s21, %s8225_s21, %s8226_s5  }
  0x57   : > { %s421_s4 = sshll.u32 %s8227_s22, 4  ;;  %s9830_s1 = sshll.u32 %s8210_s20, 6  ;;  %s422_s4 = int_to_ptr.vmem [resolvable:$true] %s421_s4 }
  0x58   : > { %7643 = dma.hbm_to_vmem [thread:$0]  (!%p8341_p6), %s420_s3, 512, %s422_s4, [#allocation18]  }
  0x59   : > { %s442_s9 = scalar_lea.hbm %s9740_s0, %s9830_s1  ;;  %s9831_s23 = sshll.u32 %s8389_s14, 6 }
  0x5a   : > { %s436_s16 = scalar_lea.vmem [#allocation2], %s9831_s23  ;;  %s443_s6 = sshll.u32 %s442_s9, 4  ;;  %s444_s6 = int_to_ptr.hbm [resolvable:$true] %s443_s6 }
  0x5b   : > { %s445_s19 = sshll.u32 %s436_s16, 4  ;;  %s5550_s8 = sshll.u32 %s8389_s14, 3  ;;  %s446_s19 = int_to_ptr.vmem [resolvable:$true] %s445_s19 }
  0x5c   : > { %s433_s15 = scalar_lea.sflag [#allocation3], %s8389_s14  ;;  %s8064_s29 = sshra.s32 %s444_s6, 4  ;;  %s8065_s29 = int_to_ptr.hbm [resolvable:$true] %s8064_s29 }
  0x5d   : > { %s8066_s21 = scalar_lea.hbm %s8065_s29, 64  ;;  %s8071_s3 = scalar_lea.hbm %s9740_s0, 128 }
  0x5e   : > { %p8067_p1 = scmp.ne.s32.totalorder %s8065_s29, %s8066_s21  ;;  %p8072_p10 = scmp.lt.s32.totalorder %s8065_s29, %s9740_s0 }
  0x5f   : > { %p8073_p11 = scmp.lt.s32.totalorder %s8071_s3, %s8066_s21 }
  0x60   : > { %p8069_p6 = pnand %p8067_p1, %p7918_p9 }
  0x61   : > { %p8074_p13 = por %p8073_p11, %p8072_p10 }
  0x62   : > { %p8070_p8 = pneg %p8069_p6 }
  0x64   : > { %p8075_p0 = pnand %p8074_p13, %p8070_p8 }
  0x66   : > { %8078 = shalt.err (!%p8075_p0)
}
  0x67   : > { %7647 = dma.hbm_to_vmem [thread:$0]  (!%p8401_p7), %s444_s6, 1024, %s446_s19, %s433_s15, %s9824_s27, %s9824_s27, %s9823_s26  }
  0x68   : > { %s5551_s14 = sshll.u32 %s8210_s20, 3  ;;  %s482_s9 = scalar_lea.vmem [#allocation7], %s5550_s8 }
  0x69   : > { %s486_s7 = scalar_lea.hbm %s9742_s2, %s5551_s14  ;;  %s490_s23 = sshll.u32 %s482_s9, 4  ;;  %s491_s23 = int_to_ptr.vmem [resolvable:$true] %s490_s23 }
  0x6a   : > { %s488_s16 = sshll.u32 %s486_s7, 4  ;;  %s8101_s27 = scalar_lea.hbm %s9742_s2, 16  ;;  %s489_s16 = int_to_ptr.hbm [resolvable:$true] %s488_s16 }
  0x6b   : > { %s8094_s29 = sshra.s32 %s489_s16, 4  ;;  %s8095_s29 = int_to_ptr.hbm [resolvable:$true] %s8094_s29 }
  0x6c   : > { %s8096_s21 = scalar_lea.hbm %s8095_s29, 8  ;;  %p8102_p8 = scmp.lt.s32.totalorder %s8095_s29, %s9742_s2 }
  0x6d   : > { %p8097_p2 = scmp.ne.s32.totalorder %s8095_s29, %s8096_s21  ;;  %p8103_p10 = scmp.lt.s32.totalorder %s8101_s27, %s8096_s21 }
  0x6f   : > { %p8099_p1 = pnand %p8097_p2, %p7918_p9  ;;  %p8104_p11 = por %p8103_p10, %p8102_p8 }
  0x71   : > { %p8100_p6 = pneg %p8099_p1 }
  0x73   : > { %p8105_p13 = pnand %p8104_p11, %p8100_p6 }
  0x75   : > { %8108 = shalt.err (!%p8105_p13)
}
  0x76   : > { %7653 = dma.hbm_to_vmem [thread:$0]  (!%p8401_p7), %s489_s16, 128, %s491_s23, %s8413_s30  }
  0x77   : > { %499 = sbr.rel (%p8329_p3) target bundleno = 1463 (0x5b7), region = 64 }
  0x7c   : > { %s8500_s8 = sand.u32 1, %s8202_s18  }
  0x7d   : > { %s5553_s15 = sshll.u32 %s8500_s8, 6  ;;  %s502_s12 = scalar_lea.sflag [#allocation3], %s8500_s8 }
  0x7e   : > { %s8504_s3 = scalar_lea.vmem [#allocation2], %s5553_s15 }
  0x7f   : > { %8169 = dma.done.wait (%p8382_p12), %s502_s12, 1024  }
  0x80   : > { %8171 = vsyncadd (%p8382_p12), %s502_s12, 4294966272  ;;  %s511_s28 = sand.u32 1, %s8324_s24   ;;  %s8511_s30 = scalar_lea.vmem [#allocation5], %s5553_s15 }
  0x81   : > { %s512_s25 = scalar_lea.sflag [#allocation6], %s511_s28 }
  0x82   : > { %8173 = dma.done.wait (%p8382_p12), %s512_s25, 1152  }
  0x83   : > { %8175 = vsyncadd (%p8382_p12), %s512_s25, 4294966144  ;;  %s5555_s5 = sshll.u32 %s8500_s8, 3  ;;  %p9832_p3 = scmp.eq.s32.totalorder %s8324_s24, 0 }
  0x84   : > { %s8520_s22 = scalar_lea.vmem [#allocation7], %s5555_s5 }
  0x85   : > { %8177 = dma.done.wait (%p9832_p3), [#allocation9], 24960   ;;  %p9833_p7 = pmov %p9832_p3 }
  0x86   : > { %p9834_p9 = pmov %p9832_p3 }
  0x87   : > { %8179 = vsyncadd (%p9833_p7), [#allocation9], 4294942336 }
  0x88   : > { %8181 = dma.done.wait (%p9834_p9), [#allocation12], 16384   ;;  %p9835_p0 = pmov %p9832_p3 }
  0x8a   : > { %8183 = vsyncadd (%p9835_p0), [#allocation12], 4294950912  ;;  %p9836_p12 = pmov %p9835_p0 }
  0x8b   : > { %p9837_p2 = pmov %p9835_p0 }
  0x8c   : > { %8185 = dma.done.wait (%p9836_p12), [#allocation15], 7168  }
  0x8d   : > { %8187 = vsyncadd (%p9837_p2), [#allocation15], 4294960128  ;;  %p9838_p1 = pmov %p9835_p0 }
  0x8e   : > { %p9839_p6 = pmov %p9835_p0 }
  0x8f   : > { %8189 = dma.done.wait (%p9838_p1), [#allocation18], 4608  }
  0x90   : > { %8191 = vsyncadd (%p9839_p6), [#allocation18], 4294962688  ;;  %v622_v0 = vld [vmem:[#allocation16 + $0x20] sm:$0xff]  ;;  %v623_v1 = vld [vmem:[#allocation16 + $0x28] sm:$0xff]  ;;  %vm636_vm0 = vcmask 130048   ;;  %vm1305_vm1 = vcmask 1040384  }
  0x91   : > { %v618_v2 = vld [vmem:[#allocation16] sm:$0xff]  ;;  %654 = vmatpush.msra.mxu2 %v622_v0  ;;  %674 = vmatpush.msra.mxu3 %v623_v1  ;;  %v619_v3 = vld [vmem:[#allocation16 + $0x8] sm:$0xff]  ;;  %v624_v5 = vld [vmem:[#allocation16 + $0x30] sm:$0xff]  ;;  %vm1307_vm2 = vcmask 1041409   ;;  %vm1310_vm6 = vcmask 1042434   ;;  %vm1316_vm7 = vcmask 1044484  }
  0x92   : > { %v617_v4 = vld [vmem:[%s8520_s22] sm:$0xff]  ;;  %v620_v7 = vld [vmem:[#allocation16 + $0x10] sm:$0xff]  ;;  %vm1313_vm8 = vcmask 1043459   ;;  %vm1319_vm9 = vcmask 1045509   ;;  %vm1325_vm10 = vcmask 1046528   ;;  %vm1322_vm11 = vcmask 1046534  }
  0x93   : > { %v625_v6 = vld [vmem:[#allocation16 + $0x38] sm:$0xff]  ;;  %655 = vmatpush.msra.mxu2 %v618_v2  ;;  %675 = vmatpush.msra.mxu3 %v619_v3  ;;  %v5683_v9 = vld [vmem:[#allocation13 + $0xe0] sm:$0xf]  ;;  %v7209_v10 = vld [vmem:[#allocation13 + $0xec] sm:$0xf0]  ;;  %s8235_s13 = smov 80  }
  0x94   : > { %v621_v8 = vld [vmem:[#allocation16 + $0x18] sm:$0xff]  ;;  %v5811_v11 = vld [vmem:[#allocation13 + $0x1e0] sm:$0xf]  ;;  %5565 = vmatmul.msk.f32.vlgmr.msra.gmra.mxu2 %vm636_vm0, %v617_v4  ;;  %5566 = vmatmul.msk.f32.vlgmr.msra.gmra.mxu3 %vm636_vm0, %v617_v4  ;;  %v5684_v12 = vor.u32 %v7209_v10, %v5683_v9  ;;  %v7241_v13 = vld [vmem:[#allocation13 + $0x1ec] sm:$0xf0]  ;;  %s8236_s14 = smov 64  }
  0x95   : > { %v7207_v14 = vld [vmem:[#allocation13 + $0xe4] sm:$0xf]  ;;  %v5685_v15 = vld [vmem:[#allocation13 + $0xf0] sm:$0xf0]  ;;  %694 = vmatpush.msrb.mxu2 %v624_v5  ;;  %714 = vmatpush.msrb.mxu3 %v625_v6  ;;  %v5812_v16 = vor.u32 %v7241_v13, %v5811_v11  ;;  %v5667_v20 = vld [vmem:[#allocation13 + $0xc0] sm:$0xf] }
  0x96   : > { %v5688_v17 = vor.u32 %v7207_v14, %v5685_v15  ;;  %v7239_v18 = vld [vmem:[#allocation13 + $0x1e4] sm:$0xf]  ;;  %v5813_v19 = vld [vmem:[#allocation13 + $0x1f0] sm:$0xf0]  ;;  %1110 = vmatpush.bf16.msra.mxu0 %v5684_v12  ;;  %v7205_v22 = vld [vmem:[#allocation13 + $0xcc] sm:$0xf0] }
  0x97   : > { %v5816_v21 = vor.u32 %v7239_v18, %v5813_v19  ;;  %v5795_v23 = vld [vmem:[#allocation13 + $0x1c0] sm:$0xf]  ;;  %v7237_v24 = vld [vmem:[#allocation13 + $0x1cc] sm:$0xf0]  ;;  %695 = vmatpush.msrb.mxu2 %v620_v7  ;;  %715 = vmatpush.msrb.mxu3 %v621_v8  ;;  %v5668_v25 = vor.u32 %v7205_v22, %v5667_v20  ;;  %v7203_v26 = vld [vmem:[#allocation13 + $0xc4] sm:$0xf] }
  0x98   : > { %v5669_v27 = vld [vmem:[#allocation13 + $0xd0] sm:$0xf0]  ;;  %v7235_v28 = vld [vmem:[#allocation13 + $0x1c4] sm:$0xf]  ;;  %1123 = vmatpush.bf16.msra.mxu1 %v5812_v16  ;;  %v5651_v30 = vld [vmem:[#allocation13 + $0xa0] sm:$0xf]  ;;  %v5796_v32 = vor.u32 %v7237_v24, %v5795_v23 }
  0x99   : > { %1136 = vmatpush.bf16.msra.mxu2 %v5688_v17  ;;  %v5797_v29 = vld [vmem:[#allocation13 + $0x1d0] sm:$0xf0]  ;;  %v7201_v31 = vld [vmem:[#allocation13 + $0xac] sm:$0xf0]  ;;  %1149 = vmatpush.bf16.msra.mxu3 %v5816_v21  ;;  %v5672_v33 = vor.u32 %v7203_v26, %v5669_v27  ;;  %v5779_v34 = vld [vmem:[#allocation13 + $0x1a0] sm:$0xf] }
  0x9a   : > { %v7233_v35 = vld [vmem:[#allocation13 + $0x1ac] sm:$0xf0]  ;;  %1111 = vmatpush.bf16.msra.mxu0 %v5668_v25  ;;  %v5800_v36 = vor.u32 %v7235_v28, %v5797_v29  ;;  %v5652_v37 = vor.u32 %v7201_v31, %v5651_v30  ;;  %v7199_v38 = vld [vmem:[#allocation13 + $0xa4] sm:$0xf]  ;;  %v5653_v39 = vld [vmem:[#allocation13 + $0xb0] sm:$0xf0] }
  0x9b   : > { %v7231_v40 = vld [vmem:[#allocation13 + $0x1a4] sm:$0xf]  ;;  %v5781_v41 = vld [vmem:[#allocation13 + $0x1b0] sm:$0xf0]  ;;  %v5635_v42 = vld [vmem:[#allocation13 + $0x80] sm:$0xf]  ;;  %v5780_v44 = vor.u32 %v7233_v35, %v5779_v34  ;;  %v5656_v45 = vor.u32 %v7199_v38, %v5653_v39 }
  0x9c   : > { %v7197_v43 = vld [vmem:[#allocation13 + $0x8c] sm:$0xf0]  ;;  %5567 = vmatmul.msk.f32.vlgmr.msrb.gmra.mxu2 %vm636_vm0, %v617_v4  ;;  %5568 = vmatmul.msk.f32.vlgmr.msrb.gmra.mxu3 %vm636_vm0, %v617_v4  ;;  %v5763_v46 = vld [vmem:[#allocation13 + $0x180] sm:$0xf]  ;;  %v5784_v48 = vor.u32 %v7231_v40, %v5781_v41  ;;  %v7195_v50 = vld [vmem:[#allocation13 + $0x84] sm:$0xf] }
  0x9d   : > { %1124 = vmatpush.bf16.msra.mxu1 %v5796_v32  ;;  %1137 = vmatpush.bf16.msra.mxu2 %v5672_v33  ;;  %v7229_v47 = vld [vmem:[#allocation13 + $0x18c] sm:$0xf0]  ;;  %v5636_v49 = vor.u32 %v7197_v43, %v5635_v42  ;;  %v5637_v51 = vld [vmem:[#allocation13 + $0x90] sm:$0xf0]  ;;  %v7227_v52 = vld [vmem:[#allocation13 + $0x184] sm:$0xf] }
  0x9e   : > { %1150 = vmatpush.bf16.msra.mxu3 %v5800_v36  ;;  %1112 = vmatpush.bf16.msra.mxu0 %v5652_v37  ;;  %v5765_v53 = vld [vmem:[#allocation13 + $0x190] sm:$0xf0]  ;;  %v5619_v54 = vld [vmem:[#allocation13 + $0x60] sm:$0xf]  ;;  %v7193_v55 = vld [vmem:[#allocation13 + $0x6c] sm:$0xf0]  ;;  %v5764_v56 = vor.u32 %v7229_v47, %v5763_v46  ;;  %v5640_v57 = vor.u32 %v7195_v50, %v5637_v51 }
  0x9f   : > { %v5747_v58 = vld [vmem:[#allocation13 + $0x160] sm:$0xf]  ;;  %v7225_v59 = vld [vmem:[#allocation13 + $0x16c] sm:$0xf0]  ;;  %v5768_v60 = vor.u32 %v7227_v52, %v5765_v53  ;;  %v5620_v61 = vor.u32 %v7193_v55, %v5619_v54  ;;  %v7191_v62 = vld [vmem:[#allocation13 + $0x64] sm:$0xf] }
  0xa0   : > { %v5621_v63 = vld [vmem:[#allocation13 + $0x70] sm:$0xf0]  ;;  %v7223_v0 = vld [vmem:[#allocation13 + $0x164] sm:$0xf]  ;;  %v5603_v2 = vld [vmem:[#allocation13 + $0x40] sm:$0xf]  ;;  %v5748_v4 = vor.u32 %v7225_v59, %v5747_v58 }
  0xa1   : > { %1125 = vmatpush.bf16.msra.mxu1 %v5780_v44  ;;  %1138 = vmatpush.bf16.msra.mxu2 %v5656_v45  ;;  %v5749_v1 = vld [vmem:[#allocation13 + $0x170] sm:$0xf0]  ;;  %v7189_v3 = vld [vmem:[#allocation13 + $0x4c] sm:$0xf0]  ;;  %v5624_v5 = vor.u32 %v7191_v62, %v5621_v63  ;;  %v5731_v6 = vld [vmem:[#allocation13 + $0x140] sm:$0xf] }
  0xa2   : > { %1151 = vmatpush.bf16.msra.mxu3 %v5784_v48  ;;  %1113 = vmatpush.bf16.msra.mxu0 %v5636_v49  ;;  %v7221_v7 = vld [vmem:[#allocation13 + $0x14c] sm:$0xf0]  ;;  %v5752_v8 = vor.u32 %v7223_v0, %v5749_v1  ;;  %v5604_v9 = vor.u32 %v7189_v3, %v5603_v2  ;;  %v7187_v10 = vld [vmem:[#allocation13 + $0x44] sm:$0xf]  ;;  %v5605_v11 = vld [vmem:[#allocation13 + $0x50] sm:$0xf0] }
  0xa3   : > { %v7219_v12 = vld [vmem:[#allocation13 + $0x144] sm:$0xf]  ;;  %v5733_v13 = vld [vmem:[#allocation13 + $0x150] sm:$0xf0]  ;;  %v5587_v14 = vld [vmem:[#allocation13 + $0x20] sm:$0xf]  ;;  %v5732_v16 = vor.u32 %v7221_v7, %v5731_v6  ;;  %v5608_v17 = vor.u32 %v7187_v10, %v5605_v11 }
  0xa4   : > { %v7185_v15 = vld [vmem:[#allocation13 + $0x2c] sm:$0xf0]  ;;  %v5715_v18 = vld [vmem:[#allocation13 + $0x120] sm:$0xf]  ;;  %v5736_v20 = vor.u32 %v7219_v12, %v5733_v13  ;;  %v7183_v22 = vld [vmem:[#allocation13 + $0x24] sm:$0xf] }
  0xa5   : > { %1126 = vmatpush.bf16.msra.mxu1 %v5764_v56  ;;  %1139 = vmatpush.bf16.msra.mxu2 %v5640_v57  ;;  %v7217_v19 = vld [vmem:[#allocation13 + $0x12c] sm:$0xf0]  ;;  %v5588_v21 = vor.u32 %v7185_v15, %v5587_v14  ;;  %v5589_v23 = vld [vmem:[#allocation13 + $0x30] sm:$0xf0]  ;;  %v7215_v24 = vld [vmem:[#allocation13 + $0x124] sm:$0xf] }
  0xa6   : > { %1152 = vmatpush.bf16.msra.mxu3 %v5768_v60  ;;  %1114 = vmatpush.bf16.msra.mxu0 %v5620_v61  ;;  %v5717_v25 = vld [vmem:[#allocation13 + $0x130] sm:$0xf0]  ;;  %v5571_v26 = vld [vmem:[#allocation13] sm:$0xf]  ;;  %v7181_v27 = vld [vmem:[#allocation13 + $0xc] sm:$0xf0]  ;;  %v5716_v30 = vor.u32 %v7217_v19, %v5715_v18  ;;  %v5592_v31 = vor.u32 %v7183_v22, %v5589_v23 }
  0xa7   : > { %v5691_v28 = vld [vmem:[#allocation13 + $0xe8] sm:$0xf]  ;;  %v7210_v29 = vld [vmem:[#allocation13 + $0xf4] sm:$0xf0]  ;;  %v5699_v32 = vld [vmem:[#allocation13 + $0x100] sm:$0xf]  ;;  %v5720_v35 = vor.u32 %v7215_v24, %v5717_v25  ;;  %v5572_v36 = vor.u32 %v7181_v27, %v5571_v26 }
  0xa8   : > { %v7213_v33 = vld [vmem:[#allocation13 + $0x10c] sm:$0xf0]  ;;  %v7179_v34 = vld [vmem:[#allocation13 + $0x4] sm:$0xf]  ;;  %v5573_v37 = vld [vmem:[#allocation13 + $0x10] sm:$0xf0]  ;;  %v5692_v40 = vor.u32 %v7210_v29, %v5691_v28 }
  0xa9   : > { %1127 = vmatpush.bf16.msra.mxu1 %v5748_v4  ;;  %1140 = vmatpush.bf16.msra.mxu2 %v5624_v5  ;;  %v7211_v38 = vld [vmem:[#allocation13 + $0x104] sm:$0xf]  ;;  %v5701_v39 = vld [vmem:[#allocation13 + $0x110] sm:$0xf0]  ;;  %v5819_v41 = vld [vmem:[#allocation13 + $0x1e8] sm:$0xf]  ;;  %v5700_v47 = vor.u32 %v7213_v33, %v5699_v32  ;;  %v5576_v48 = vor.u32 %v7179_v34, %v5573_v37 }
  0xaa   : > { %1153 = vmatpush.bf16.msra.mxu3 %v5752_v8  ;;  %1115 = vmatpush.bf16.msra.mxu0 %v5604_v9  ;;  %v7242_v42 = vld [vmem:[#allocation13 + $0x1f4] sm:$0xf0]  ;;  %v7208_v43 = vld [vmem:[#allocation13 + $0xec] sm:$0xf]  ;;  %v5693_v44 = vld [vmem:[#allocation13 + $0xf8] sm:$0xf0]  ;;  %v5704_v51 = vor.u32 %v7211_v38, %v5701_v39 }
  0xab   : > { %v7240_v45 = vld [vmem:[#allocation13 + $0x1ec] sm:$0xf]  ;;  %v5821_v46 = vld [vmem:[#allocation13 + $0x1f8] sm:$0xf0]  ;;  %v5675_v49 = vld [vmem:[#allocation13 + $0xc8] sm:$0xf]  ;;  %v5820_v52 = vor.u32 %v7242_v42, %v5819_v41  ;;  %v5696_v53 = vor.u32 %v7208_v43, %v5693_v44 }
  0xac   : > { %v7206_v50 = vld [vmem:[#allocation13 + $0xd4] sm:$0xf0]  ;;  %v5824_v54 = vor.u32 %v7240_v45, %v5821_v46  ;;  %v5803_v55 = vld [vmem:[#allocation13 + $0x1c8] sm:$0xf]  ;;  %v7204_v57 = vld [vmem:[#allocation13 + $0xcc] sm:$0xf] }
  0xad   : > { %1128 = vmatpush.bf16.msra.mxu1 %v5732_v16  ;;  %1141 = vmatpush.bf16.msra.mxu2 %v5608_v17  ;;  %v7238_v56 = vld [vmem:[#allocation13 + $0x1d4] sm:$0xf0]  ;;  %v5676_v58 = vor.u32 %v7206_v50, %v5675_v49  ;;  %v5677_v59 = vld [vmem:[#allocation13 + $0xd8] sm:$0xf0]  ;;  %v7236_v60 = vld [vmem:[#allocation13 + $0x1cc] sm:$0xf] }
  0xae   : > { %1154 = vmatpush.bf16.msra.mxu3 %v5736_v20  ;;  %1116 = vmatpush.bf16.msra.mxu0 %v5588_v21  ;;  %v5805_v61 = vld [vmem:[#allocation13 + $0x1d8] sm:$0xf0]  ;;  %v5659_v62 = vld [vmem:[#allocation13 + $0xa8] sm:$0xf]  ;;  %v7202_v63 = vld [vmem:[#allocation13 + $0xb4] sm:$0xf0]  ;;  %v5804_v0 = vor.u32 %v7238_v56, %v5803_v55  ;;  %v5680_v1 = vor.u32 %v7204_v57, %v5677_v59 }
  0xaf   : > { %v5808_v2 = vor.u32 %v7236_v60, %v5805_v61  ;;  %v5787_v3 = vld [vmem:[#allocation13 + $0x1a8] sm:$0xf]  ;;  %v7234_v4 = vld [vmem:[#allocation13 + $0x1b4] sm:$0xf0]  ;;  %v7200_v5 = vld [vmem:[#allocation13 + $0xac] sm:$0xf]  ;;  %v5660_v6 = vor.u32 %v7202_v63, %v5659_v62 }
  0xb0   : > { %v5661_v7 = vld [vmem:[#allocation13 + $0xb8] sm:$0xf0]  ;;  %v7232_v8 = vld [vmem:[#allocation13 + $0x1ac] sm:$0xf]  ;;  %v5643_v10 = vld [vmem:[#allocation13 + $0x88] sm:$0xf]  ;;  %v5788_v12 = vor.u32 %v7234_v4, %v5787_v3 }
  0xb1   : > { %1129 = vmatpush.bf16.msra.mxu1 %v5716_v30  ;;  %1142 = vmatpush.bf16.msra.mxu2 %v5592_v31  ;;  %v5789_v9 = vld [vmem:[#allocation13 + $0x1b8] sm:$0xf0]  ;;  %v7198_v11 = vld [vmem:[#allocation13 + $0x94] sm:$0xf0]  ;;  %v5664_v13 = vor.u32 %v7200_v5, %v5661_v7  ;;  %v5771_v15 = vld [vmem:[#allocation13 + $0x188] sm:$0xf] }
  0xb2   : > { %1155 = vmatpush.bf16.msra.mxu3 %v5720_v35  ;;  %1117 = vmatpush.bf16.msra.mxu0 %v5572_v36  ;;  %v5792_v14 = vor.u32 %v7232_v8, %v5789_v9  ;;  %v7230_v16 = vld [vmem:[#allocation13 + $0x194] sm:$0xf0]  ;;  %v7196_v17 = vld [vmem:[#allocation13 + $0x8c] sm:$0xf]  ;;  %v5644_v18 = vor.u32 %v7198_v11, %v5643_v10  ;;  %v5645_v19 = vld [vmem:[#allocation13 + $0x98] sm:$0xf0] }
  0xb3   : > { %v7228_v20 = vld [vmem:[#allocation13 + $0x18c] sm:$0xf]  ;;  %v5773_v21 = vld [vmem:[#allocation13 + $0x198] sm:$0xf0]  ;;  %v5627_v22 = vld [vmem:[#allocation13 + $0x68] sm:$0xf]  ;;  %v5772_v24 = vor.u32 %v7230_v16, %v5771_v15  ;;  %v5648_v25 = vor.u32 %v7196_v17, %v5645_v19 }
  0xb4   : > { %v7194_v23 = vld [vmem:[#allocation13 + $0x74] sm:$0xf0]  ;;  %v5776_v26 = vor.u32 %v7228_v20, %v5773_v21  ;;  %v5755_v27 = vld [vmem:[#allocation13 + $0x168] sm:$0xf]  ;;  %v7192_v29 = vld [vmem:[#allocation13 + $0x6c] sm:$0xf] }
  0xb5   : > { %1130 = vmatpush.bf16.msra.mxu1 %v5700_v47  ;;  %1143 = vmatpush.bf16.msra.mxu2 %v5576_v48  ;;  %v7226_v28 = vld [vmem:[#allocation13 + $0x174] sm:$0xf0]  ;;  %v5628_v30 = vor.u32 %v7194_v23, %v5627_v22  ;;  %v5629_v31 = vld [vmem:[#allocation13 + $0x78] sm:$0xf0]  ;;  %v7224_v32 = vld [vmem:[#allocation13 + $0x16c] sm:$0xf] }
  0xb6   : > { %1162 = vmatpush.bf16.msrb.mxu0 %v5692_v40  ;;  %1156 = vmatpush.bf16.msra.mxu3 %v5704_v51  ;;  %v5757_v33 = vld [vmem:[#allocation13 + $0x178] sm:$0xf0]  ;;  %v5611_v34 = vld [vmem:[#allocation13 + $0x48] sm:$0xf]  ;;  %v7190_v35 = vld [vmem:[#allocation13 + $0x54] sm:$0xf0]  ;;  %v5756_v36 = vor.u32 %v7226_v28, %v5755_v27  ;;  %v5632_v37 = vor.u32 %v7192_v29, %v5629_v31 }
  0xb7   : > { %v5760_v38 = vor.u32 %v7224_v32, %v5757_v33  ;;  %v5739_v39 = vld [vmem:[#allocation13 + $0x148] sm:$0xf]  ;;  %v7222_v40 = vld [vmem:[#allocation13 + $0x154] sm:$0xf0]  ;;  %v7188_v41 = vld [vmem:[#allocation13 + $0x4c] sm:$0xf]  ;;  %v5612_v42 = vor.u32 %v7190_v35, %v5611_v34 }
  0xb8   : > { %v5613_v43 = vld [vmem:[#allocation13 + $0x58] sm:$0xf0]  ;;  %v7220_v44 = vld [vmem:[#allocation13 + $0x14c] sm:$0xf]  ;;  %v5740_v46 = vor.u32 %v7222_v40, %v5739_v39  ;;  %v5595_v49 = vld [vmem:[#allocation13 + $0x28] sm:$0xf] }
  0xb9   : > { %1175 = vmatpush.bf16.msrb.mxu1 %v5820_v52  ;;  %1188 = vmatpush.bf16.msrb.mxu2 %v5696_v53  ;;  %v5741_v45 = vld [vmem:[#allocation13 + $0x158] sm:$0xf0]  ;;  %v5616_v47 = vor.u32 %v7188_v41, %v5613_v43  ;;  %v7186_v50 = vld [vmem:[#allocation13 + $0x34] sm:$0xf0]  ;;  %v5723_v52 = vld [vmem:[#allocation13 + $0x128] sm:$0xf] }
  0xba   : > { %1201 = vmatpush.bf16.msrb.mxu3 %v5824_v54  ;;  %1163 = vmatpush.bf16.msrb.mxu0 %v5676_v58  ;;  %v5744_v48 = vor.u32 %v7220_v44, %v5741_v45  ;;  %v5596_v51 = vor.u32 %v7186_v50, %v5595_v49  ;;  %v7218_v53 = vld [vmem:[#allocation13 + $0x134] sm:$0xf0]  ;;  %v7184_v54 = vld [vmem:[#allocation13 + $0x2c] sm:$0xf]  ;;  %v5597_v56 = vld [vmem:[#allocation13 + $0x38] sm:$0xf0] }
  0xbb   : > { %v5724_v55 = vor.u32 %v7218_v53, %v5723_v52  ;;  %v7216_v57 = vld [vmem:[#allocation13 + $0x12c] sm:$0xf]  ;;  %v5725_v58 = vld [vmem:[#allocation13 + $0x138] sm:$0xf0]  ;;  %v5600_v59 = vor.u32 %v7184_v54, %v5597_v56  ;;  %v5579_v61 = vld [vmem:[#allocation13 + $0x8] sm:$0xf] }
  0xbc   : > { %v5728_v60 = vor.u32 %v7216_v57, %v5725_v58  ;;  %v7182_v62 = vld [vmem:[#allocation13 + $0x14] sm:$0xf0]  ;;  %v5707_v63 = vld [vmem:[#allocation13 + $0x108] sm:$0xf]  ;;  %v5581_v3 = vld [vmem:[#allocation13 + $0x18] sm:$0xf0] }
  0xbd   : > { %1176 = vmatpush.bf16.msrb.mxu1 %v5804_v0  ;;  %1189 = vmatpush.bf16.msrb.mxu2 %v5680_v1  ;;  %v5580_v0 = vor.u32 %v7182_v62, %v5579_v61  ;;  %v7214_v1 = vld [vmem:[#allocation13 + $0x114] sm:$0xf0]  ;;  %v5709_v7 = vld [vmem:[#allocation13 + $0x118] sm:$0xf0]  ;;  %v5883_v16 = vld [vmem:[#allocation17 + $0xe0] sm:$0xf] }
  0xbe   : > { %1202 = vmatpush.bf16.msrb.mxu3 %v5808_v2  ;;  %1164 = vmatpush.bf16.msrb.mxu0 %v5660_v6  ;;  %v7180_v2 = vld [vmem:[#allocation13 + $0xc] sm:$0xf]  ;;  %v5708_v4 = vor.u32 %v7214_v1, %v5707_v63  ;;  %v8543_v9 = vld [vmem:[#allocation19] ss:$8 sm:$0xf]  ;;  %s8237_s1 = smov 112  }
  0xbf   : > { %v5584_v5 = vor.u32 %v7180_v2, %v5581_v3  ;;  %v7212_v6 = vld [vmem:[#allocation13 + $0x10c] sm:$0xf]  ;;  %v628_v10 = vperm.slane %v8543_v9, 0  ;;  %v629_v11 = vperm.slane %v8543_v9, 1  ;;  %v7258_v17 = vld [vmem:[#allocation17 + $0xec] sm:$0xf0] }
  0xc0   : > { %v5712_v8 = vor.u32 %v7212_v6, %v5709_v7  ;;  %v5885_v19 = vld [vmem:[#allocation17 + $0xf0] sm:$0xf0]  ;;  %v5947_v20 = vld [vmem:[#allocation17 + $0xe8] sm:$0xf]  ;;  %v7274_v21 = vld [vmem:[#allocation17 + $0xf4] sm:$0xf0]  ;;  %v5884_v28 = vor.u32 %v7258_v17, %v5883_v16 }
  0xc1   : > { %1177 = vmatpush.bf16.msrb.mxu1 %v5788_v12  ;;  %1190 = vmatpush.bf16.msrb.mxu2 %v5664_v13  ;;  %v7256_v31 = vld [vmem:[#allocation17 + $0xcc] sm:$0xf0]  ;;  %v5948_v32 = vor.u32 %v7274_v21, %v5947_v20  ;;  %v7255_v34 = vld [vmem:[#allocation17 + $0xc4] sm:$0xf]  ;;  %v5877_v35 = vld [vmem:[#allocation17 + $0xd0] sm:$0xf0] }
  0xc2   : > { %1203 = vmatpush.bf16.msrb.mxu3 %v5792_v14  ;;  %1165 = vmatpush.bf16.msrb.mxu0 %v5644_v18  ;;  %v7257_v18 = vld [vmem:[#allocation17 + $0xe4] sm:$0xf]  ;;  %v5941_v39 = vld [vmem:[#allocation17 + $0xd8] sm:$0xf0]  ;;  %v5880_v41 = vor.u32 %v7255_v34, %v5877_v35  ;;  %v7254_v43 = vld [vmem:[#allocation17 + $0xac] sm:$0xf0] }
  0xc3   : > { %v5888_v29 = vor.u32 %v7257_v18, %v5885_v19  ;;  %v7270_v49 = vld [vmem:[#allocation17 + $0xb4] sm:$0xf0]  ;;  %v7269_v50 = vld [vmem:[#allocation17 + $0xac] sm:$0xf]  ;;  %v5859_v54 = vld [vmem:[#allocation17 + $0x80] sm:$0xf] }
  0xc4   : > { %v7251_v58 = vld [vmem:[#allocation17 + $0x84] sm:$0xf]  ;;  %v7268_v61 = vld [vmem:[#allocation17 + $0x94] sm:$0xf0]  ;;  %v7267_v62 = vld [vmem:[#allocation17 + $0x8c] sm:$0xf] }
  0xc5   : > { %1178 = vmatpush.bf16.msrb.mxu1 %v5772_v24  ;;  %1191 = vmatpush.bf16.msrb.mxu2 %v5648_v25  ;;  %v7273_v24 = vld [vmem:[#allocation17 + $0xec] sm:$0xf]  ;;  %v5949_v25 = vld [vmem:[#allocation17 + $0xf8] sm:$0xf0]  ;;  %v5851_v2 = vld [vmem:[#allocation17 + $0x60] sm:$0xf] }
  0xc6   : > { %1204 = vmatpush.bf16.msrb.mxu3 %v5776_v26  ;;  %1166 = vmatpush.bf16.msrb.mxu0 %v5628_v30  ;;  %v5875_v30 = vld [vmem:[#allocation17 + $0xc0] sm:$0xf]  ;;  %v5952_v33 = vor.u32 %v7273_v24, %v5949_v25  ;;  %v5925_v63 = vld [vmem:[#allocation17 + $0x98] sm:$0xf0]  ;;  %v7250_v3 = vld [vmem:[#allocation17 + $0x6c] sm:$0xf0] }
  0xc7   : > { %v5876_v40 = vor.u32 %v7256_v31, %v5875_v30  ;;  %v7249_v6 = vld [vmem:[#allocation17 + $0x64] sm:$0xf]  ;;  %v5853_v7 = vld [vmem:[#allocation17 + $0x70] sm:$0xf0]  ;;  %v7248_v16 = vld [vmem:[#allocation17 + $0x4c] sm:$0xf0] }
  0xc8   : > { %v7247_v19 = vld [vmem:[#allocation17 + $0x44] sm:$0xf]  ;;  %v5845_v20 = vld [vmem:[#allocation17 + $0x50] sm:$0xf0]  ;;  %v5907_v21 = vld [vmem:[#allocation17 + $0x48] sm:$0xf] }
  0xc9   : > { %1179 = vmatpush.bf16.msrb.mxu1 %v5756_v36  ;;  %1192 = vmatpush.bf16.msrb.mxu2 %v5632_v37  ;;  %v5939_v36 = vld [vmem:[#allocation17 + $0xc8] sm:$0xf]  ;;  %v7272_v37 = vld [vmem:[#allocation17 + $0xd4] sm:$0xf0]  ;;  %v5909_v24 = vld [vmem:[#allocation17 + $0x58] sm:$0xf0] }
  0xca   : > { %1205 = vmatpush.bf16.msrb.mxu3 %v5760_v38  ;;  %1167 = vmatpush.bf16.msrb.mxu0 %v5612_v42  ;;  %v7271_v38 = vld [vmem:[#allocation17 + $0xcc] sm:$0xf]  ;;  %v5867_v42 = vld [vmem:[#allocation17 + $0xa0] sm:$0xf]  ;;  %v5940_v44 = vor.u32 %v7272_v37, %v5939_v36  ;;  %v7246_v30 = vld [vmem:[#allocation17 + $0x2c] sm:$0xf0] }
  0xcb   : > { %v5944_v45 = vor.u32 %v7271_v38, %v5941_v39  ;;  %v5868_v52 = vor.u32 %v7254_v43, %v5867_v42  ;;  %v5835_v25 = vld [vmem:[#allocation17 + $0x20] sm:$0xf]  ;;  %v7245_v31 = vld [vmem:[#allocation17 + $0x24] sm:$0xf]  ;;  %v5837_v35 = vld [vmem:[#allocation17 + $0x30] sm:$0xf0] }
  0xcc   : > { %v5899_v36 = vld [vmem:[#allocation17 + $0x28] sm:$0xf]  ;;  %v7262_v38 = vld [vmem:[#allocation17 + $0x34] sm:$0xf0]  ;;  %v5901_v39 = vld [vmem:[#allocation17 + $0x38] sm:$0xf0]  ;;  %v5836_v43 = vor.u32 %v7246_v30, %v5835_v25 }
  0xcd   : > { %1180 = vmatpush.bf16.msrb.mxu1 %v5740_v46  ;;  %1193 = vmatpush.bf16.msrb.mxu2 %v5616_v47  ;;  %v7253_v46 = vld [vmem:[#allocation17 + $0xa4] sm:$0xf]  ;;  %v5869_v47 = vld [vmem:[#allocation17 + $0xb0] sm:$0xf0]  ;;  %v7244_v42 = vld [vmem:[#allocation17 + $0xc] sm:$0xf0] }
  0xce   : > { %1206 = vmatpush.bf16.msrb.mxu3 %v5744_v48  ;;  %1168 = vmatpush.bf16.msrb.mxu0 %v5596_v51  ;;  %v5931_v48 = vld [vmem:[#allocation17 + $0xa8] sm:$0xf]  ;;  %v5933_v51 = vld [vmem:[#allocation17 + $0xb8] sm:$0xf0]  ;;  %v5872_v53 = vor.u32 %v7253_v46, %v5869_v47  ;;  %v7243_v46 = vld [vmem:[#allocation17 + $0x4] sm:$0xf] }
  0xcf   : > { %v5932_v56 = vor.u32 %v7270_v49, %v5931_v48  ;;  %v5936_v57 = vor.u32 %v7269_v50, %v5933_v51  ;;  %v5829_v47 = vld [vmem:[#allocation17 + $0x10] sm:$0xf0]  ;;  %v5891_v48 = vld [vmem:[#allocation17 + $0x8] sm:$0xf]  ;;  %v5900_v49 = vor.u32 %v7262_v38, %v5899_v36  ;;  %v6163_v25 = vld [vmem:[#allocation10 + $0x1a0] sm:$0xf] }
  0xd0   : > { %v7361_v30 = vld [vmem:[#allocation10 + $0x2ac] sm:$0xf0]  ;;  %v6147_v38 = vld [vmem:[#allocation10 + $0x180] sm:$0xf]  ;;  %s8238_s17 = smov 96   ;;  %s8239_s7 = smov 48  }
  0xd1   : > { %1181 = vmatpush.bf16.msrb.mxu1 %v5724_v55  ;;  %1194 = vmatpush.bf16.msrb.mxu2 %v5600_v59  ;;  %v7252_v55 = vld [vmem:[#allocation17 + $0x8c] sm:$0xf0]  ;;  %v5861_v59 = vld [vmem:[#allocation17 + $0x90] sm:$0xf0]  ;;  %s7172_s9 = sshll.u32 %s8324_s24, 3  ;;  %s614_s24 = scalar_lea.vmem [#allocation20], %s5555_s5 }
  0xd2   : > { %1207 = vmatpush.bf16.msrb.mxu3 %v5728_v60  ;;  %1169 = vmatpush.bf16.msrb.mxu0 %v5580_v0  ;;  %v5923_v60 = vld [vmem:[#allocation17 + $0x88] sm:$0xf]  ;;  %v5860_v0 = vor.u32 %v7252_v55, %v5859_v54  ;;  %v5864_v1 = vor.u32 %v7251_v58, %v5861_v59  ;;  %v6067_v54 = vld [vmem:[#allocation10 + $0xe0] sm:$0xf]  ;;  %v7305_v55 = vld [vmem:[#allocation10 + $0xec] sm:$0xf0]  ;;  %s5337_s29 = scalar_lea.hbm %s9751_s11, %s7172_s9 }
  0xd3   : > { %v6323_v58 = vld [vmem:[#allocation10 + $0x2e0] sm:$0xf]  ;;  %v7369_v59 = vld [vmem:[#allocation10 + $0x2ec] sm:$0xf0]  ;;  %s5339_s4 = sshll.u32 %s614_s24, 4  ;;  %s5341_s6 = sshll.u32 %s5337_s29, 4  ;;  %s5340_s4 = int_to_ptr.vmem [resolvable:$true] %s5339_s4  ;;  %s5342_s6 = int_to_ptr.hbm [resolvable:$true] %s5341_s6 }
  0xd4   : > { %v7293_v36 = vld [vmem:[#allocation10 + $0x8c] sm:$0xf0]  ;;  %s5327_s27 = scalar_lea.sflag [#allocation4], %s8500_s8  ;;  %s8138_s26 = sshra.s32 %s5342_s6, 4  ;;  %s8139_s26 = int_to_ptr.hbm [resolvable:$true] %s8138_s26 }
  0xd5   : > { %1182 = vmatpush.bf16.msrb.mxu1 %v5708_v4  ;;  %1195 = vmatpush.bf16.msrb.mxu2 %v5584_v5  ;;  %v5924_v4 = vor.u32 %v7268_v61, %v5923_v60  ;;  %v5928_v5 = vor.u32 %v7267_v62, %v5925_v63  ;;  %v5832_v62 = vor.u32 %v7243_v46, %v5829_v47  ;;  %v6451_v63 = vld [vmem:[#allocation10 + $0x3e0] sm:$0xf]  ;;  %v7289_v46 = vld [vmem:[#allocation10 + $0x6c] sm:$0xf0]  ;;  %s8140_s19 = scalar_lea.hbm %s8139_s26, 8  ;;  %p8145_p13 = scmp.lt.s32.totalorder %s8139_s26, %s9751_s11 }
  0xd6   : > { %1208 = vmatpush.bf16.msrb.mxu3 %v5712_v8  ;;  %v5915_v8 = vld [vmem:[#allocation17 + $0x68] sm:$0xf]  ;;  %p8141_p8 = scmp.ne.s32.totalorder %s8139_s26, %s8140_s19 }
  0xd8   : > { %p8142_p10 = pnand %p8141_p8, %p8391_p5 }
  0xda   : > { %p8143_p11 = pneg %p8142_p10 }
 0x117   : > { %v657_v12 = vpop.f32.mrf.mxu2  ;;  %v677_v13 = vpop.f32.mrf.mxu3 }
 0x118   : > { %v658_v14 = vadd.f32 %v657_v12, %v628_v10  ;;  %v678_v15 = vadd.f32 %v677_v13, %v629_v11  ;;  %v7266_v10 = vld [vmem:[#allocation17 + $0x74] sm:$0xf0]  ;;  %v7265_v11 = vld [vmem:[#allocation17 + $0x6c] sm:$0xf]  ;;  %v5917_v12 = vld [vmem:[#allocation17 + $0x78] sm:$0xf0]  ;;  %v5852_v13 = vor.u32 %v7250_v3, %v5851_v2 }
 0x119   : > { %v5916_v17 = vor.u32 %v7266_v10, %v5915_v8  ;;  %v5920_v18 = vor.u32 %v7265_v11, %v5917_v12  ;;  %v6324_v8 = vor.u32 %v7369_v59, %v6323_v58  ;;  %v6179_v11 = vld [vmem:[#allocation10 + $0x1c0] sm:$0xf]  ;;  %v7333_v12 = vld [vmem:[#allocation10 + $0x1cc] sm:$0xf0] }
 0x11a   : > { %v720_v22 = vmax.f32 %v658_v14, 0.0  ;;  %v721_v23 = vmax.f32 %v678_v15, 0.0  ;;  %v5856_v14 = vor.u32 %v7249_v6, %v5853_v7  ;;  %v5843_v15 = vld [vmem:[#allocation17 + $0x40] sm:$0xf]  ;;  %v7301_v7 = vld [vmem:[#allocation10 + $0xcc] sm:$0xf0] }
 0x11b   : > { %v6051_v6 = vld [vmem:[#allocation10 + $0xc0] sm:$0xf] }
 0x11c   : > { %v8547_v26 = vpack.c.bf16 %v720_v22, %v720_v22  ;;  %v8549_v27 = vpack.c.bf16 %v721_v23, %v721_v23  ;;  %v7264_v22 = vld [vmem:[#allocation17 + $0x54] sm:$0xf0]  ;;  %v7263_v23 = vld [vmem:[#allocation17 + $0x4c] sm:$0xf] }
 0x11d   : > { %v5912_v34 = vor.u32 %v7263_v23, %v5909_v24 }
 0x11e   : > { %1118 = vmatmul.bf16.vlgmr.msra.gmra.mxu0 %v8547_v26  ;;  %1131 = vmatmul.bf16.vlgmr.msra.gmra.mxu1 %v8549_v27 }
 0x11f   : > { %1144 = vmatmul.bf16.vlgmr.msra.gmra.mxu2 %v8547_v26  ;;  %1157 = vmatmul.bf16.vlgmr.msra.gmra.mxu3 %v8549_v27  ;;  %v697_v37 = vpop.f32.mrf.mxu2 }
 0x120   : > { %2001 = vmatpush.bf16.msra.mxu0 %v5884_v28  ;;  %2014 = vmatpush.bf16.msra.mxu1 %v5888_v29  ;;  %v5844_v28 = vor.u32 %v7248_v16, %v5843_v15  ;;  %v5848_v29 = vor.u32 %v7247_v19, %v5845_v20  ;;  %v7365_v15 = vld [vmem:[#allocation10 + $0x2cc] sm:$0xf0]  ;;  %v6435_v16 = vld [vmem:[#allocation10 + $0x3c0] sm:$0xf]  ;;  %v6052_v19 = vor.u32 %v7301_v7, %v6051_v6 }
 0x121   : > { %2149 = vmatpush.bf16.msra.mxu2 %v5948_v32  ;;  %2162 = vmatpush.bf16.msra.mxu3 %v5952_v33  ;;  %v630_v32 = vperm.slane %v8543_v9, 2  ;;  %v5908_v33 = vor.u32 %v7264_v22, %v5907_v21  ;;  %v6180_v20 = vor.u32 %v7333_v12, %v6179_v11  ;;  %v6035_v21 = vld [vmem:[#allocation10 + $0xa0] sm:$0xf]  ;;  %v7297_v22 = vld [vmem:[#allocation10 + $0xac] sm:$0xf0] }
 0x122   : > { %v6227_v11 = vld [vmem:[#allocation10 + $0x220] sm:$0xf]  ;;  %v7345_v12 = vld [vmem:[#allocation10 + $0x22c] sm:$0xf0] }
 0x124   : > { %2002 = vmatpush.bf16.msra.mxu0 %v5876_v40  ;;  %2015 = vmatpush.bf16.msra.mxu1 %v5880_v41  ;;  %v717_v40 = vpop.f32.mrf.mxu3  ;;  %v5827_v41 = vld [vmem:[#allocation17] sm:$0xf] }
 0x125   : > { %2150 = vmatpush.bf16.msra.mxu2 %v5940_v44  ;;  %2163 = vmatpush.bf16.msra.mxu3 %v5944_v45  ;;  %v5840_v44 = vor.u32 %v7245_v31, %v5837_v35  ;;  %v698_v45 = vadd.f32 %v697_v37, %v630_v32  ;;  %v5828_v61 = vor.u32 %v7244_v42, %v5827_v41  ;;  %v6419_v31 = vld [vmem:[#allocation10 + $0x3a0] sm:$0xf]  ;;  %v7393_v32 = vld [vmem:[#allocation10 + $0x3ac] sm:$0xf0] }
 0x126   : > { %v6019_v35 = vld [vmem:[#allocation10 + $0x80] sm:$0xf]  ;;  %v7389_v42 = vld [vmem:[#allocation10 + $0x38c] sm:$0xf0] }
 0x127   : > { %v722_v60 = vmax.f32 %v698_v45, 0.0  ;;  %v6403_v41 = vld [vmem:[#allocation10 + $0x380] sm:$0xf] }
 0x128   : > { %2003 = vmatpush.bf16.msra.mxu0 %v5868_v52  ;;  %2016 = vmatpush.bf16.msra.mxu1 %v5872_v53  ;;  %v7259_v52 = vld [vmem:[#allocation17 + $0xc] sm:$0xf]  ;;  %v5893_v53 = vld [vmem:[#allocation17 + $0x18] sm:$0xf0]  ;;  %v6003_v45 = vld [vmem:[#allocation10 + $0x60] sm:$0xf] }
 0x129   : > { %2151 = vmatpush.bf16.msra.mxu2 %v5932_v56  ;;  %2164 = vmatpush.bf16.msra.mxu3 %v5936_v57  ;;  %v6195_v56 = vld [vmem:[#allocation10 + $0x1e0] sm:$0xf]  ;;  %v7337_v57 = vld [vmem:[#allocation10 + $0x1ec] sm:$0xf0]  ;;  %v5896_v3 = vor.u32 %v7259_v52, %v5893_v53 }
 0x12a   : > { %v6387_v52 = vld [vmem:[#allocation10 + $0x360] sm:$0xf]  ;;  %v7385_v53 = vld [vmem:[#allocation10 + $0x36c] sm:$0xf0] }
 0x12b   : > { %v6388_v59 = vor.u32 %v7385_v53, %v6387_v52  ;;  %v7299_v52 = vld [vmem:[#allocation10 + $0xc4] sm:$0xf]  ;;  %v6053_v53 = vld [vmem:[#allocation10 + $0xd0] sm:$0xf0] }
 0x12c   : > { %2004 = vmatpush.bf16.msra.mxu0 %v5860_v0  ;;  %2017 = vmatpush.bf16.msra.mxu1 %v5864_v1  ;;  %v7401_v0 = vld [vmem:[#allocation10 + $0x3ec] sm:$0xf0] }
 0x12d   : > { %2152 = vmatpush.bf16.msra.mxu2 %v5924_v4  ;;  %2165 = vmatpush.bf16.msra.mxu3 %v5928_v5  ;;  %v6068_v4 = vor.u32 %v7305_v55, %v6067_v54  ;;  %v6196_v5 = vor.u32 %v7337_v57, %v6195_v56  ;;  %v6452_v10 = vor.u32 %v7401_v0, %v6451_v63  ;;  %v5987_v56 = vld [vmem:[#allocation10 + $0x40] sm:$0xf]  ;;  %v7285_v57 = vld [vmem:[#allocation10 + $0x4c] sm:$0xf0] }
 0x12e   : > { %1170 = vmatmul.bf16.vlgmr.msrb.gmra.mxu0 %v8547_v26  ;;  %1183 = vmatmul.bf16.vlgmr.msrb.gmra.mxu1 %v8549_v27  ;;  %v6004_v54 = vor.u32 %v7289_v46, %v6003_v45  ;;  %v7349_v63 = vld [vmem:[#allocation10 + $0x24c] sm:$0xf0]  ;;  %v6371_v0 = vld [vmem:[#allocation10 + $0x340] sm:$0xf] }
 0x12f   : > { %1196 = vmatmul.bf16.vlgmr.msrb.gmra.mxu2 %v8547_v26  ;;  %1209 = vmatmul.bf16.vlgmr.msrb.gmra.mxu3 %v8549_v27  ;;  %v631_v26 = vperm.slane %v8543_v9, 3  ;;  %v7261_v27 = vld [vmem:[#allocation17 + $0x2c] sm:$0xf]  ;;  %v7260_v9 = vld [vmem:[#allocation17 + $0x14] sm:$0xf0] }
 0x130   : > { %2005 = vmatpush.bf16.msra.mxu0 %v5852_v13  ;;  %2018 = vmatpush.bf16.msra.mxu1 %v5856_v14  ;;  %v5904_v50 = vor.u32 %v7261_v27, %v5901_v39  ;;  %v5892_v2 = vor.u32 %v7260_v9, %v5891_v48  ;;  %v6307_v13 = vld [vmem:[#allocation10 + $0x2c0] sm:$0xf]  ;;  %v1897_v14 = vpack.c.bf16 %v722_v60, %v722_v60  ;;  %v7325_v27 = vld [vmem:[#allocation10 + $0x18c] sm:$0xf0] }
 0x131   : > { %2153 = vmatpush.bf16.msra.mxu2 %v5916_v17  ;;  %2166 = vmatpush.bf16.msra.mxu3 %v5920_v18  ;;  %v718_v51 = vadd.f32 %v717_v40, %v631_v26  ;;  %v7397_v17 = vld [vmem:[#allocation10 + $0x3cc] sm:$0xf0]  ;;  %v6308_v23 = vor.u32 %v7365_v15, %v6307_v13  ;;  %v6420_v26 = vor.u32 %v7393_v32, %v6419_v31  ;;  %v6275_v39 = vld [vmem:[#allocation10 + $0x280] sm:$0xf] }
 0x132   : > { %v6436_v24 = vor.u32 %v7397_v17, %v6435_v16  ;;  %v7357_v40 = vld [vmem:[#allocation10 + $0x28c] sm:$0xf0]  ;;  %v6404_v48 = vor.u32 %v7389_v42, %v6403_v41  ;;  %v6115_v60 = vld [vmem:[#allocation10 + $0x140] sm:$0xf] }
 0x133   : > { %v723_v1 = vmax.f32 %v718_v51, 0.0  ;;  %v6276_v47 = vor.u32 %v7357_v40, %v6275_v39  ;;  %v6259_v51 = vld [vmem:[#allocation10 + $0x260] sm:$0xf]  ;;  %v7353_v9 = vld [vmem:[#allocation10 + $0x26c] sm:$0xf0] }
 0x134   : > { %2006 = vmatpush.bf16.msra.mxu0 %v5844_v28  ;;  %2019 = vmatpush.bf16.msra.mxu1 %v5848_v29  ;;  %v7329_v28 = vld [vmem:[#allocation10 + $0x1ac] sm:$0xf0]  ;;  %v6291_v29 = vld [vmem:[#allocation10 + $0x2a0] sm:$0xf]  ;;  %v6260_v58 = vor.u32 %v7353_v9, %v6259_v51 }
 0x135   : > { %2154 = vmatpush.bf16.msra.mxu2 %v5908_v33  ;;  %2167 = vmatpush.bf16.msra.mxu3 %v5912_v34  ;;  %v2045_v18 = vpack.c.bf16 %v723_v1, %v723_v1  ;;  %v6036_v33 = vor.u32 %v7297_v22, %v6035_v21  ;;  %v6164_v34 = vor.u32 %v7329_v28, %v6163_v25  ;;  %v7381_v1 = vld [vmem:[#allocation10 + $0x34c] sm:$0xf0]  ;;  %v6355_v13 = vld [vmem:[#allocation10 + $0x320] sm:$0xf] }
 0x136   : > { %v6292_v37 = vor.u32 %v7361_v30, %v6291_v29  ;;  %v6372_v7 = vor.u32 %v7381_v1, %v6371_v0  ;;  %v5955_v15 = vld [vmem:[#allocation10] sm:$0xf]  ;;  %v7277_v16 = vld [vmem:[#allocation10 + $0xc] sm:$0xf0]  ;;  %v2195_v29 = vld [vmem:[#allocation8] sm:$0xff]  ;;  %v6056_v0 = vor.u32 %v7299_v52, %v6053_v53 }
 0x137   : > { %v6083_v17 = vld [vmem:[#allocation10 + $0x100] sm:$0xf]  ;;  %v7341_v22 = vld [vmem:[#allocation10 + $0x20c] sm:$0xf0]  ;;  %v2404_v40 = vunpack.c.l.b16 %v2195_v29  ;;  %v7279_v52 = vld [vmem:[#allocation10 + $0x24] sm:$0xf] }
 0x138   : > { %2007 = vmatpush.bf16.msra.mxu0 %v5836_v43  ;;  %2020 = vmatpush.bf16.msra.mxu1 %v5840_v44  ;;  %v6020_v43 = vor.u32 %v7293_v36, %v6019_v35  ;;  %v6148_v44 = vor.u32 %v7325_v27, %v6147_v38  ;;  %v6211_v21 = vld [vmem:[#allocation10 + $0x200] sm:$0xf]  ;;  %v2196_v28 = vld [vmem:[#allocation8 + $0x8] sm:$0xff]  ;;  %v7303_v35 = vld [vmem:[#allocation10 + $0xe4] sm:$0xf]  ;;  %v5956_v36 = vor.u32 %v7277_v16, %v5955_v15 }
 0x139   : > { %2155 = vmatpush.bf16.msra.mxu2 %v5900_v49  ;;  %2168 = vmatpush.bf16.msra.mxu3 %v5904_v50  ;;  %v6131_v49 = vld [vmem:[#allocation10 + $0x160] sm:$0xf]  ;;  %v7321_v50 = vld [vmem:[#allocation10 + $0x16c] sm:$0xf0]  ;;  %v7335_v38 = vld [vmem:[#allocation10 + $0x1e4] sm:$0xf]  ;;  %v2406_v39 = vunpack.c.l.b16 %v2196_v28  ;;  %v6212_v41 = vor.u32 %v7341_v22, %v6211_v21 }
 0x13a   : > { %v6132_v55 = vor.u32 %v7321_v50, %v6131_v49  ;;  %v6339_v25 = vld [vmem:[#allocation10 + $0x300] sm:$0xf]  ;;  %v7373_v30 = vld [vmem:[#allocation10 + $0x30c] sm:$0xf0]  ;;  %v6197_v27 = vld [vmem:[#allocation10 + $0x1f0] sm:$0xf0] }
 0x13b   : > { %v6579_v31 = vld [vmem:[#allocation10 + $0x4e0] sm:$0xf]  ;;  %v7433_v32 = vld [vmem:[#allocation10 + $0x4ec] sm:$0xf0]  ;;  %v6340_v42 = vor.u32 %v7373_v30, %v6339_v25  ;;  %v6200_v50 = vor.u32 %v7335_v38, %v6197_v27  ;;  %v5973_v53 = vld [vmem:[#allocation10 + $0x30] sm:$0xf0] }
 0x13c   : > { %2008 = vmatpush.bf16.msra.mxu0 %v5828_v61  ;;  %2021 = vmatpush.bf16.msra.mxu1 %v5832_v62  ;;  %v7317_v61 = vld [vmem:[#allocation10 + $0x14c] sm:$0xf0]  ;;  %v6243_v62 = vld [vmem:[#allocation10 + $0x240] sm:$0xf]  ;;  %v6580_v45 = vor.u32 %v7433_v32, %v6579_v31  ;;  %v7287_v31 = vld [vmem:[#allocation10 + $0x64] sm:$0xf] }
 0x13d   : > { %2156 = vmatpush.bf16.msra.mxu2 %v5892_v2  ;;  %2169 = vmatpush.bf16.msra.mxu3 %v5896_v3  ;;  %v5988_v2 = vor.u32 %v7285_v57, %v5987_v56  ;;  %v6116_v3 = vor.u32 %v7317_v61, %v6115_v60  ;;  %v6244_v6 = vor.u32 %v7349_v63, %v6243_v62  ;;  %v6691_v51 = vld [vmem:[#allocation10 + $0x5c0] sm:$0xf]  ;;  %v7461_v9 = vld [vmem:[#allocation10 + $0x5cc] sm:$0xf0]  ;;  %v6005_v32 = vld [vmem:[#allocation10 + $0x70] sm:$0xf0] }
 0x13e   : > { %v8561_v56 = vpack.c.b16 %v2406_v39, %v2406_v39  ;;  %v8563_v57 = vpack.c.b16 %v2404_v40, %v2404_v40  ;;  %v6692_v61 = vor.u32 %v7461_v9, %v6691_v51  ;;  %v6547_v62 = vld [vmem:[#allocation10 + $0x4a0] sm:$0xf]  ;;  %v7425_v63 = vld [vmem:[#allocation10 + $0x4ac] sm:$0xf0]  ;;  %v6008_v38 = vor.u32 %v7287_v31, %v6005_v32  ;;  %v7395_v32 = vld [vmem:[#allocation10 + $0x3c4] sm:$0xf] }
 0x13f   : > { %2009 = vmatmul.bf16.vlgmr.msra.gmra.mxu0 %v1897_v14  ;;  %2022 = vmatmul.bf16.vlgmr.msra.gmra.mxu1 %v1897_v14  ;;  %v7377_v14 = vld [vmem:[#allocation10 + $0x32c] sm:$0xf0]  ;;  %v6659_v15 = vld [vmem:[#allocation10 + $0x580] sm:$0xf] }
 0x140   : > { %3382 = vmatpush.bf16.msrb.mxu0 %v6068_v4  ;;  %3395 = vmatpush.bf16.msrb.mxu1 %v6196_v5  ;;  %v5971_v4 = vld [vmem:[#allocation10 + $0x20] sm:$0xf]  ;;  %v7281_v5 = vld [vmem:[#allocation10 + $0x2c] sm:$0xf0] }
 0x141   : > { %3408 = vmatpush.bf16.msrb.mxu2 %v6324_v8  ;;  %3421 = vmatpush.bf16.msrb.mxu3 %v6452_v10  ;;  %v6099_v8 = vld [vmem:[#allocation10 + $0x120] sm:$0xf]  ;;  %v7313_v10 = vld [vmem:[#allocation10 + $0x12c] sm:$0xf0] }
 0x142   : > { %2157 = vmatmul.bf16.vlgmr.msra.gmra.mxu2 %v2045_v18  ;;  %2170 = vmatmul.bf16.vlgmr.msra.gmra.mxu3 %v2045_v18  ;;  %v5972_v18 = vor.u32 %v7281_v5, %v5971_v4  ;;  %v7295_v4 = vld [vmem:[#allocation10 + $0xa4] sm:$0xf]  ;;  %v6037_v5 = vld [vmem:[#allocation10 + $0xb0] sm:$0xf0]  ;;  %v7453_v16 = vld [vmem:[#allocation10 + $0x58c] sm:$0xf0] }
 0x143   : > { %v6660_v22 = vor.u32 %v7453_v16, %v6659_v15  ;;  %v7449_v30 = vld [vmem:[#allocation10 + $0x56c] sm:$0xf0]  ;;  %v6627_v39 = vld [vmem:[#allocation10 + $0x540] sm:$0xf] }
 0x144   : > { %3383 = vmatpush.bf16.msrb.mxu0 %v6052_v19  ;;  %3396 = vmatpush.bf16.msrb.mxu1 %v6180_v20  ;;  %v6100_v19 = vor.u32 %v7313_v10, %v6099_v8  ;;  %v7309_v20 = vld [vmem:[#allocation10 + $0x10c] sm:$0xf0]  ;;  %v6548_v8 = vor.u32 %v7425_v63, %v6547_v62  ;;  %v6611_v51 = vld [vmem:[#allocation10 + $0x520] sm:$0xf] }
 0x145   : > { %3409 = vmatpush.bf16.msrb.mxu2 %v6308_v23  ;;  %3422 = vmatpush.bf16.msrb.mxu3 %v6436_v24  ;;  %v6228_v23 = vor.u32 %v7345_v12, %v6227_v11  ;;  %v6356_v24 = vor.u32 %v7377_v14, %v6355_v13  ;;  %v6531_v11 = vld [vmem:[#allocation10 + $0x480] sm:$0xf]  ;;  %v7421_v12 = vld [vmem:[#allocation10 + $0x48c] sm:$0xf0]  ;;  %v6040_v13 = vor.u32 %v7295_v4, %v6037_v5  ;;  %v5957_v5 = vld [vmem:[#allocation10 + $0x10] sm:$0xf0] }
 0x146   : > { %v6532_v21 = vor.u32 %v7421_v12, %v6531_v11  ;;  %v7445_v40 = vld [vmem:[#allocation10 + $0x54c] sm:$0xf0]  ;;  %v6325_v11 = vld [vmem:[#allocation10 + $0x2f0] sm:$0xf0]  ;;  %v7399_v12 = vld [vmem:[#allocation10 + $0x3e4] sm:$0xf] }
 0x147   : > { %v7441_v9 = vld [vmem:[#allocation10 + $0x52c] sm:$0xf0] }
 0x148   : > { %3384 = vmatpush.bf16.msrb.mxu0 %v6036_v33  ;;  %3397 = vmatpush.bf16.msrb.mxu1 %v6164_v34  ;;  %v6707_v33 = vld [vmem:[#allocation10 + $0x5e0] sm:$0xf]  ;;  %v7465_v34 = vld [vmem:[#allocation10 + $0x5ec] sm:$0xf0]  ;;  %v6612_v63 = vor.u32 %v7441_v9, %v6611_v51  ;;  %v7355_v9 = vld [vmem:[#allocation10 + $0x284] sm:$0xf] }
 0x149   : > { %3410 = vmatpush.bf16.msrb.mxu2 %v6292_v37  ;;  %3423 = vmatpush.bf16.msrb.mxu3 %v6420_v26  ;;  %v6084_v37 = vor.u32 %v7309_v20, %v6083_v17  ;;  %v6069_v26 = vld [vmem:[#allocation10 + $0xf0] sm:$0xf0]  ;;  %v6708_v46 = vor.u32 %v7465_v34, %v6707_v33  ;;  %v7291_v17 = vld [vmem:[#allocation10 + $0x84] sm:$0xf] }
 0x14a   : > { %v6072_v49 = vor.u32 %v7303_v35, %v6069_v26  ;;  %v6149_v20 = vld [vmem:[#allocation10 + $0x190] sm:$0xf0]  ;;  %v7319_v33 = vld [vmem:[#allocation10 + $0x164] sm:$0xf]  ;;  %v7413_v26 = vld [vmem:[#allocation10 + $0x44c] sm:$0xf0] }
 0x14b   : > { %v6133_v34 = vld [vmem:[#allocation10 + $0x170] sm:$0xf0] }
 0x14c   : > { %3385 = vmatpush.bf16.msrb.mxu0 %v6020_v43  ;;  %3398 = vmatpush.bf16.msrb.mxu1 %v6148_v44  ;;  %v2407_v43 = vunpack.c.h.b16 %v2196_v28  ;;  %v2405_v44 = vunpack.c.h.b16 %v2195_v29  ;;  %v6643_v29 = vld [vmem:[#allocation10 + $0x560] sm:$0xf]  ;;  %v6136_v27 = vor.u32 %v7319_v33, %v6133_v34  ;;  %v6437_v33 = vld [vmem:[#allocation10 + $0x3d0] sm:$0xf0]  ;;  %v7427_v34 = vld [vmem:[#allocation10 + $0x4c4] sm:$0xf] }
 0x14d   : > { %3411 = vmatpush.bf16.msrb.mxu2 %v6276_v47  ;;  %3424 = vmatpush.bf16.msrb.mxu3 %v6404_v48  ;;  %v6563_v47 = vld [vmem:[#allocation10 + $0x4c0] sm:$0xf]  ;;  %v7429_v48 = vld [vmem:[#allocation10 + $0x4cc] sm:$0xf0] }
 0x14e   : > { %v6564_v60 = vor.u32 %v7429_v48, %v6563_v47  ;;  %v6483_v47 = vld [vmem:[#allocation10 + $0x420] sm:$0xf]  ;;  %v7409_v48 = vld [vmem:[#allocation10 + $0x42c] sm:$0xf0] }
 0x14f   : > { %v6484_v62 = vor.u32 %v7409_v48, %v6483_v47  ;;  %v6549_v47 = vld [vmem:[#allocation10 + $0x4b0] sm:$0xf0]  ;;  %v7455_v48 = vld [vmem:[#allocation10 + $0x5a4] sm:$0xf] }
 0x150   : > { %3386 = vmatpush.bf16.msrb.mxu0 %v6004_v54  ;;  %3399 = vmatpush.bf16.msrb.mxu1 %v6132_v55  ;;  %v7331_v54 = vld [vmem:[#allocation10 + $0x1c4] sm:$0xf]  ;;  %v6181_v55 = vld [vmem:[#allocation10 + $0x1d0] sm:$0xf0] }
 0x151   : > { %3412 = vmatpush.bf16.msrb.mxu2 %v6260_v58  ;;  %3425 = vmatpush.bf16.msrb.mxu3 %v6388_v59  ;;  %v8565_v58 = vpack.c.b16 %v2407_v43, %v2407_v43  ;;  %v8567_v59 = vpack.c.b16 %v2405_v44, %v2405_v44  ;;  %v6184_v1 = vor.u32 %v7331_v54, %v6181_v55  ;;  %v7315_v43 = vld [vmem:[#allocation10 + $0x144] sm:$0xf]  ;;  %v6117_v44 = vld [vmem:[#allocation10 + $0x150] sm:$0xf0] }
 0x152   : > { %v7311_v54 = vld [vmem:[#allocation10 + $0x124] sm:$0xf]  ;;  %v6101_v55 = vld [vmem:[#allocation10 + $0x130] sm:$0xf0] }
 0x153   : > { %v6104_v4 = vor.u32 %v7311_v54, %v6101_v55  ;;  %v7387_v55 = vld [vmem:[#allocation10 + $0x384] sm:$0xf] }
 0x154   : > { %3387 = vmatpush.bf16.msrb.mxu0 %v5988_v2  ;;  %3400 = vmatpush.bf16.msrb.mxu1 %v6116_v3  ;;  %v6675_v2 = vld [vmem:[#allocation10 + $0x5a0] sm:$0xf]  ;;  %v7457_v3 = vld [vmem:[#allocation10 + $0x5ac] sm:$0xf0] }
 0x155   : > { %3413 = vmatpush.bf16.msrb.mxu2 %v6244_v6  ;;  %3426 = vmatpush.bf16.msrb.mxu3 %v6372_v7  ;;  %v7327_v6 = vld [vmem:[#allocation10 + $0x1a4] sm:$0xf]  ;;  %v6165_v7 = vld [vmem:[#allocation10 + $0x1b0] sm:$0xf0]  ;;  %v6676_v10 = vor.u32 %v7457_v3, %v6675_v2  ;;  %v5976_v3 = vor.u32 %v7279_v52, %v5973_v53 }
 0x156   : > { %v6168_v14 = vor.u32 %v7327_v6, %v6165_v7  ;;  %v7275_v2 = vld [vmem:[#allocation10 + $0x4] sm:$0xf]  ;;  %v2197_v7 = vld [vmem:[#allocation8 + $0x10] sm:$0xff]  ;;  %v6277_v52 = vld [vmem:[#allocation10 + $0x290] sm:$0xf0] }
 0x157   : > { %v7307_v6 = vld [vmem:[#allocation10 + $0x104] sm:$0xf] }
 0x158   : > { %3388 = vmatpush.bf16.msrb.mxu0 %v5972_v18  ;;  %3401 = vmatpush.bf16.msrb.mxu1 %v6100_v19  ;;  %v6021_v18 = vld [vmem:[#allocation10 + $0x90] sm:$0xf0]  ;;  %v7323_v19 = vld [vmem:[#allocation10 + $0x184] sm:$0xf] }
 0x159   : > { %3414 = vmatpush.bf16.msrb.mxu2 %v6228_v23  ;;  %3427 = vmatpush.bf16.msrb.mxu3 %v6356_v24  ;;  %v6515_v23 = vld [vmem:[#allocation10 + $0x460] sm:$0xf]  ;;  %v7417_v24 = vld [vmem:[#allocation10 + $0x46c] sm:$0xf0]  ;;  %v6024_v25 = vor.u32 %v7291_v17, %v6021_v18  ;;  %v6152_v28 = vor.u32 %v7323_v19, %v6149_v20  ;;  %v6581_v17 = vld [vmem:[#allocation10 + $0x4f0] sm:$0xf0]  ;;  %v2408_v20 = vunpack.c.l.b16 %v2197_v7 }
 0x15a   : > { %v6516_v35 = vor.u32 %v7417_v24, %v6515_v23  ;;  %v7463_v18 = vld [vmem:[#allocation10 + $0x5e4] sm:$0xf]  ;;  %v6709_v19 = vld [vmem:[#allocation10 + $0x5f0] sm:$0xf0] }
 0x15b   : > { %v6712_v31 = vor.u32 %v7463_v18, %v6709_v19 }
 0x15c   : > { %3389 = vmatpush.bf16.msrb.mxu0 %v5956_v36  ;;  %3402 = vmatpush.bf16.msrb.mxu1 %v6084_v37  ;;  %v6644_v36 = vor.u32 %v7449_v30, %v6643_v29  ;;  %v6499_v37 = vld [vmem:[#allocation10 + $0x440] sm:$0xf]  ;;  %v6309_v29 = vld [vmem:[#allocation10 + $0x2d0] sm:$0xf0] }
 0x15d   : > { %3415 = vmatpush.bf16.msrb.mxu2 %v6212_v41  ;;  %3428 = vmatpush.bf16.msrb.mxu3 %v6340_v42  ;;  %v7283_v41 = vld [vmem:[#allocation10 + $0x44] sm:$0xf]  ;;  %v5989_v42 = vld [vmem:[#allocation10 + $0x50] sm:$0xf0] }
 0x15f   : > { %3390 = vmatmul.bf16.vlgmr.msrb.gmra.mxu0 %v8563_v57  ;;  %3403 = vmatmul.bf16.vlgmr.msrb.gmra.mxu1 %v8567_v59 }
 0x160   : > { %3434 = vmatpush.bf16.msra.mxu0 %v6580_v45  ;;  %3447 = vmatpush.bf16.msra.mxu1 %v6708_v46  ;;  %v6500_v45 = vor.u32 %v7413_v26, %v6499_v37  ;;  %v6628_v46 = vor.u32 %v7445_v40, %v6627_v39  ;;  %v6693_v37 = vld [vmem:[#allocation10 + $0x5d0] sm:$0xf0]  ;;  %v8573_v26 = vpack.c.b16 %v2408_v20, %v2408_v20  ;;  %v7359_v40 = vld [vmem:[#allocation10 + $0x2a4] sm:$0xf] }
 0x161   : > { %3460 = vmatpush.bf16.msra.mxu2 %v6072_v49  ;;  %3473 = vmatpush.bf16.msra.mxu3 %v6200_v50  ;;  %v5992_v49 = vor.u32 %v7283_v41, %v5989_v42  ;;  %v6120_v50 = vor.u32 %v7315_v43, %v6117_v44  ;;  %v6440_v39 = vor.u32 %v7395_v32, %v6437_v33  ;;  %v6293_v41 = vld [vmem:[#allocation10 + $0x2b0] sm:$0xf0]  ;;  %v7391_v44 = vld [vmem:[#allocation10 + $0x3a4] sm:$0xf] }
 0x162   : > { %3416 = vmatmul.bf16.vlgmr.msrb.gmra.mxu2 %v8561_v56  ;;  %3429 = vmatmul.bf16.vlgmr.msrb.gmra.mxu3 %v8565_v58  ;;  %v7379_v20 = vld [vmem:[#allocation10 + $0x344] sm:$0xf] }
 0x164   : > { %3435 = vmatpush.bf16.msra.mxu0 %v6564_v60  ;;  %3448 = vmatpush.bf16.msra.mxu1 %v6692_v61  ;;  %v6467_v60 = vld [vmem:[#allocation10 + $0x400] sm:$0xf]  ;;  %v7405_v61 = vld [vmem:[#allocation10 + $0x40c] sm:$0xf0] }
 0x165   : > { %3461 = vmatpush.bf16.msra.mxu2 %v6056_v0  ;;  %3474 = vmatpush.bf16.msra.mxu3 %v6184_v1  ;;  %v6595_v0 = vld [vmem:[#allocation10 + $0x500] sm:$0xf]  ;;  %v7437_v1 = vld [vmem:[#allocation10 + $0x50c] sm:$0xf0]  ;;  %v6468_v15 = vor.u32 %v7405_v61, %v6467_v60  ;;  %v6405_v60 = vld [vmem:[#allocation10 + $0x390] sm:$0xf0] }
 0x166   : > { %v6596_v16 = vor.u32 %v7437_v1, %v6595_v0  ;;  %v7419_v61 = vld [vmem:[#allocation10 + $0x484] sm:$0xf]  ;;  %v6661_v0 = vld [vmem:[#allocation10 + $0x590] sm:$0xf0]  ;;  %v6280_v1 = vor.u32 %v7355_v9, %v6277_v52  ;;  %v6075_v9 = vld [vmem:[#allocation10 + $0xe8] sm:$0xf] }
 0x167   : > { %v7306_v52 = vld [vmem:[#allocation10 + $0xf4] sm:$0xf0] }
 0x168   : > { %3436 = vmatpush.bf16.msra.mxu0 %v6548_v8  ;;  %3449 = vmatpush.bf16.msra.mxu1 %v6676_v10  ;;  %v6085_v8 = vld [vmem:[#allocation10 + $0x110] sm:$0xf0]  ;;  %v7367_v10 = vld [vmem:[#allocation10 + $0x2e4] sm:$0xf] }
 0x169   : > { %3462 = vmatpush.bf16.msra.mxu2 %v6040_v13  ;;  %3475 = vmatpush.bf16.msra.mxu3 %v6168_v14  ;;  %v6453_v13 = vld [vmem:[#allocation10 + $0x3f0] sm:$0xf0]  ;;  %v7431_v14 = vld [vmem:[#allocation10 + $0x4e4] sm:$0xf]  ;;  %v6088_v23 = vor.u32 %v7307_v6, %v6085_v8  ;;  %v6328_v24 = vor.u32 %v7367_v10, %v6325_v11 }
 0x16a   : > { %v6584_v30 = vor.u32 %v7431_v14, %v6581_v17  ;;  %v6389_v8 = vld [vmem:[#allocation10 + $0x370] sm:$0xf0]  ;;  %v7415_v10 = vld [vmem:[#allocation10 + $0x464] sm:$0xf] }
 0x16b   : > { %v6517_v11 = vld [vmem:[#allocation10 + $0x470] sm:$0xf0] }
 0x16c   : > { %3437 = vmatpush.bf16.msra.mxu0 %v6532_v21  ;;  %3450 = vmatpush.bf16.msra.mxu1 %v6660_v22  ;;  %v2409_v21 = vunpack.c.h.b16 %v2197_v7  ;;  %v5960_v22 = vor.u32 %v7275_v2, %v5957_v5  ;;  %v6408_v2 = vor.u32 %v7387_v55, %v6405_v60  ;;  %v7383_v7 = vld [vmem:[#allocation10 + $0x364] sm:$0xf]  ;;  %v6245_v17 = vld [vmem:[#allocation10 + $0x250] sm:$0xf0]  ;;  %v6520_v18 = vor.u32 %v7415_v10, %v6517_v11  ;;  %v6331_v55 = vld [vmem:[#allocation10 + $0x2e8] sm:$0xf] }
 0x16d   : > { %3463 = vmatpush.bf16.msra.mxu2 %v6024_v25  ;;  %3476 = vmatpush.bf16.msra.mxu3 %v6152_v28  ;;  %v6456_v25 = vor.u32 %v7399_v12, %v6453_v13  ;;  %v7363_v28 = vld [vmem:[#allocation10 + $0x2c4] sm:$0xf]  ;;  %v6645_v13 = vld [vmem:[#allocation10 + $0x570] sm:$0xf0]  ;;  %v6187_v10 = vld [vmem:[#allocation10 + $0x1c8] sm:$0xf] }
 0x16e   : > { %v7447_v12 = vld [vmem:[#allocation10 + $0x564] sm:$0xf]  ;;  %v7334_v11 = vld [vmem:[#allocation10 + $0x1d4] sm:$0xf0] }
 0x16f   : > { %v6648_v19 = vor.u32 %v7447_v12, %v6645_v13  ;;  %v6315_v12 = vld [vmem:[#allocation10 + $0x2c8] sm:$0xf]  ;;  %v7366_v13 = vld [vmem:[#allocation10 + $0x2d4] sm:$0xf0] }
 0x170   : > { %3438 = vmatpush.bf16.msra.mxu0 %v6516_v35  ;;  %3451 = vmatpush.bf16.msra.mxu1 %v6644_v36  ;;  %v6565_v35 = vld [vmem:[#allocation10 + $0x4d0] sm:$0xf0]  ;;  %v7459_v36 = vld [vmem:[#allocation10 + $0x5c4] sm:$0xf] }
 0x171   : > { %3464 = vmatpush.bf16.msra.mxu2 %v6008_v38  ;;  %3477 = vmatpush.bf16.msra.mxu3 %v6136_v27  ;;  %v8575_v38 = vpack.c.b16 %v2409_v21, %v2409_v21  ;;  %v6312_v27 = vor.u32 %v7363_v28, %v6309_v29  ;;  %v6568_v42 = vor.u32 %v7427_v34, %v6565_v35  ;;  %v6373_v21 = vld [vmem:[#allocation10 + $0x350] sm:$0xf0]  ;;  %v7375_v34 = vld [vmem:[#allocation10 + $0x324] sm:$0xf] }
 0x172   : > { %v6696_v43 = vor.u32 %v7459_v36, %v6693_v37  ;;  %v6376_v29 = vor.u32 %v7379_v20, %v6373_v21  ;;  %v6357_v35 = vld [vmem:[#allocation10 + $0x330] sm:$0xf0]  ;;  %v7407_v36 = vld [vmem:[#allocation10 + $0x424] sm:$0xf]  ;;  %v6316_v20 = vor.u32 %v7366_v13, %v6315_v12 }
 0x173   : > { %v6485_v37 = vld [vmem:[#allocation10 + $0x430] sm:$0xf0] }
 0x174   : > { %3439 = vmatpush.bf16.msra.mxu0 %v6500_v45  ;;  %3452 = vmatpush.bf16.msra.mxu1 %v6628_v46  ;;  %v6421_v45 = vld [vmem:[#allocation10 + $0x3b0] sm:$0xf0]  ;;  %v7423_v46 = vld [vmem:[#allocation10 + $0x4a4] sm:$0xf] }
 0x175   : > { %3465 = vmatpush.bf16.msra.mxu2 %v5992_v49  ;;  %3478 = vmatpush.bf16.msra.mxu3 %v6120_v50  ;;  %v6677_v49 = vld [vmem:[#allocation10 + $0x5b0] sm:$0xf0]  ;;  %v6296_v50 = vor.u32 %v7359_v40, %v6293_v41  ;;  %v6424_v51 = vor.u32 %v7391_v44, %v6421_v45  ;;  %v6552_v53 = vor.u32 %v7423_v46, %v6549_v47  ;;  %v7339_v40 = vld [vmem:[#allocation10 + $0x204] sm:$0xf] }
 0x176   : > { %v6680_v54 = vor.u32 %v7455_v48, %v6677_v49  ;;  %v7371_v44 = vld [vmem:[#allocation10 + $0x304] sm:$0xf]  ;;  %v6341_v45 = vld [vmem:[#allocation10 + $0x310] sm:$0xf0]  ;;  %v6488_v46 = vor.u32 %v7407_v36, %v6485_v37 }
 0x177   : > { %v7403_v48 = vld [vmem:[#allocation10 + $0x404] sm:$0xf]  ;;  %v6469_v49 = vld [vmem:[#allocation10 + $0x410] sm:$0xf0] }
 0x178   : > { %3440 = vmatpush.bf16.msra.mxu0 %v6484_v62  ;;  %3453 = vmatpush.bf16.msra.mxu1 %v6612_v63  ;;  %v6533_v62 = vld [vmem:[#allocation10 + $0x490] sm:$0xf0]  ;;  %v7451_v63 = vld [vmem:[#allocation10 + $0x584] sm:$0xf] }
 0x179   : > { %3466 = vmatpush.bf16.msra.mxu2 %v5976_v3  ;;  %3479 = vmatpush.bf16.msra.mxu3 %v6104_v4  ;;  %v7351_v3 = vld [vmem:[#allocation10 + $0x264] sm:$0xf]  ;;  %v6261_v4 = vld [vmem:[#allocation10 + $0x270] sm:$0xf0]  ;;  %v6536_v5 = vor.u32 %v7419_v61, %v6533_v62  ;;  %v6664_v6 = vor.u32 %v7451_v63, %v6661_v0  ;;  %v6344_v61 = vor.u32 %v7371_v44, %v6341_v45  ;;  %v7370_v62 = vld [vmem:[#allocation10 + $0x2f4] sm:$0xf0] }
 0x17a   : > { %v6264_v14 = vor.u32 %v7351_v3, %v6261_v4  ;;  %v6459_v63 = vld [vmem:[#allocation10 + $0x3e8] sm:$0xf]  ;;  %v7402_v0 = vld [vmem:[#allocation10 + $0x3f4] sm:$0xf0]  ;;  %v6076_v3 = vor.u32 %v7306_v52, %v6075_v9 }
 0x17b   : > { %v6267_v9 = vld [vmem:[#allocation10 + $0x268] sm:$0xf] }
 0x17c   : > { %3441 = vmatpush.bf16.msra.mxu0 %v6468_v15  ;;  %3454 = vmatpush.bf16.msra.mxu1 %v6596_v16  ;;  %v6392_v15 = vor.u32 %v7383_v7, %v6389_v8  ;;  %v7347_v16 = vld [vmem:[#allocation10 + $0x244] sm:$0xf]  ;;  %v6332_v7 = vor.u32 %v7370_v62, %v6331_v55  ;;  %v6460_v8 = vor.u32 %v7402_v0, %v6459_v63  ;;  %v6395_v55 = vld [vmem:[#allocation10 + $0x368] sm:$0xf] }
 0x17d   : > { %3467 = vmatpush.bf16.msra.mxu2 %v5960_v22  ;;  %3480 = vmatpush.bf16.msra.mxu3 %v6088_v23  ;;  %v7411_v22 = vld [vmem:[#allocation10 + $0x444] sm:$0xf]  ;;  %v6501_v23 = vld [vmem:[#allocation10 + $0x450] sm:$0xf0]  ;;  %v6248_v28 = vor.u32 %v7347_v16, %v6245_v17  ;;  %v6188_v17 = vor.u32 %v7334_v11, %v6187_v10  ;;  %v6379_v10 = vld [vmem:[#allocation10 + $0x348] sm:$0xf] }
 0x17e   : > { %v6504_v32 = vor.u32 %v7411_v22, %v6501_v23  ;;  %v6171_v22 = vld [vmem:[#allocation10 + $0x1a8] sm:$0xf]  ;;  %v7330_v23 = vld [vmem:[#allocation10 + $0x1b4] sm:$0xf0] }
 0x17f   : > { %3442 = vmatmul.bf16.vlgmr.msra.gmra.mxu0 %v8573_v26  ;;  %3455 = vmatmul.bf16.vlgmr.msra.gmra.mxu1 %v8575_v38  ;;  %v7382_v11 = vld [vmem:[#allocation10 + $0x354] sm:$0xf0] }
 0x180   : > { %3486 = vmatpush.bf16.msrb.mxu0 %v6328_v24  ;;  %3499 = vmatpush.bf16.msrb.mxu1 %v6456_v25  ;;  %v7443_v24 = vld [vmem:[#allocation10 + $0x544] sm:$0xf]  ;;  %v6629_v25 = vld [vmem:[#allocation10 + $0x550] sm:$0xf0] }
 0x181   : > { %3512 = vmatpush.bf16.msrb.mxu2 %v6584_v30  ;;  %3525 = vmatpush.bf16.msrb.mxu3 %v6712_v31  ;;  %v7343_v30 = vld [vmem:[#allocation10 + $0x224] sm:$0xf]  ;;  %v6229_v31 = vld [vmem:[#allocation10 + $0x230] sm:$0xf0]  ;;  %v6632_v33 = vor.u32 %v7443_v24, %v6629_v25  ;;  %v6299_v24 = vld [vmem:[#allocation10 + $0x2a8] sm:$0xf] }
 0x182   : > { %3468 = vmatmul.bf16.vlgmr.msra.gmra.mxu2 %v8563_v57  ;;  %3481 = vmatmul.bf16.vlgmr.msra.gmra.mxu3 %v8567_v59  ;;  %v6232_v41 = vor.u32 %v7343_v30, %v6229_v31  ;;  %v7362_v25 = vld [vmem:[#allocation10 + $0x2b4] sm:$0xf0] }
 0x183   : > { %v6300_v36 = vor.u32 %v7362_v25, %v6299_v24  ;;  %v6363_v24 = vld [vmem:[#allocation10 + $0x328] sm:$0xf]  ;;  %v7378_v25 = vld [vmem:[#allocation10 + $0x334] sm:$0xf0] }
 0x184   : > { %3487 = vmatpush.bf16.msrb.mxu0 %v6312_v27  ;;  %3500 = vmatpush.bf16.msrb.mxu1 %v6440_v39  ;;  %v7439_v27 = vld [vmem:[#allocation10 + $0x524] sm:$0xf]  ;;  %v6613_v39 = vld [vmem:[#allocation10 + $0x530] sm:$0xf0] }
 0x185   : > { %3513 = vmatpush.bf16.msrb.mxu2 %v6568_v42  ;;  %3526 = vmatpush.bf16.msrb.mxu3 %v6696_v43  ;;  %v6360_v42 = vor.u32 %v7375_v34, %v6357_v35  ;;  %v6213_v43 = vld [vmem:[#allocation10 + $0x210] sm:$0xf0]  ;;  %v6616_v47 = vor.u32 %v7439_v27, %v6613_v39  ;;  %v6027_v34 = vld [vmem:[#allocation10 + $0x88] sm:$0xf]  ;;  %v7294_v35 = vld [vmem:[#allocation10 + $0x94] sm:$0xf0] }
 0x186   : > { %v6216_v60 = vor.u32 %v7339_v40, %v6213_v43  ;;  %v6155_v27 = vld [vmem:[#allocation10 + $0x188] sm:$0xf]  ;;  %v7326_v39 = vld [vmem:[#allocation10 + $0x194] sm:$0xf0]  ;;  %v6028_v44 = vor.u32 %v7294_v35, %v6027_v34 }
 0x187   : > { %v6283_v40 = vld [vmem:[#allocation10 + $0x288] sm:$0xf]  ;;  %v7390_v43 = vld [vmem:[#allocation10 + $0x394] sm:$0xf0]  ;;  %v6156_v45 = vor.u32 %v7326_v39, %v6155_v27 }
 0x188   : > { %3488 = vmatpush.bf16.msrb.mxu0 %v6296_v50  ;;  %3501 = vmatpush.bf16.msrb.mxu1 %v6424_v51  ;;  %v7435_v50 = vld [vmem:[#allocation10 + $0x504] sm:$0xf]  ;;  %v6597_v51 = vld [vmem:[#allocation10 + $0x510] sm:$0xf0]  ;;  %v6091_v27 = vld [vmem:[#allocation10 + $0x108] sm:$0xf] }
 0x189   : > { %3514 = vmatpush.bf16.msrb.mxu2 %v6552_v53  ;;  %3527 = vmatpush.bf16.msrb.mxu3 %v6680_v54  ;;  %v6203_v53 = vld [vmem:[#allocation10 + $0x1e8] sm:$0xf]  ;;  %v7338_v54 = vld [vmem:[#allocation10 + $0x1f4] sm:$0xf0] }
 0x18a   : > { %v6204_v4 = vor.u32 %v7338_v54, %v6203_v53  ;;  %v7354_v54 = vld [vmem:[#allocation10 + $0x274] sm:$0xf0] }
 0x18b   : > { %v7310_v39 = vld [vmem:[#allocation10 + $0x114] sm:$0xf0] }
 0x18c   : > { %3489 = vmatpush.bf16.msrb.mxu0 %v6280_v1  ;;  %3502 = vmatpush.bf16.msrb.mxu1 %v6408_v2  ;;  %v6472_v1 = vor.u32 %v7403_v48, %v6469_v49  ;;  %v6600_v2 = vor.u32 %v7435_v50, %v6597_v51  ;;  %v6139_v50 = vld [vmem:[#allocation10 + $0x168] sm:$0xf]  ;;  %v7322_v51 = vld [vmem:[#allocation10 + $0x174] sm:$0xf0] }
 0x18d   : > { %3515 = vmatpush.bf16.msrb.mxu2 %v6536_v5  ;;  %3528 = vmatpush.bf16.msrb.mxu3 %v6664_v6  ;;  %v6059_v5 = vld [vmem:[#allocation10 + $0xc8] sm:$0xf]  ;;  %v7302_v6 = vld [vmem:[#allocation10 + $0xd4] sm:$0xf0]  ;;  %v6140_v0 = vor.u32 %v7322_v51, %v6139_v50 }
 0x18e   : > { %v6060_v16 = vor.u32 %v7302_v6, %v6059_v5  ;;  %v6123_v5 = vld [vmem:[#allocation10 + $0x148] sm:$0xf]  ;;  %v7318_v6 = vld [vmem:[#allocation10 + $0x154] sm:$0xf0] }
 0x18f   : > { %v6124_v13 = vor.u32 %v7318_v6, %v6123_v5  ;;  %v6715_v50 = vld [vmem:[#allocation10 + $0x5e8] sm:$0xf]  ;;  %v7466_v51 = vld [vmem:[#allocation10 + $0x5f4] sm:$0xf0] }
 0x190   : > { %3490 = vmatpush.bf16.msrb.mxu0 %v6264_v14  ;;  %3503 = vmatpush.bf16.msrb.mxu1 %v6392_v15  ;;  %v6443_v14 = vld [vmem:[#allocation10 + $0x3c8] sm:$0xf]  ;;  %v7398_v15 = vld [vmem:[#allocation10 + $0x3d4] sm:$0xf0] }
 0x191   : > { %3516 = vmatpush.bf16.msrb.mxu2 %v6520_v18  ;;  %3529 = vmatpush.bf16.msrb.mxu3 %v6648_v19  ;;  %v6043_v18 = vld [vmem:[#allocation10 + $0xa8] sm:$0xf]  ;;  %v7298_v19 = vld [vmem:[#allocation10 + $0xb4] sm:$0xf0]  ;;  %v6444_v21 = vor.u32 %v7398_v15, %v6443_v14 }
 0x192   : > { %v5979_v14 = vld [vmem:[#allocation10 + $0x28] sm:$0xf]  ;;  %v7282_v15 = vld [vmem:[#allocation10 + $0x34] sm:$0xf0] }
 0x193   : > { %v5980_v34 = vor.u32 %v7282_v15, %v5979_v14  ;;  %v6061_v15 = vld [vmem:[#allocation10 + $0xd8] sm:$0xf0] }
 0x194   : > { %3491 = vmatpush.bf16.msrb.mxu0 %v6248_v28  ;;  %3504 = vmatpush.bf16.msrb.mxu1 %v6376_v29  ;;  %v6427_v28 = vld [vmem:[#allocation10 + $0x3a8] sm:$0xf]  ;;  %v7394_v29 = vld [vmem:[#allocation10 + $0x3b4] sm:$0xf0] }
 0x195   : > { %3517 = vmatpush.bf16.msrb.mxu2 %v6504_v32  ;;  %3530 = vmatpush.bf16.msrb.mxu3 %v6632_v33  ;;  %v6044_v32 = vor.u32 %v7298_v19, %v6043_v18  ;;  %v6172_v33 = vor.u32 %v7330_v23, %v6171_v22  ;;  %v6428_v37 = vor.u32 %v7394_v29, %v6427_v28  ;;  %v7314_v19 = vld [vmem:[#allocation10 + $0x134] sm:$0xf0] }
 0x196   : > { %v6380_v18 = vor.u32 %v7382_v11, %v6379_v10  ;;  %v6699_v11 = vld [vmem:[#allocation10 + $0x5c8] sm:$0xf] }
 0x198   : > { %3492 = vmatpush.bf16.msrb.mxu0 %v6232_v41  ;;  %3505 = vmatpush.bf16.msrb.mxu1 %v6360_v42  ;;  %v7358_v41 = vld [vmem:[#allocation10 + $0x294] sm:$0xf0]  ;;  %v6411_v42 = vld [vmem:[#allocation10 + $0x388] sm:$0xf] }
 0x199   : > { %3518 = vmatpush.bf16.msrb.mxu2 %v6488_v46  ;;  %3531 = vmatpush.bf16.msrb.mxu3 %v6616_v47  ;;  %v6011_v46 = vld [vmem:[#allocation10 + $0x68] sm:$0xf]  ;;  %v7290_v47 = vld [vmem:[#allocation10 + $0x74] sm:$0xf0]  ;;  %v6284_v48 = vor.u32 %v7358_v41, %v6283_v40  ;;  %v6412_v49 = vor.u32 %v7390_v43, %v6411_v42  ;;  %v6364_v41 = vor.u32 %v7378_v25, %v6363_v24 }
 0x19a   : > { %v6012_v63 = vor.u32 %v7290_v47, %v6011_v46  ;;  %v6219_v43 = vld [vmem:[#allocation10 + $0x208] sm:$0xf]  ;;  %v7374_v46 = vld [vmem:[#allocation10 + $0x314] sm:$0xf0] }
 0x19b   : > { %v8585_v30 = vpop.f32.mrf.mxu0  ;;  %v8587_v31 = vpop.f32.mrf.mxu1  ;;  %v6587_v47 = vld [vmem:[#allocation10 + $0x4e8] sm:$0xf]  ;;  %v7458_v25 = vld [vmem:[#allocation10 + $0x5b4] sm:$0xf0] }
 0x19c   : > { %3493 = vmatpush.bf16.msrb.mxu0 %v6216_v60  ;;  %3506 = vmatpush.bf16.msrb.mxu1 %v6344_v61  ;;  %v7386_v60 = vld [vmem:[#allocation10 + $0x374] sm:$0xf0]  ;;  %v8593_v40 = vadd.f32 %v8587_v31, %v8585_v30  ;;  %v6092_v31 = vor.u32 %v7310_v39, %v6091_v27  ;;  %v6683_v24 = vld [vmem:[#allocation10 + $0x5a8] sm:$0xf]  ;;  %v6173_v27 = vld [vmem:[#allocation10 + $0x1b8] sm:$0xf0] }
 0x19d   : > { %3519 = vmatpush.bf16.msrb.mxu2 %v6472_v1  ;;  %3532 = vmatpush.bf16.msrb.mxu3 %v6600_v2  ;;  %v5995_v1 = vld [vmem:[#allocation10 + $0x48] sm:$0xf]  ;;  %v7286_v2 = vld [vmem:[#allocation10 + $0x54] sm:$0xf0] }
 0x19e   : > { %v5996_v12 = vor.u32 %v7286_v2, %v5995_v1 }
 0x19f   : > { %3494 = vmatmul.bf16.vlgmr.msrb.gmra.mxu0 %v8561_v56  ;;  %3507 = vmatmul.bf16.vlgmr.msrb.gmra.mxu1 %v8565_v58 }
 0x1a0   : > { %3538 = vmatpush.bf16.msra.mxu0 %v6076_v3  ;;  %3551 = vmatpush.bf16.msra.mxu1 %v6204_v4  ;;  %v6268_v3 = vor.u32 %v7354_v54, %v6267_v9  ;;  %v6396_v4 = vor.u32 %v7386_v60, %v6395_v55  ;;  %v7304_v9 = vld [vmem:[#allocation10 + $0xec] sm:$0xf]  ;;  %v6205_v55 = vld [vmem:[#allocation10 + $0x1f8] sm:$0xf0]  ;;  %v1214_v60 = vmul.f32 %v8593_v40, %v8593_v40 }
 0x1a1   : > { %3564 = vmatpush.bf16.msra.mxu2 %v6332_v7  ;;  %3577 = vmatpush.bf16.msra.mxu3 %v6460_v8  ;;  %v6251_v7 = vld [vmem:[#allocation10 + $0x248] sm:$0xf]  ;;  %v7350_v8 = vld [vmem:[#allocation10 + $0x254] sm:$0xf0]  ;;  %v7336_v54 = vld [vmem:[#allocation10 + $0x1ec] sm:$0xf] }
 0x1a2   : > { %3520 = vmatmul.bf16.vlgmr.msrb.gmra.mxu2 %v8573_v26  ;;  %3533 = vmatmul.bf16.vlgmr.msrb.gmra.mxu3 %v8575_v38  ;;  %v1145_v52 = vpop.f32.mrf.mxu2  ;;  %v1158_v53 = vpop.f32.mrf.mxu3  ;;  %v6208_v6 = vor.u32 %v7336_v54, %v6205_v55 }
 0x1a3   : > { %v1121_v61 = vpop.f32.mrf.mxu0  ;;  %v1134_v62 = vpop.f32.mrf.mxu1  ;;  %v8589_v28 = vadd.f32 %v1158_v53, %v1145_v52  ;;  %v6077_v53 = vld [vmem:[#allocation10 + $0xf8] sm:$0xf0] }
 0x1a4   : > { %3539 = vmatpush.bf16.msra.mxu0 %v6060_v16  ;;  %3552 = vmatpush.bf16.msra.mxu1 %v6188_v17  ;;  %v6107_v16 = vld [vmem:[#allocation10 + $0x128] sm:$0xf]  ;;  %v6252_v17 = vor.u32 %v7350_v8, %v6251_v7  ;;  %v6080_v5 = vor.u32 %v7304_v9, %v6077_v53  ;;  %v7454_v9 = vld [vmem:[#allocation10 + $0x594] sm:$0xf0]  ;;  %v6157_v53 = vld [vmem:[#allocation10 + $0x198] sm:$0xf0] }
 0x1a5   : > { %3565 = vmatpush.bf16.msra.mxu2 %v6316_v20  ;;  %3578 = vmatpush.bf16.msra.mxu3 %v6444_v21  ;;  %v6235_v20 = vld [vmem:[#allocation10 + $0x228] sm:$0xf]  ;;  %v7346_v21 = vld [vmem:[#allocation10 + $0x234] sm:$0xf0]  ;;  %v6108_v35 = vor.u32 %v7314_v19, %v6107_v16  ;;  %v7332_v16 = vld [vmem:[#allocation10 + $0x1cc] sm:$0xf] }
 0x1a8   : > { %3540 = vmatpush.bf16.msra.mxu0 %v6044_v32  ;;  %3553 = vmatpush.bf16.msra.mxu1 %v6172_v33  ;;  %v5963_v33 = vld [vmem:[#allocation10 + $0x8] sm:$0xf] }
 0x1a9   : > { %3566 = vmatpush.bf16.msra.mxu2 %v6300_v36  ;;  %3579 = vmatpush.bf16.msra.mxu3 %v6428_v37  ;;  %v6236_v36 = vor.u32 %v7346_v21, %v6235_v20  ;;  %v7278_v37 = vld [vmem:[#allocation10 + $0x14] sm:$0xf0] }
 0x1aa   : > { %v1147_v22 = vpop.f32.mrf.mxu2  ;;  %v1160_v23 = vpop.f32.mrf.mxu3  ;;  %v5964_v30 = vor.u32 %v7278_v37, %v5963_v33  ;;  %v7296_v33 = vld [vmem:[#allocation10 + $0xac] sm:$0xf] }
 0x1ab   : > { %v1171_v29 = vpop.f32.mrf.mxu0  ;;  %v1184_v32 = vpop.f32.mrf.mxu1  ;;  %v7426_v23 = vld [vmem:[#allocation10 + $0x4b4] sm:$0xf0]  ;;  %v7328_v37 = vld [vmem:[#allocation10 + $0x1ac] sm:$0xf] }
 0x1ac   : > { %3541 = vmatpush.bf16.msra.mxu0 %v6028_v44  ;;  %3554 = vmatpush.bf16.msra.mxu1 %v6156_v45  ;;  %v8595_v42 = vadd.f32 %v1184_v32, %v1171_v29  ;;  %v7342_v44 = vld [vmem:[#allocation10 + $0x214] sm:$0xf0]  ;;  %v6347_v45 = vld [vmem:[#allocation10 + $0x308] sm:$0xf] }
 0x1ad   : > { %3567 = vmatpush.bf16.msra.mxu2 %v6284_v48  ;;  %3580 = vmatpush.bf16.msra.mxu3 %v6412_v49  ;;  %v7434_v48 = vld [vmem:[#allocation10 + $0x4f4] sm:$0xf0]  ;;  %v1215_v49 = vmul.f32 %v8589_v28, %v8589_v28  ;;  %v6220_v52 = vor.u32 %v7342_v44, %v6219_v43  ;;  %v6348_v62 = vor.u32 %v7374_v46, %v6347_v45 }
 0x1ae   : > { %v1216_v61 = vmul.f32 %v8595_v42, %v8595_v42 }
 0x1af   : > { %v1218_v14 = vadd.f32 %v1215_v49, %v1214_v60 }
 0x1b0   : > { %3542 = vmatpush.bf16.msra.mxu0 %v6012_v63  ;;  %3555 = vmatpush.bf16.msra.mxu1 %v6140_v0  ;;  %v6588_v63 = vor.u32 %v7434_v48, %v6587_v47  ;;  %v6716_v0 = vor.u32 %v7466_v51, %v6715_v50  ;;  %v6539_v47 = vld [vmem:[#allocation10 + $0x488] sm:$0xf]  ;;  %v7422_v48 = vld [vmem:[#allocation10 + $0x494] sm:$0xf0]  ;;  %v6176_v50 = vor.u32 %v7328_v37, %v6173_v27 }
 0x1b1   : > { %3568 = vmatpush.bf16.msra.mxu2 %v6268_v3  ;;  %3581 = vmatpush.bf16.msra.mxu3 %v6396_v4  ;;  %v6571_v3 = vld [vmem:[#allocation10 + $0x4c8] sm:$0xf]  ;;  %v7430_v4 = vld [vmem:[#allocation10 + $0x4d4] sm:$0xf0]  ;;  %v1219_v20 = vadd.f32 %v1218_v14, %v1216_v61  ;;  %v6540_v60 = vor.u32 %v7422_v48, %v6539_v47  ;;  %v6141_v14 = vld [vmem:[#allocation10 + $0x178] sm:$0xf0] }
 0x1b2   : > { %v1197_v1 = vpop.f32.mrf.mxu2  ;;  %v1210_v2 = vpop.f32.mrf.mxu3  ;;  %v6572_v21 = vor.u32 %v7430_v4, %v6571_v3  ;;  %v6667_v51 = vld [vmem:[#allocation10 + $0x588] sm:$0xf]  ;;  %v7410_v47 = vld [vmem:[#allocation10 + $0x434] sm:$0xf0] }
 0x1b3   : > { %v8603_v7 = vadd.f32 %v1210_v2, %v1197_v1  ;;  %v1173_v8 = vpop.f32.mrf.mxu0  ;;  %v1186_v10 = vpop.f32.mrf.mxu1  ;;  %v6523_v61 = vld [vmem:[#allocation10 + $0x468] sm:$0xf]  ;;  %v7418_v1 = vld [vmem:[#allocation10 + $0x474] sm:$0xf0] }
 0x1b4   : > { %3543 = vmatpush.bf16.msra.mxu0 %v5996_v12  ;;  %3556 = vmatpush.bf16.msra.mxu1 %v6124_v13  ;;  %v7462_v12 = vld [vmem:[#allocation10 + $0x5d4] sm:$0xf0]  ;;  %v7300_v13 = vld [vmem:[#allocation10 + $0xcc] sm:$0xf] }
 0x1b5   : > { %3569 = vmatpush.bf16.msra.mxu2 %v6252_v17  ;;  %3582 = vmatpush.bf16.msra.mxu3 %v6380_v18  ;;  %v6189_v17 = vld [vmem:[#allocation10 + $0x1d8] sm:$0xf0]  ;;  %v6555_v18 = vld [vmem:[#allocation10 + $0x4a8] sm:$0xf]  ;;  %v1217_v19 = vmul.f32 %v8603_v7, %v8603_v7  ;;  %v6700_v22 = vor.u32 %v7462_v12, %v6699_v11  ;;  %v6064_v29 = vor.u32 %v7300_v13, %v6061_v15  ;;  %v7288_v8 = vld [vmem:[#allocation10 + $0x6c] sm:$0xf] }
 0x1b6   : > { %v6192_v32 = vor.u32 %v7332_v16, %v6189_v17  ;;  %v6556_v39 = vor.u32 %v7426_v23, %v6555_v18  ;;  %v2063_v2 = vld [vmem:[#allocation19 + $0x11] ss:$8 sm:$0x3]  ;;  %v6013_v12 = vld [vmem:[#allocation10 + $0x78] sm:$0xf0]  ;;  %v6524_v17 = vor.u32 %v7418_v1, %v6523_v61 }
 0x1b7   : > { %v7320_v13 = vld [vmem:[#allocation10 + $0x16c] sm:$0xf]  ;;  %v2065_v15 = vperm.slane %v2063_v2, 0  ;;  %v2066_v16 = vperm.slane %v2063_v2, 1  ;;  %v6016_v23 = vor.u32 %v7288_v8, %v6013_v12  ;;  %v6603_v1 = vld [vmem:[#allocation10 + $0x508] sm:$0xf] }
 0x1b8   : > { %3544 = vmatpush.bf16.msra.mxu0 %v5980_v34  ;;  %3557 = vmatpush.bf16.msra.mxu1 %v6108_v35  ;;  %v1220_v34 = vadd.f32 %v1219_v20, %v1217_v19  ;;  %v1915_v35 = vld [vmem:[#allocation19 + $0x1] ss:$8 sm:$0x3]  ;;  %v7438_v2 = vld [vmem:[#allocation10 + $0x514] sm:$0xf0] }
 0x1b9   : > { %3570 = vmatpush.bf16.msra.mxu2 %v6236_v36  ;;  %3583 = vmatpush.bf16.msra.mxu3 %v6364_v41  ;;  %v6045_v36 = vld [vmem:[#allocation10 + $0xb8] sm:$0xf0]  ;;  %v6684_v41 = vor.u32 %v7458_v25, %v6683_v24  ;;  %v1917_v45 = vperm.slane %v1915_v35, 0  ;;  %v1918_v46 = vperm.slane %v1915_v35, 1  ;;  %v6507_v20 = vld [vmem:[#allocation10 + $0x448] sm:$0xf]  ;;  %v6144_v24 = vor.u32 %v7320_v13, %v6141_v14 }
 0x1ba   : > { %1221 = vadd.xlane.f32.xlu0 %v1220_v34  ;;  %v1199_v43 = vpop.f32.mrf.mxu2  ;;  %v1212_v44 = vpop.f32.mrf.mxu3  ;;  %v6048_v49 = vor.u32 %v7296_v33, %v6045_v36  ;;  %v7446_v25 = vld [vmem:[#allocation10 + $0x554] sm:$0xf0]  ;;  %v7316_v35 = vld [vmem:[#allocation10 + $0x14c] sm:$0xf]  ;;  %v6125_v36 = vld [vmem:[#allocation10 + $0x158] sm:$0xf0] }
 0x1bb   : > { %v6128_v48 = vor.u32 %v7316_v35, %v6125_v36  ;;  %v7308_v8 = vld [vmem:[#allocation10 + $0x10c] sm:$0xf]  ;;  %v6333_v12 = vld [vmem:[#allocation10 + $0x2f8] sm:$0xf0] }
 0x1bc   : > { %3545 = vmatpush.bf16.msra.mxu0 %v5964_v30  ;;  %3558 = vmatpush.bf16.msra.mxu1 %v6092_v31  ;;  %v7292_v30 = vld [vmem:[#allocation10 + $0x8c] sm:$0xf]  ;;  %v6029_v31 = vld [vmem:[#allocation10 + $0x98] sm:$0xf0]  ;;  %v2010_v54 = vpop.f32.mrf.mxu0  ;;  %v2023_v55 = vpop.f32.mrf.mxu1 }
 0x1bd   : > { %3571 = vmatpush.bf16.msra.mxu2 %v6220_v52  ;;  %3584 = vmatpush.bf16.msra.mxu3 %v6348_v62  ;;  %v7324_v52 = vld [vmem:[#allocation10 + $0x18c] sm:$0xf]  ;;  %v8611_v62 = vadd.f32 %v2010_v54, %v1917_v45  ;;  %v6032_v3 = vor.u32 %v7292_v30, %v6029_v31  ;;  %v5981_v31 = vld [vmem:[#allocation10 + $0x38] sm:$0xf0] }
 0x1be   : > { %v6160_v4 = vor.u32 %v7324_v52, %v6157_v53  ;;  %v7312_v52 = vld [vmem:[#allocation10 + $0x12c] sm:$0xf]  ;;  %v6109_v53 = vld [vmem:[#allocation10 + $0x138] sm:$0xf0] }
 0x1bf   : > { %3546 = vmatmul.bf16.vlgmr.msra.gmra.mxu0 %v8563_v57  ;;  %3559 = vmatmul.bf16.vlgmr.msra.gmra.mxu1 %v8567_v59  ;;  %v2027_v10 = vmul.f32 %v8611_v62, %v8611_v62  ;;  %v7396_v36 = vld [vmem:[#allocation10 + $0x3cc] sm:$0xf] }
 0x1c0   : > { %3590 = vmatpush.bf16.msrb.mxu0 %v6588_v63  ;;  %3603 = vmatpush.bf16.msrb.mxu1 %v6716_v0  ;;  %v8613_v63 = vadd.f32 %v2023_v55, %v1918_v46  ;;  %v6668_v0 = vor.u32 %v7454_v9, %v6667_v51  ;;  %v6491_v46 = vld [vmem:[#allocation10 + $0x428] sm:$0xf]  ;;  %v7280_v51 = vld [vmem:[#allocation10 + $0x2c] sm:$0xf] }
 0x1c1   : > { %3616 = vmatpush.bf16.msrb.mxu2 %v6080_v5  ;;  %3629 = vmatpush.bf16.msrb.mxu3 %v6208_v6  ;;  %v6651_v5 = vld [vmem:[#allocation10 + $0x568] sm:$0xf]  ;;  %v7450_v6 = vld [vmem:[#allocation10 + $0x574] sm:$0xf0] }
 0x1c2   : > { %3572 = vmatmul.bf16.vlgmr.msra.gmra.mxu2 %v8561_v56  ;;  %3585 = vmatmul.bf16.vlgmr.msra.gmra.mxu3 %v8565_v58  ;;  %v2028_v11 = vmul.f32 %v8613_v63, %v8613_v63  ;;  %v6652_v18 = vor.u32 %v7450_v6, %v6651_v5  ;;  %v6475_v55 = vld [vmem:[#allocation10 + $0x408] sm:$0xf]  ;;  %v7276_v5 = vld [vmem:[#allocation10 + $0xc] sm:$0xf]  ;;  %v5965_v6 = vld [vmem:[#allocation10 + $0x18] sm:$0xf0] }
 0x1c4   : > { %3591 = vmatpush.bf16.msrb.mxu0 %v6572_v21  ;;  %3604 = vmatpush.bf16.msrb.mxu1 %v6700_v22  ;;  %v2029_v19 = vadd.f32 %v2028_v11, %v2027_v10  ;;  %v7414_v21 = vld [vmem:[#allocation10 + $0x454] sm:$0xf0]  ;;  %v6635_v22 = vld [vmem:[#allocation10 + $0x548] sm:$0xf]  ;;  %v6093_v10 = vld [vmem:[#allocation10 + $0x118] sm:$0xf0] }
 0x1c5   : > { %3617 = vmatpush.bf16.msrb.mxu2 %v6064_v29  ;;  %3630 = vmatpush.bf16.msrb.mxu3 %v6192_v32  ;;  %v7284_v29 = vld [vmem:[#allocation10 + $0x4c] sm:$0xf]  ;;  %v5997_v32 = vld [vmem:[#allocation10 + $0x58] sm:$0xf0]  ;;  %v2158_v33 = vpop.f32.mrf.mxu2  ;;  %v2171_v34 = vpop.f32.mrf.mxu3  ;;  %v6508_v43 = vor.u32 %v7414_v21, %v6507_v20  ;;  %v6636_v44 = vor.u32 %v7446_v25, %v6635_v22 }
 0x1c6   : > { %2030 = vadd.xlane.f32.xlu0 %v2029_v19  ;;  %v8619_v37 = vadd.f32 %v2158_v33, %v2065_v15  ;;  %v8621_v27 = vadd.f32 %v2171_v34, %v2066_v16  ;;  %v6000_v45 = vor.u32 %v7284_v29, %v5997_v32  ;;  %v7368_v11 = vld [vmem:[#allocation10 + $0x2ec] sm:$0xf]  ;;  %v6461_v16 = vld [vmem:[#allocation10 + $0x3f8] sm:$0xf0]  ;;  %v6604_v19 = vor.u32 %v7438_v2, %v6603_v1 }
 0x1c7   : > { %v7400_v15 = vld [vmem:[#allocation10 + $0x3ec] sm:$0xf]  ;;  %v6589_v20 = vld [vmem:[#allocation10 + $0x4f8] sm:$0xf0]  ;;  %v6336_v25 = vor.u32 %v7368_v11, %v6333_v12 }
 0x1c8   : > { %3592 = vmatpush.bf16.msrb.mxu0 %v6556_v39  ;;  %3605 = vmatpush.bf16.msrb.mxu1 %v6684_v41  ;;  %v2012_v39 = vpop.f32.mrf.mxu0  ;;  %v2025_v41 = vpop.f32.mrf.mxu1  ;;  %v2175_v9 = vmul.f32 %v8619_v37, %v8619_v37  ;;  %v2176_v30 = vmul.f32 %v8621_v27, %v8621_v27  ;;  %v7464_v21 = vld [vmem:[#allocation10 + $0x5ec] sm:$0xf]  ;;  %v6717_v22 = vld [vmem:[#allocation10 + $0x5f8] sm:$0xf0]  ;;  %v6464_v29 = vor.u32 %v7400_v15, %v6461_v16 }
 0x1c9   : > { %3618 = vmatpush.bf16.msrb.mxu2 %v6048_v49  ;;  %3631 = vmatpush.bf16.msrb.mxu3 %v6176_v50  ;;  %v6619_v49 = vld [vmem:[#allocation10 + $0x528] sm:$0xf]  ;;  %v7442_v50 = vld [vmem:[#allocation10 + $0x534] sm:$0xf0]  ;;  %v7364_v32 = vld [vmem:[#allocation10 + $0x2cc] sm:$0xf]  ;;  %v6720_v35 = vor.u32 %v7464_v21, %v6717_v22 }
 0x1ca   : > { %v2177_v54 = vadd.f32 %v2176_v30, %v2175_v9  ;;  %v6620_v61 = vor.u32 %v7442_v50, %v6619_v49  ;;  %v6317_v33 = vld [vmem:[#allocation10 + $0x2d8] sm:$0xf0]  ;;  %v7428_v41 = vld [vmem:[#allocation10 + $0x4cc] sm:$0xf] }
 0x1cb   : > { %v6445_v39 = vld [vmem:[#allocation10 + $0x3d8] sm:$0xf0]  ;;  %v7392_v9 = vld [vmem:[#allocation10 + $0x3ac] sm:$0xf] }
 0x1cc   : > { %3593 = vmatpush.bf16.msrb.mxu0 %v6540_v60  ;;  %3606 = vmatpush.bf16.msrb.mxu1 %v6668_v0  ;;  %v6492_v60 = vor.u32 %v7410_v47, %v6491_v46  ;;  %v7406_v0 = vld [vmem:[#allocation10 + $0x414] sm:$0xf0]  ;;  %v6320_v46 = vor.u32 %v7364_v32, %v6317_v33  ;;  %v6448_v47 = vor.u32 %v7396_v36, %v6445_v39  ;;  %v6301_v49 = vld [vmem:[#allocation10 + $0x2b8] sm:$0xf0]  ;;  %v7352_v12 = vld [vmem:[#allocation10 + $0x26c] sm:$0xf] }
 0x1cd   : > { %3619 = vmatpush.bf16.msrb.mxu2 %v6032_v3  ;;  %3632 = vmatpush.bf16.msrb.mxu3 %v6160_v4  ;;  %v5984_v3 = vor.u32 %v7280_v51, %v5981_v31  ;;  %v6112_v4 = vor.u32 %v7312_v52, %v6109_v53  ;;  %v2160_v13 = vpop.f32.mrf.mxu2  ;;  %v2173_v14 = vpop.f32.mrf.mxu3  ;;  %v6429_v30 = vld [vmem:[#allocation10 + $0x3b8] sm:$0xf0]  ;;  %v7424_v31 = vld [vmem:[#allocation10 + $0x4ac] sm:$0xf] }
 0x1ce   : > { %2178 = vadd.xlane.f32.xlu1 %v2177_v54  ;;  %v6557_v52 = vld [vmem:[#allocation10 + $0x4b8] sm:$0xf0]  ;;  %v7456_v53 = vld [vmem:[#allocation10 + $0x5ac] sm:$0xf] }
 0x1cf   : > { %v6685_v54 = vld [vmem:[#allocation10 + $0x5b8] sm:$0xf0]  ;;  %v6560_v1 = vor.u32 %v7424_v31, %v6557_v52  ;;  %v7448_v21 = vld [vmem:[#allocation10 + $0x56c] sm:$0xf] }
 0x1d0   : > { %3594 = vmatpush.bf16.msrb.mxu0 %v6524_v17  ;;  %3607 = vmatpush.bf16.msrb.mxu1 %v6652_v18  ;;  %v7432_v17 = vld [vmem:[#allocation10 + $0x4ec] sm:$0xf]  ;;  %v6476_v18 = vor.u32 %v7406_v0, %v6475_v55  ;;  %v6285_v0 = vld [vmem:[#allocation10 + $0x298] sm:$0xf0]  ;;  %v6688_v2 = vor.u32 %v7456_v53, %v6685_v54 }
 0x1d1   : > { %3620 = vmatpush.bf16.msrb.mxu2 %v6016_v23  ;;  %3633 = vmatpush.bf16.msrb.mxu3 %v6144_v24  ;;  %v5968_v23 = vor.u32 %v7276_v5, %v5965_v6  ;;  %v6096_v24 = vor.u32 %v7308_v8, %v6093_v10  ;;  %v6592_v34 = vor.u32 %v7432_v17, %v6589_v20  ;;  %v7420_v5 = vld [vmem:[#allocation10 + $0x48c] sm:$0xf]  ;;  %v6541_v6 = vld [vmem:[#allocation10 + $0x498] sm:$0xf0] }
 0x1d2   : > { %v7452_v8 = vld [vmem:[#allocation10 + $0x58c] sm:$0xf]  ;;  %v6669_v10 = vld [vmem:[#allocation10 + $0x598] sm:$0xf0]  ;;  %v6544_v15 = vor.u32 %v7420_v5, %v6541_v6 }
 0x1d3   : > { %v6269_v13 = vld [vmem:[#allocation10 + $0x278] sm:$0xf0]  ;;  %v6672_v16 = vor.u32 %v7452_v8, %v6669_v10  ;;  %v7384_v17 = vld [vmem:[#allocation10 + $0x36c] sm:$0xf] }
 0x1d4   : > { %3595 = vmatpush.bf16.msrb.mxu0 %v6508_v43  ;;  %3608 = vmatpush.bf16.msrb.mxu1 %v6636_v44  ;;  %v6573_v43 = vld [vmem:[#allocation10 + $0x4d8] sm:$0xf0]  ;;  %v7460_v44 = vld [vmem:[#allocation10 + $0x5cc] sm:$0xf] }
 0x1d5   : > { %3621 = vmatpush.bf16.msrb.mxu2 %v6000_v45  ;;  %3634 = vmatpush.bf16.msrb.mxu3 %v6128_v48  ;;  %v6701_v45 = vld [vmem:[#allocation10 + $0x5d8] sm:$0xf0]  ;;  %v7360_v48 = vld [vmem:[#allocation10 + $0x2ac] sm:$0xf]  ;;  %v6576_v50 = vor.u32 %v7428_v41, %v6573_v43 }
 0x1d6   : > { %v6704_v51 = vor.u32 %v7460_v44, %v6701_v45  ;;  %v6304_v55 = vor.u32 %v7360_v48, %v6301_v49  ;;  %v6525_v20 = vld [vmem:[#allocation10 + $0x478] sm:$0xf0]  ;;  %v7412_v36 = vld [vmem:[#allocation10 + $0x44c] sm:$0xf] }
 0x1d7   : > { %v6653_v22 = vld [vmem:[#allocation10 + $0x578] sm:$0xf0]  ;;  %v7444_v43 = vld [vmem:[#allocation10 + $0x54c] sm:$0xf] }
 0x1d8   : > { %3596 = vmatpush.bf16.msrb.mxu0 %v6492_v60  ;;  %3609 = vmatpush.bf16.msrb.mxu1 %v6620_v61  ;;  %v6432_v60 = vor.u32 %v7392_v9, %v6429_v30  ;;  %v7356_v61 = vld [vmem:[#allocation10 + $0x28c] sm:$0xf]  ;;  %v6656_v33 = vor.u32 %v7448_v21, %v6653_v22  ;;  %v6509_v41 = vld [vmem:[#allocation10 + $0x458] sm:$0xf0] }
 0x1d9   : > { %3622 = vmatpush.bf16.msrb.mxu2 %v5984_v3  ;;  %3635 = vmatpush.bf16.msrb.mxu3 %v6112_v4  ;;  %v7388_v3 = vld [vmem:[#allocation10 + $0x38c] sm:$0xf]  ;;  %v6413_v4 = vld [vmem:[#allocation10 + $0x398] sm:$0xf0]  ;;  %v6512_v9 = vor.u32 %v7412_v36, %v6509_v41  ;;  %v6763_v41 = vld [vmem:[#allocation11 + $0x50] sm:$0xf] }
 0x1da   : > { %v6637_v44 = vld [vmem:[#allocation10 + $0x558] sm:$0xf0]  ;;  %v7344_v49 = vld [vmem:[#allocation10 + $0x22c] sm:$0xf] }
 0x1db   : > { %v6640_v30 = vor.u32 %v7444_v43, %v6637_v44  ;;  %v7376_v31 = vld [vmem:[#allocation10 + $0x32c] sm:$0xf]  ;;  %v6365_v52 = vld [vmem:[#allocation10 + $0x338] sm:$0xf0] }
 0x1dc   : > { %3597 = vmatpush.bf16.msrb.mxu0 %v6476_v18  ;;  %3610 = vmatpush.bf16.msrb.mxu1 %v6604_v19  ;;  %v8631_v11 = vpop.f32.mrf.mxu0  ;;  %v8633_v14 = vpop.f32.mrf.mxu1  ;;  %v6397_v18 = vld [vmem:[#allocation10 + $0x378] sm:$0xf0]  ;;  %v7416_v19 = vld [vmem:[#allocation10 + $0x46c] sm:$0xf] }
 0x1dd   : > { %3623 = vmatpush.bf16.msrb.mxu2 %v5968_v23  ;;  %3636 = vmatpush.bf16.msrb.mxu3 %v6096_v24  ;;  %v6272_v23 = vor.u32 %v7352_v12, %v6269_v13  ;;  %v6400_v24 = vor.u32 %v7384_v17, %v6397_v18  ;;  %v6528_v32 = vor.u32 %v7416_v19, %v6525_v20  ;;  %v7408_v53 = vld [vmem:[#allocation10 + $0x42c] sm:$0xf]  ;;  %v6493_v54 = vld [vmem:[#allocation10 + $0x438] sm:$0xf0]  ;;  %v6779_v13 = vld [vmem:[#allocation11 + $0x70] sm:$0xf] }
 0x1de   : > { %v6349_v6 = vld [vmem:[#allocation10 + $0x318] sm:$0xf0]  ;;  %v7404_v8 = vld [vmem:[#allocation10 + $0x40c] sm:$0xf]  ;;  %v6843_v17 = vld [vmem:[#allocation11 + $0xf0] sm:$0xf] }
 0x1df   : > { %3598 = vmatmul.bf16.vlgmr.msrb.gmra.mxu0 %v8573_v26  ;;  %3611 = vmatmul.bf16.vlgmr.msrb.gmra.mxu1 %v8575_v38  ;;  %v6477_v10 = vld [vmem:[#allocation10 + $0x418] sm:$0xf0]  ;;  %v7498_v18 = vld [vmem:[#allocation11 + $0xf4] sm:$0xf0] }
 0x1e0   : > { %3642 = vmatpush.bf16.msra.mxu0 %v6336_v25  ;;  %3655 = vmatpush.bf16.msra.mxu1 %v6464_v29  ;;  %v7348_v25 = vld [vmem:[#allocation10 + $0x24c] sm:$0xf]  ;;  %v6253_v29 = vld [vmem:[#allocation10 + $0x258] sm:$0xf0]  ;;  %v6480_v22 = vor.u32 %v7404_v8, %v6477_v10 }
 0x1e1   : > { %3668 = vmatpush.bf16.msra.mxu2 %v6592_v34  ;;  %3681 = vmatpush.bf16.msra.mxu3 %v6720_v35  ;;  %v7380_v34 = vld [vmem:[#allocation10 + $0x34c] sm:$0xf]  ;;  %v6381_v35 = vld [vmem:[#allocation10 + $0x358] sm:$0xf0] }
 0x1e2   : > { %3624 = vmatmul.bf16.vlgmr.msrb.gmra.mxu2 %v8563_v57  ;;  %3637 = vmatmul.bf16.vlgmr.msrb.gmra.mxu3 %v8567_v59  ;;  %v6288_v57 = vor.u32 %v7356_v61, %v6285_v0  ;;  %v6416_v59 = vor.u32 %v7388_v3, %v6413_v4  ;;  %v6384_v48 = vor.u32 %v7380_v34, %v6381_v35  ;;  %v7372_v3 = vld [vmem:[#allocation10 + $0x30c] sm:$0xf]  ;;  %v6605_v12 = vld [vmem:[#allocation10 + $0x518] sm:$0xf0]  ;;  %v6835_v34 = vld [vmem:[#allocation11 + $0xe0] sm:$0xf] }
 0x1e3   : > { %v6368_v0 = vor.u32 %v7376_v31, %v6365_v52  ;;  %v6496_v4 = vor.u32 %v7408_v53, %v6493_v54  ;;  %v6352_v20 = vor.u32 %v7372_v3, %v6349_v6  ;;  %v8639_v21 = vld [vmem:[#allocation19 + $0x2] ss:$8 sm:$0xf] }
 0x1e4   : > { %3643 = vmatpush.bf16.msra.mxu0 %v6320_v46  ;;  %3656 = vmatpush.bf16.msra.mxu1 %v6448_v47  ;;  %v3393_v46 = vpop.f32.mrf.mxu0  ;;  %v6256_v47 = vor.u32 %v7348_v25, %v6253_v29  ;;  %v6771_v25 = vld [vmem:[#allocation11 + $0x60] sm:$0xf]  ;;  %v7480_v29 = vld [vmem:[#allocation11 + $0x64] sm:$0xf0]  ;;  %v6747_v53 = vld [vmem:[#allocation11 + $0x30] sm:$0xf] }
 0x1e5   : > { %3669 = vmatpush.bf16.msra.mxu2 %v6576_v50  ;;  %3682 = vmatpush.bf16.msra.mxu3 %v6704_v51  ;;  %v8635_v39 = vpop.f32.mrf.mxu2  ;;  %v8637_v45 = vpop.f32.mrf.mxu3  ;;  %v6237_v50 = vld [vmem:[#allocation10 + $0x238] sm:$0xf0]  ;;  %v7496_v35 = vld [vmem:[#allocation11 + $0xe4] sm:$0xf0]  ;;  %v6772_v36 = vor.u32 %v7480_v29, %v6771_v25  ;;  %v7478_v46 = vld [vmem:[#allocation11 + $0x54] sm:$0xf0] }
 0x1e6   : > { %v3406_v51 = vpop.f32.mrf.mxu1  ;;  %v6240_v61 = vor.u32 %v7344_v49, %v6237_v50  ;;  %v6836_v43 = vor.u32 %v7496_v35, %v6835_v34  ;;  %v6764_v49 = vor.u32 %v7478_v46, %v6763_v41  ;;  %v6755_v50 = vld [vmem:[#allocation11 + $0x40] sm:$0xf]  ;;  %v7492_v31 = vld [vmem:[#allocation11 + $0xc4] sm:$0xf0]  ;;  %v6781_v25 = vld [vmem:[#allocation11 + $0x78] sm:$0xf0] }
 0x1e7   : > { %v6803_v3 = vld [vmem:[#allocation11 + $0xa0] sm:$0xf]  ;;  %v6845_v34 = vld [vmem:[#allocation11 + $0xf8] sm:$0xf0]  ;;  %v6773_v46 = vld [vmem:[#allocation11 + $0x68] sm:$0xf0] }
 0x1e8   : > { %3644 = vmatpush.bf16.msra.mxu0 %v6304_v55  ;;  %3657 = vmatpush.bf16.msra.mxu1 %v6432_v60  ;;  %v7440_v55 = vld [vmem:[#allocation10 + $0x52c] sm:$0xf]  ;;  %v6621_v60 = vld [vmem:[#allocation10 + $0x538] sm:$0xf0] }
 0x1e9   : > { %3670 = vmatpush.bf16.msra.mxu2 %v6560_v1  ;;  %3683 = vmatpush.bf16.msra.mxu3 %v6688_v2  ;;  %v7340_v1 = vld [vmem:[#allocation10 + $0x20c] sm:$0xf]  ;;  %v6221_v2 = vld [vmem:[#allocation10 + $0x218] sm:$0xf0]  ;;  %v6624_v5 = vor.u32 %v7440_v55, %v6621_v60  ;;  %v6811_v55 = vld [vmem:[#allocation11 + $0xb0] sm:$0xf] }
 0x1ea   : > { %v6224_v19 = vor.u32 %v7340_v1, %v6221_v2  ;;  %v7490_v60 = vld [vmem:[#allocation11 + $0xb4] sm:$0xf0]  ;;  %v7472_v2 = vld [vmem:[#allocation11 + $0x24] sm:$0xf0] }
 0x1ec   : > { %3645 = vmatpush.bf16.msra.mxu0 %v6288_v57  ;;  %3658 = vmatpush.bf16.msra.mxu1 %v6416_v59  ;;  %v7436_v59 = vld [vmem:[#allocation10 + $0x50c] sm:$0xf] }
 0x1ed   : > { %3671 = vmatpush.bf16.msra.mxu2 %v6544_v15  ;;  %3684 = vmatpush.bf16.msra.mxu3 %v6672_v16  ;;  %v3419_v57 = vpop.f32.mrf.mxu2  ;;  %v3432_v15 = vpop.f32.mrf.mxu3  ;;  %v7482_v16 = vld [vmem:[#allocation11 + $0x74] sm:$0xf0] }
 0x1ee   : > { %v6731_v57 = vld [vmem:[#allocation11 + $0x10] sm:$0xf] }
 0x1ef   : > { %v6795_v15 = vld [vmem:[#allocation11 + $0x90] sm:$0xf] }
 0x1f0   : > { %3646 = vmatpush.bf16.msra.mxu0 %v6272_v23  ;;  %3659 = vmatpush.bf16.msra.mxu1 %v6400_v24  ;;  %v6608_v23 = vor.u32 %v7436_v59, %v6605_v12  ;;  %v6780_v24 = vor.u32 %v7482_v16, %v6779_v13  ;;  %v7470_v13 = vld [vmem:[#allocation11 + $0x14] sm:$0xf0] }
 0x1f1   : > { %3672 = vmatpush.bf16.msra.mxu2 %v6528_v32  ;;  %3685 = vmatpush.bf16.msra.mxu3 %v6656_v33  ;;  %v6844_v32 = vor.u32 %v7498_v18, %v6843_v17  ;;  %v2393_v33 = vperm.slane %v8639_v21, 0  ;;  %v7486_v16 = vld [vmem:[#allocation11 + $0x94] sm:$0xf0]  ;;  %v6732_v17 = vor.u32 %v7470_v13, %v6731_v57  ;;  %v7468_v18 = vld [vmem:[#allocation11 + $0x4] sm:$0xf0] }
 0x1f2   : > { %v7473_v57 = vld [vmem:[#allocation11 + $0x34] sm:$0xf] }
 0x1f3   : > { %v3392_v44 = vadd.f32 %v8631_v11, %v2393_v33  ;;  %v7497_v33 = vld [vmem:[#allocation11 + $0xf4] sm:$0xf] }
 0x1f4   : > { %3647 = vmatpush.bf16.msra.mxu0 %v6256_v47  ;;  %3660 = vmatpush.bf16.msra.mxu1 %v6384_v48  ;;  %v6827_v47 = vld [vmem:[#allocation11 + $0xd0] sm:$0xf]  ;;  %v7494_v48 = vld [vmem:[#allocation11 + $0xd4] sm:$0xf0] }
 0x1f5   : > { %3673 = vmatpush.bf16.msra.mxu2 %v6512_v9  ;;  %3686 = vmatpush.bf16.msra.mxu3 %v6640_v30  ;;  %v6828_v51 = vor.u32 %v7494_v48, %v6827_v47  ;;  %v3405_v9 = vadd.f32 %v8633_v14, %v3392_v44  ;;  %v7476_v30 = vld [vmem:[#allocation11 + $0x44] sm:$0xf0]  ;;  %v6812_v14 = vor.u32 %v7490_v60, %v6811_v55  ;;  %v7479_v44 = vld [vmem:[#allocation11 + $0x64] sm:$0xf]  ;;  %v2394_v48 = vperm.slane %v8639_v21, 1 }
 0x1f6   : > { %v6756_v11 = vor.u32 %v7476_v30, %v6755_v50  ;;  %v6848_v47 = vor.u32 %v7497_v33, %v6845_v34  ;;  %v6837_v50 = vld [vmem:[#allocation11 + $0xe8] sm:$0xf0]  ;;  %v7514_v30 = vld [vmem:[#allocation11 + $0x174] sm:$0xf0]  ;;  %v7512_v55 = vld [vmem:[#allocation11 + $0x164] sm:$0xf0] }
 0x1f8   : > { %3648 = vmatpush.bf16.msra.mxu0 %v6240_v61  ;;  %3661 = vmatpush.bf16.msra.mxu1 %v6368_v0  ;;  %v6739_v0 = vld [vmem:[#allocation11 + $0x20] sm:$0xf] }
 0x1f9   : > { %3674 = vmatpush.bf16.msra.mxu2 %v6496_v4  ;;  %3687 = vmatpush.bf16.msra.mxu3 %v6624_v5  ;;  %v7488_v4 = vld [vmem:[#allocation11 + $0xa4] sm:$0xf0] }
 0x1fa   : > { %v6804_v59 = vor.u32 %v7488_v4, %v6803_v3  ;;  %v7491_v3 = vld [vmem:[#allocation11 + $0xc4] sm:$0xf]  ;;  %v6821_v4 = vld [vmem:[#allocation11 + $0xc8] sm:$0xf0] }
 0x1fc   : > { %3649 = vmatpush.bf16.msra.mxu0 %v6224_v19  ;;  %3662 = vmatpush.bf16.msra.mxu1 %v6352_v20  ;;  %v3456_v52 = vpop.f32.mrf.mxu1  ;;  %v6796_v19 = vor.u32 %v7486_v16, %v6795_v15  ;;  %v6749_v16 = vld [vmem:[#allocation11 + $0x38] sm:$0xf0] }
 0x1fd   : > { %3675 = vmatpush.bf16.msra.mxu2 %v6480_v22  ;;  %3688 = vmatpush.bf16.msra.mxu3 %v6608_v23  ;;  %v7481_v22 = vld [vmem:[#allocation11 + $0x74] sm:$0xf]  ;;  %v6787_v23 = vld [vmem:[#allocation11 + $0x80] sm:$0xf] }
 0x1ff   : > { %3650 = vmatmul.bf16.vlgmr.msra.gmra.mxu0 %v8561_v56  ;;  %3663 = vmatmul.bf16.vlgmr.msra.gmra.mxu1 %v8565_v58  ;;  %v6819_v56 = vld [vmem:[#allocation11 + $0xc0] sm:$0xf]  ;;  %v3443_v58 = vpop.f32.mrf.mxu0 }
 0x200   : > { %4093 = vmatpush.bf16.msrb.mxu0 %v6780_v24  ;;  %4106 = vmatpush.bf16.msrb.mxu1 %v6844_v32  ;;  %v6820_v54 = vor.u32 %v7492_v31, %v6819_v56  ;;  %v7484_v24 = vld [vmem:[#allocation11 + $0x84] sm:$0xf0]  ;;  %v7477_v31 = vld [vmem:[#allocation11 + $0x54] sm:$0xf] }
 0x201   : > { %3676 = vmatmul.bf16.vlgmr.msra.gmra.mxu2 %v8573_v26  ;;  %3689 = vmatmul.bf16.vlgmr.msra.gmra.mxu3 %v8575_v38  ;;  %v3418_v26 = vadd.f32 %v8635_v39, %v3405_v9  ;;  %v7474_v38 = vld [vmem:[#allocation11 + $0x34] sm:$0xf0]  ;;  %v6740_v39 = vor.u32 %v7472_v2, %v6739_v0  ;;  %v6907_v9 = vld [vmem:[#allocation11 + $0x170] sm:$0xf]  ;;  %v6757_v2 = vld [vmem:[#allocation11 + $0x48] sm:$0xf0] }
 0x202   : > { %v6748_v61 = vor.u32 %v7474_v38, %v6747_v53  ;;  %v6765_v53 = vld [vmem:[#allocation11 + $0x58] sm:$0xf0]  ;;  %v6899_v38 = vld [vmem:[#allocation11 + $0x160] sm:$0xf] }
 0x203   : > { %v3431_v1 = vadd.f32 %v8637_v45, %v3418_v26  ;;  %v6723_v45 = vld [vmem:[#allocation11] sm:$0xf]  ;;  %v6829_v26 = vld [vmem:[#allocation11 + $0xd8] sm:$0xf0]  ;;  %v6768_v60 = vor.u32 %v7477_v31, %v6765_v53  ;;  %v7467_v53 = vld [vmem:[#allocation11 + $0x4] sm:$0xf] }
 0x204   : > { %4094 = vmatpush.bf16.msrb.mxu0 %v6772_v36  ;;  %4107 = vmatpush.bf16.msrb.mxu1 %v6836_v43  ;;  %v3458_v10 = vpop.f32.mrf.mxu1  ;;  %v6724_v35 = vor.u32 %v7468_v18, %v6723_v45  ;;  %v6788_v36 = vor.u32 %v7484_v24, %v6787_v23  ;;  %v6784_v43 = vor.u32 %v7481_v22, %v6781_v25  ;;  %v6813_v45 = vld [vmem:[#allocation11 + $0xb8] sm:$0xf0]  ;;  %v6883_v18 = vld [vmem:[#allocation11 + $0x140] sm:$0xf]  ;;  %v7471_v22 = vld [vmem:[#allocation11 + $0x24] sm:$0xf] }
 0x205   : > { %v3469_v5 = vpop.f32.mrf.mxu2  ;;  %v8650_v6 = vpop.f32.mrf.mxu3  ;;  %v3444_v12 = vadd.f32 %v3443_v58, %v3431_v1  ;;  %v6741_v25 = vld [vmem:[#allocation11 + $0x28] sm:$0xf0] }
 0x207   : > { %v3445_v8 = vpop.f32.mrf.mxu0  ;;  %v3457_v20 = vadd.f32 %v3456_v52, %v3444_v12  ;;  %v6908_v52 = vor.u32 %v7514_v30, %v6907_v9  ;;  %v6797_v9 = vld [vmem:[#allocation11 + $0x98] sm:$0xf0] }
 0x208   : > { %4095 = vmatpush.bf16.msrb.mxu0 %v6764_v49  ;;  %4108 = vmatpush.bf16.msrb.mxu1 %v6828_v51  ;;  %v7495_v49 = vld [vmem:[#allocation11 + $0xe4] sm:$0xf]  ;;  %v6776_v51 = vor.u32 %v7479_v44, %v6773_v46  ;;  %v7510_v8 = vld [vmem:[#allocation11 + $0x154] sm:$0xf0]  ;;  %v7469_v44 = vld [vmem:[#allocation11 + $0x14] sm:$0xf] }
 0x209   : > { %v3694_v41 = vmax.f32 %v3457_v20, 0.0  ;;  %v6840_v58 = vor.u32 %v7495_v49, %v6837_v50  ;;  %4119 = vmatpush.bf16.msrb.mxu2 %v6908_v52  ;;  %v6752_v20 = vor.u32 %v7473_v57, %v6749_v16  ;;  %v6733_v50 = vld [vmem:[#allocation11 + $0x18] sm:$0xf0]  ;;  %v7504_v52 = vld [vmem:[#allocation11 + $0x124] sm:$0xf0] }
 0x20a   : > { %v7513_v57 = vld [vmem:[#allocation11 + $0x174] sm:$0xf]  ;;  %v7511_v16 = vld [vmem:[#allocation11 + $0x164] sm:$0xf] }
 0x20b   : > { %v8653_v56 = vpack.c.bf16 %v3694_v41, %v3694_v41  ;;  %v7506_v41 = vld [vmem:[#allocation11 + $0x134] sm:$0xf0] }
 0x20c   : > { %4096 = vmatpush.bf16.msrb.mxu0 %v6756_v11  ;;  %4109 = vmatpush.bf16.msrb.mxu1 %v6820_v54  ;;  %v3470_v11 = vadd.f32 %v3469_v5, %v2394_v48  ;;  %v7493_v54 = vld [vmem:[#allocation11 + $0xd4] sm:$0xf]  ;;  %v6891_v5 = vld [vmem:[#allocation11 + $0x150] sm:$0xf] }
 0x20d   : > { %v3471_v29 = vpop.f32.mrf.mxu2  ;;  %v3484_v32 = vpop.f32.mrf.mxu3  ;;  %v6832_v0 = vor.u32 %v7493_v54, %v6829_v26  ;;  %v6892_v12 = vor.u32 %v7510_v8, %v6891_v5  ;;  %v6851_v8 = vld [vmem:[#allocation11 + $0x100] sm:$0xf] }
 0x20e   : > { %v3483_v1 = vadd.f32 %v8650_v6, %v3470_v11  ;;  %v7487_v29 = vld [vmem:[#allocation11 + $0xa4] sm:$0xf]  ;;  %v6805_v32 = vld [vmem:[#allocation11 + $0xa8] sm:$0xf0]  ;;  %v6736_v11 = vor.u32 %v7469_v44, %v6733_v50 }
 0x20f   : > { %v6808_v46 = vor.u32 %v7487_v29, %v6805_v32  ;;  %v1239_v50 = vld [vmem:[%s8504_s3 + $0x8] sm:$0xff] }
 0x210   : > { %4097 = vmatpush.bf16.msrb.mxu0 %v6748_v61  ;;  %4110 = vmatpush.bf16.msrb.mxu1 %v6812_v14  ;;  %v7475_v61 = vld [vmem:[#allocation11 + $0x44] sm:$0xf]  ;;  %v6900_v14 = vor.u32 %v7512_v55, %v6899_v38  ;;  %v6725_v55 = vld [vmem:[#allocation11 + $0x8] sm:$0xf0] }
 0x211   : > { %v6760_v10 = vor.u32 %v7475_v61, %v6757_v2  ;;  %v6789_v61 = vld [vmem:[#allocation11 + $0x88] sm:$0xf0]  ;;  %v7502_v2 = vld [vmem:[#allocation11 + $0x114] sm:$0xf0] }
 0x212   : > { %4120 = vmatpush.bf16.msrb.mxu2 %v6900_v14 }
 0x214   : > { %4098 = vmatpush.bf16.msrb.mxu0 %v6740_v39  ;;  %4111 = vmatpush.bf16.msrb.mxu1 %v6804_v59  ;;  %v6824_v59 = vor.u32 %v7491_v3, %v6821_v4  ;;  %v6728_v3 = vor.u32 %v7467_v53, %v6725_v55  ;;  %v6877_v55 = vld [vmem:[#allocation11 + $0x138] sm:$0xf0] }
 0x216   : > { %4121 = vmatpush.bf16.msrb.mxu2 %v6892_v12 }
 0x218   : > { %4099 = vmatpush.bf16.msrb.mxu0 %v6732_v17  ;;  %4112 = vmatpush.bf16.msrb.mxu1 %v6796_v19  ;;  %v7489_v17 = vld [vmem:[#allocation11 + $0xb4] sm:$0xf]  ;;  %v7508_v19 = vld [vmem:[#allocation11 + $0x144] sm:$0xf0] }
 0x219   : > { %v6816_v23 = vor.u32 %v7489_v17, %v6813_v45  ;;  %v6884_v24 = vor.u32 %v7508_v19, %v6883_v18  ;;  %v6901_v17 = vld [vmem:[#allocation11 + $0x168] sm:$0xf0]  ;;  %v7530_v18 = vld [vmem:[#allocation11 + $0x1f4] sm:$0xf0] }
 0x21a   : > { %v6904_v45 = vor.u32 %v7511_v16, %v6901_v17  ;;  %v7522_v17 = vld [vmem:[#allocation11 + $0x1b4] sm:$0xf0] }
 0x21b   : > { %4122 = vmatpush.bf16.msrb.mxu2 %v6884_v24 }
 0x21c   : > { %4100 = vmatpush.bf16.msrb.mxu0 %v6724_v35  ;;  %4113 = vmatpush.bf16.msrb.mxu1 %v6788_v36  ;;  %v3495_v39 = vpop.f32.mrf.mxu0  ;;  %v3508_v15 = vpop.f32.mrf.mxu1  ;;  %v6875_v36 = vld [vmem:[#allocation11 + $0x130] sm:$0xf] }
 0x21d   : > { %v3496_v13 = vadd.f32 %v3495_v39, %v3483_v1  ;;  %v6876_v48 = vor.u32 %v7506_v41, %v6875_v36  ;;  %v6859_v1 = vld [vmem:[#allocation11 + $0x110] sm:$0xf] }
 0x21e   : > { %v6860_v5 = vor.u32 %v7502_v2, %v6859_v1  ;;  %v1249_v1 = vunpack.c.h.bf16 %v1239_v50  ;;  %v6947_v2 = vld [vmem:[#allocation11 + $0x1c0] sm:$0xf] }
 0x21f   : > { %4101 = vmatmul.bf16.vlgmr.msrb.gmra.mxu0 %v8653_v56  ;;  %v3509_v6 = vadd.f32 %v3508_v15, %v3496_v13  ;;  %4123 = vmatpush.bf16.msrb.mxu2 %v6876_v48 }
 0x220   : > { %4145 = vmatpush.bf16.msra.mxu0 %v6784_v43  ;;  %4158 = vmatpush.bf16.msra.mxu1 %v6848_v47  ;;  %v6744_v43 = vor.u32 %v7471_v22, %v6741_v25  ;;  %v6893_v22 = vld [vmem:[#allocation11 + $0x158] sm:$0xf0] }
 0x221   : > { %v1262_v25 = vld [vmem:[%s8511_s30] sm:$0xff] }
 0x222   : > { %v1270_v44 = vunpack.c.l.bf16 %v1262_v25 }
 0x224   : > { %4146 = vmatpush.bf16.msra.mxu0 %v6776_v51  ;;  %4159 = vmatpush.bf16.msra.mxu1 %v6840_v58  ;;  %v3497_v47 = vpop.f32.mrf.mxu0  ;;  %v7485_v51 = vld [vmem:[#allocation11 + $0x94] sm:$0xf]  ;;  %v3510_v30 = vpop.f32.mrf.mxu1  ;;  %v6867_v58 = vld [vmem:[#allocation11 + $0x120] sm:$0xf] }
 0x225   : > { %v3521_v33 = vpop.f32.mrf.mxu2  ;;  %v3534_v35 = vpop.f32.mrf.mxu3  ;;  %v6800_v54 = vor.u32 %v7485_v51, %v6797_v9  ;;  %v6868_v26 = vor.u32 %v7504_v52, %v6867_v58  ;;  %v6885_v47 = vld [vmem:[#allocation11 + $0x148] sm:$0xf0]  ;;  %v2395_v51 = vperm.slane %v8639_v21, 2  ;;  %v1271_v9 = vunpack.c.h.bf16 %v1262_v25  ;;  %v6955_v30 = vld [vmem:[#allocation11 + $0x1d0] sm:$0xf] }
 0x226   : > { %v3522_v34 = vadd.f32 %v3521_v33, %v3509_v6  ;;  %v6971_v6 = vld [vmem:[#allocation11 + $0x1f0] sm:$0xf]  ;;  %v6963_v33 = vld [vmem:[#allocation11 + $0x1e0] sm:$0xf] }
 0x227   : > { %4124 = vmatpush.bf16.msrb.mxu2 %v6868_v26  ;;  %v6972_v19 = vor.u32 %v7530_v18, %v6971_v6  ;;  %v8675_v26 = vmul.f32 0.70710677, %v1270_v44  ;;  %v7501_v18 = vld [vmem:[#allocation11 + $0x114] sm:$0xf]  ;;  %v6931_v44 = vld [vmem:[#allocation11 + $0x1a0] sm:$0xf] }
 0x228   : > { %4147 = vmatpush.bf16.msra.mxu0 %v6768_v60  ;;  %4160 = vmatpush.bf16.msra.mxu1 %v6832_v0  ;;  %v3535_v49 = vadd.f32 %v3534_v35, %v3522_v34  ;;  %v7483_v60 = vld [vmem:[#allocation11 + $0x84] sm:$0xf]  ;;  %v7528_v34 = vld [vmem:[#allocation11 + $0x1e4] sm:$0xf0] }
 0x229   : > { %v6792_v4 = vor.u32 %v7483_v60, %v6789_v61  ;;  %4132 = vmatpush.bf16.msrb.mxu3 %v6972_v19  ;;  %v1248_v60 = vunpack.c.l.bf16 %v1239_v50  ;;  %v6861_v19 = vld [vmem:[#allocation11 + $0x118] sm:$0xf0] }
 0x22a   : > { %v3695_v31 = vmax.f32 %v3535_v49, 0.0 }
 0x22b   : > { %4125 = vmatpush.bf16.msrb.mxu2 %v6860_v5 }
 0x22c   : > { %4148 = vmatpush.bf16.msra.mxu0 %v6760_v10  ;;  %4161 = vmatpush.bf16.msra.mxu1 %v6824_v59  ;;  %v3699_v38 = vpack.c.bf16 %v3695_v31, %v3695_v31  ;;  %v7500_v10 = vld [vmem:[#allocation11 + $0x104] sm:$0xf0]  ;;  %v6909_v59 = vld [vmem:[#allocation11 + $0x178] sm:$0xf0]  ;;  %v7526_v31 = vld [vmem:[#allocation11 + $0x1d4] sm:$0xf0] }
 0x22d   : > { %v3523_v0 = vpop.f32.mrf.mxu2  ;;  %v3536_v14 = vpop.f32.mrf.mxu3  ;;  %v6852_v39 = vor.u32 %v7500_v10, %v6851_v8  ;;  %v6912_v13 = vor.u32 %v7513_v57, %v6909_v59  ;;  %v6956_v53 = vor.u32 %v7526_v31, %v6955_v30  ;;  %v7503_v10 = vld [vmem:[#allocation11 + $0x124] sm:$0xf]  ;;  %v6939_v57 = vld [vmem:[#allocation11 + $0x1b0] sm:$0xf] }
 0x22e   : > { %4114 = vmatmul.bf16.vlgmr.msrb.gmra.mxu1 %v3699_v38  ;;  %v1222_v12 = vpop.xlane.xlu0 %1221 }
 0x22f   : > { %v8657_v15 = vmax.f32 %v1222_v12, 1e-24  ;;  %4126 = vmatpush.bf16.msrb.mxu2 %v6852_v39  ;;  %v6869_v39 = vld [vmem:[#allocation11 + $0x128] sm:$0xf0]  ;;  %v1377_v12 = vmul.f32 0.70710677, %v1271_v9 }
 0x230   : > { %4149 = vmatpush.bf16.msra.mxu0 %v6752_v20  ;;  %4162 = vmatpush.bf16.msra.mxu1 %v6816_v23  ;;  %v7509_v20 = vld [vmem:[#allocation11 + $0x154] sm:$0xf]  ;;  %v1238_v23 = vld [vmem:[%s8504_s3] sm:$0xff]  ;;  %v6872_v16 = vor.u32 %v7503_v10, %v6869_v39 }
 0x231   : > { %7743 = vrsqrt.f32 %v8657_v15  ;;  %v6896_v24 = vor.u32 %v7509_v20, %v6893_v22  ;;  %v1246_v36 = vunpack.c.l.bf16 %v1238_v23  ;;  %v1247_v41 = vunpack.c.h.bf16 %v1238_v23 }
 0x232   : > { %vm1230_vm4 = vweird.f32 %v8657_v15  ;;  %v8688_v22 = vmul.f32 0.70710677, %v1249_v1 }
 0x233   : > { %4171 = vmatpush.bf16.msra.mxu2 %v6912_v13  ;;  %v8670_v52 = vmul.f32 0.70710677, %v1246_v36 }
 0x234   : > { %4150 = vmatpush.bf16.msra.mxu0 %v6744_v43  ;;  %4163 = vmatpush.bf16.msra.mxu1 %v6808_v46  ;;  %v6964_v43 = vor.u32 %v7528_v34, %v6963_v33  ;;  %v7507_v46 = vld [vmem:[#allocation11 + $0x144] sm:$0xf] }
 0x235   : > { %v6888_v49 = vor.u32 %v7507_v46, %v6885_v47  ;;  %v7520_v46 = vld [vmem:[#allocation11 + $0x1a4] sm:$0xf0] }
 0x236   : > { %4133 = vmatpush.bf16.msrb.mxu3 %v6964_v43  ;;  %v6864_v43 = vor.u32 %v7501_v18, %v6861_v19  ;;  %v6932_v31 = vor.u32 %v7520_v46, %v6931_v44 }
 0x237   : > { %4172 = vmatpush.bf16.msra.mxu2 %v6904_v45  ;;  %v7744_v29 = vpop.eup %7743  ;;  %v8681_v45 = vld [vmem:[%s8504_s3 + $0x10] sm:$0xff] }
 0x238   : > { %4151 = vmatpush.bf16.msra.mxu0 %v6736_v11  ;;  %4164 = vmatpush.bf16.msra.mxu1 %v6800_v54  ;;  %v1225_v35 = vmul.f32 %v7744_v29, %v8657_v15  ;;  %v8672_v11 = vmul.f32 0.70710677, %v1247_v41  ;;  %v1264_v54 = vld [vmem:[%s8511_s30 + $0x10] sm:$0xff]  ;;  %vm1231_vm3 = vweird.f32 %v7744_v29  ;;  %v8686_v15 = vmul.f32 0.70710677, %v1248_v60 }
 0x239   : > { %v1274_v13 = vunpack.c.l.bf16 %v1264_v54  ;;  %vm1232_vm5 = vmor %vm1230_vm4, %vm1231_vm3  ;;  %v1275_v23 = vunpack.c.h.bf16 %v1264_v54  ;;  %v1250_v34 = vunpack.c.l.bf16 %v8681_v45 }
 0x23a   : > { %v1226_v48 = vmul.f32 %v7744_v29, %v1225_v35  ;;  %4134 = vmatpush.bf16.msrb.mxu3 %v6956_v53  ;;  %v1242_v35 = vld [vmem:[%s8504_s3 + $0x20] sm:$0xff] }
 0x23b   : > { %4173 = vmatpush.bf16.msra.mxu2 %v6896_v24  ;;  %v6940_v24 = vor.u32 %v7522_v17, %v6939_v57  ;;  %v8695_v41 = vmul.f32 0.70710677, %v1274_v13  ;;  %v1254_v9 = vunpack.c.l.bf16 %v1242_v35  ;;  %v1255_v30 = vunpack.c.h.bf16 %v1242_v35 }
 0x23c   : > { %4152 = vmatpush.bf16.msra.mxu0 %v6728_v3  ;;  %4165 = vmatpush.bf16.msra.mxu1 %v6792_v4  ;;  %v8663_v32 = vpop.f32.mrf.mxu0  ;;  %v1227_v58 = vmul.f32 0.5, %v1226_v48  ;;  %v7524_v3 = vld [vmem:[#allocation11 + $0x1c4] sm:$0xf0] }
 0x23d   : > { %v6948_v8 = vor.u32 %v7524_v3, %v6947_v2  ;;  %v3548_v36 = vadd.f32 %v8663_v32, %v2395_v51  ;;  %v7499_v32 = vld [vmem:[#allocation11 + $0x104] sm:$0xf]  ;;  %v1381_v51 = vmul.f32 0.70710677, %v1275_v23  ;;  %v1295_v35 = vmul.f32 0.70710677, %v1255_v30 }
 0x23e   : > { %v1228_v61 = vsub.f32 1.5, %v1227_v58  ;;  %v8709_v58 = vld [vmem:[%s8511_s30 + $0x18] sm:$0xff] }
 0x23f   : > { %4153 = vmatmul.bf16.vlgmr.msra.gmra.mxu0 %v8653_v56  ;;  %v8665_v56 = vpop.f32.mrf.mxu1  ;;  %4166 = vmatmul.bf16.vlgmr.msra.gmra.mxu1 %v3699_v38  ;;  %v7505_v38 = vld [vmem:[#allocation11 + $0x134] sm:$0xf]  ;;  %v1277_v13 = vunpack.c.h.bf16 %v8709_v58 }
 0x240   : > { %4174 = vmatpush.bf16.msra.mxu2 %v6888_v49  ;;  %v6880_v14 = vor.u32 %v7505_v38, %v6877_v55  ;;  %v1229_v59 = vmul.f32 %v7744_v29, %v1228_v61  ;;  %4135 = vmatpush.bf16.msrb.mxu3 %v6948_v8  ;;  %v6853_v49 = vld [vmem:[#allocation11 + $0x108] sm:$0xf0] }
 0x241   : > { %v6856_v61 = vor.u32 %v7499_v32, %v6853_v49  ;;  %v1267_v49 = vld [vmem:[%s8511_s30 + $0x28] sm:$0xff] }
 0x242   : > { %v1233_v20 = vsel %vm1232_vm5, %v7744_v29, %v1229_v59  ;;  %v1251_v29 = vunpack.c.h.bf16 %v8681_v45 }
 0x243   : > { %v1235_v25 = vmul.f32 %v1233_v20, %v8589_v28  ;;  %v1237_v33 = vmul.f32 %v1233_v20, %v8603_v7  ;;  %v8699_v47 = vmul.f32 %v1233_v20, %v8593_v40  ;;  %v8702_v28 = vmul.f32 %v1233_v20, %v8595_v42 }
 0x244   : > { %v3549_v4 = vpop.f32.mrf.mxu0  ;;  %4175 = vmatpush.bf16.msra.mxu2 %v6880_v14  ;;  %4136 = vmatpush.bf16.msrb.mxu3 %v6940_v24  ;;  %v3561_v14 = vadd.f32 %v8665_v56, %v3548_v36  ;;  %v1290_v56 = vmul.f32 0.70710677, %v1250_v34  ;;  %v6923_v24 = vld [vmem:[#allocation11 + $0x190] sm:$0xf]  ;;  %v1291_v34 = vmul.f32 0.70710677, %v1251_v29 }
 0x245   : > { %v8677_v0 = vpop.f32.mrf.mxu2  ;;  %v8684_v6 = vpop.f32.mrf.mxu3  ;;  %v8704_v7 = vrot.slane %v1235_v25, 7  ;;  %v8706_v48 = vrot.slane %v1237_v33, 7  ;;  %v1276_v4 = vunpack.c.l.bf16 %v8709_v58  ;;  %v7518_v25 = vld [vmem:[#allocation11 + $0x194] sm:$0xf0] }
 0x246   : > { %v6924_v32 = vor.u32 %v7518_v25, %v6923_v24 }
 0x247   : > { %v3562_v5 = vpop.f32.mrf.mxu1  ;;  %v1306_v40 = vsel %vm1305_vm1, %v8699_v47, %v8704_v7  ;;  %v1395_v42 = vsel %vm1305_vm1, %v8702_v28, %v8706_v48  ;;  %v1308_v53 = vsel %vm1307_vm2, %v8699_v47, %v8704_v7  ;;  %v1398_v54 = vsel %vm1310_vm6, %v8702_v28, %v8706_v48 }
 0x248   : > { %4176 = vmatpush.bf16.msra.mxu2 %v6872_v16  ;;  %v1328_v38 = vperm.slane %v1306_v40, 0  ;;  %v1329_v55 = vperm.slane %v1306_v40, 1  ;;  %v1410_v60 = vperm.slane %v1395_v42, 0  ;;  %v1411_v1 = vperm.slane %v1395_v42, 1  ;;  %4137 = vmatpush.bf16.msrb.mxu3 %v6932_v31 }
 0x249   : > { %v1309_v3 = vrot.slane %v1308_v53, 1  ;;  %v1399_v39 = vrot.slane %v1398_v54, 2  ;;  %v1311_v45 = vsel %vm1310_vm6, %v8699_v47, %v8704_v7  ;;  %v1317_v29 = vsel %vm1316_vm7, %v8699_v47, %v8704_v7 }
 0x24a   : > { %v8726_v5 = vadd.f32 %v1328_v38, %v8670_v52  ;;  %v8729_v8 = vadd.f32 %v1329_v55, %v8672_v11  ;;  %v8732_v10 = vadd.f32 %v1410_v60, %v8675_v26  ;;  %v8734_v57 = vadd.f32 %v1411_v1, %v1377_v12 }
 0x24b   : > { %v1330_v59 = vperm.slane %v1309_v3, 0  ;;  %v3574_v26 = vadd.f32 %v8677_v0, %v3561_v14  ;;  %v1331_v17 = vperm.slane %v1309_v3, 1  ;;  %v1414_v20 = vperm.slane %v1399_v39, 0 }
 0x24c   : > { %4177 = vmatpush.bf16.msra.mxu2 %v6864_v43  ;;  %v1458_v16 = vmul.f32 %v8726_v5, %v8726_v5  ;;  %v1459_v52 = vmul.f32 %v8729_v8, %v8729_v8  ;;  %v1498_v11 = vmul.f32 %v8732_v10, %v8732_v10  ;;  %v1499_v12 = vmul.f32 %v8734_v57, %v8734_v57 }
 0x24d   : > { %v3575_v50 = vpop.f32.mrf.mxu2  ;;  %v3588_v2 = vpop.f32.mrf.mxu3  ;;  %v8750_v19 = vadd.f32 %v1330_v59, %v8686_v15  ;;  %v1415_v23 = vperm.slane %v1399_v39, 1  ;;  %v1294_v0 = vmul.f32 0.70710677, %v1254_v9  ;;  %v8753_v36 = vadd.f32 %v1331_v17, %v8688_v22  ;;  %4138 = vmatpush.bf16.msrb.mxu3 %v6924_v32  ;;  %v1243_v39 = vld [vmem:[%s8504_s3 + $0x28] sm:$0xff] }
 0x24e   : > { %v1474_v18 = vadd.f32 %v1459_v52, %v1458_v16  ;;  %v1514_v33 = vadd.f32 %v1499_v12, %v1498_v11  ;;  %v8756_v43 = vadd.f32 %v1414_v20, %v8695_v41  ;;  %v3587_v15 = vadd.f32 %v8684_v6, %v3574_v26  ;;  %v6915_v11 = vld [vmem:[#allocation11 + $0x180] sm:$0xf]  ;;  %v7516_v26 = vld [vmem:[#allocation11 + $0x184] sm:$0xf0]  ;;  %v7529_v20 = vld [vmem:[#allocation11 + $0x1f4] sm:$0xf] }
 0x24f   : > { %v8758_v44 = vadd.f32 %v1415_v23, %v1381_v51  ;;  %v1312_v46 = vrot.slane %v1311_v45, 2  ;;  %v1460_v22 = vmul.f32 %v8750_v19, %v8750_v19  ;;  %v1461_v41 = vmul.f32 %v8753_v36, %v8753_v36  ;;  %v6973_v23 = vld [vmem:[#allocation11 + $0x1f8] sm:$0xf0]  ;;  %v7527_v32 = vld [vmem:[#allocation11 + $0x1e4] sm:$0xf] }
 0x250   : > { %4178 = vmatpush.bf16.msra.mxu2 %v6856_v61  ;;  %1475 = vadd.xlane.f32.xlu2 %v1474_v18  ;;  %v1502_v50 = vmul.f32 %v8756_v43, %v8756_v43  ;;  %v1318_v51 = vrot.slane %v1317_v29, 4  ;;  %v1400_v31 = vsel %vm1313_vm8, %v8702_v28, %v8706_v48  ;;  %v1280_v42 = vunpack.c.l.bf16 %v1267_v49 }
 0x251   : > { %1515 = vadd.xlane.f32.xlu0 %v1514_v33  ;;  %v1503_v6 = vmul.f32 %v8758_v44, %v8758_v44  ;;  %v1332_v9 = vperm.slane %v1312_v46, 0  ;;  %v1333_v30 = vperm.slane %v1312_v46, 1  ;;  %v1401_v60 = vrot.slane %v1400_v31, 3 }
 0x252   : > { %v1336_v58 = vperm.slane %v1318_v51, 0  ;;  %v1337_v40 = vperm.slane %v1318_v51, 1  ;;  %v1281_v61 = vunpack.c.h.bf16 %v1267_v49  ;;  %v1477_v1 = vadd.f32 %v1461_v41, %v1460_v22  ;;  %v6965_v49 = vld [vmem:[#allocation11 + $0x1e8] sm:$0xf0] }
 0x253   : > { %v8776_v38 = vadd.f32 %v1332_v9, %v1290_v56  ;;  %v8778_v55 = vadd.f32 %v1333_v30, %v1291_v34  ;;  %v1382_v2 = vmul.f32 0.70710677, %v1276_v4  ;;  %v1383_v3 = vmul.f32 0.70710677, %v1277_v13  ;;  %v1245_v4 = vld [vmem:[%s8504_s3 + $0x38] sm:$0xff] }
 0x254   : > { %v1520_v59 = vadd.f32 %v1503_v6, %v1502_v50  ;;  %v8781_v16 = vadd.f32 %v1336_v58, %v1294_v0  ;;  %v8783_v52 = vadd.f32 %v1337_v40, %v1295_v35  ;;  %v1386_v45 = vmul.f32 0.70710677, %v1280_v42 }
 0x255   : > { %v1462_v12 = vmul.f32 %v8776_v38, %v8776_v38  ;;  %v1463_v17 = vmul.f32 %v8778_v55, %v8778_v55  ;;  %v1416_v13 = vperm.slane %v1401_v60, 0  ;;  %v1417_v18 = vperm.slane %v1401_v60, 1 }
 0x256   : > { %9840 = vst [vmem:[#allocation34_spill] sm:$0xff] %v8781_v16  ;;  %v1256_v24 = vunpack.c.l.bf16 %v1243_v39  ;;  %v1257_v25 = vunpack.c.h.bf16 %v1243_v39  ;;  %v1387_v34 = vmul.f32 0.70710677, %v1281_v61  ;;  %v1404_v0 = vsel %vm1319_vm9, %v8702_v28, %v8706_v48 }
 0x257   : > { %9841 = vst [vmem:[#allocation35_spill] sm:$0xff] %v8783_v52  ;;  %v6916_v35 = vor.u32 %v7516_v26, %v6915_v11  ;;  %v1467_v46 = vmul.f32 %v8783_v52, %v8783_v52  ;;  %v1405_v29 = vrot.slane %v1404_v0, 5  ;;  %v1260_v22 = vunpack.c.l.bf16 %v1245_v4  ;;  %v7525_v26 = vld [vmem:[#allocation11 + $0x1d4] sm:$0xf] }
 0x258   : > { %1478 = vadd.xlane.f32.xlu2 %v1477_v1  ;;  %v1480_v6 = vadd.f32 %v1463_v17, %v1462_v12  ;;  %v6976_v9 = vor.u32 %v7529_v20, %v6973_v23  ;;  %v1320_v30 = vsel %vm1319_vm9, %v8699_v47, %v8704_v7  ;;  %v8806_v40 = vadd.f32 %v1416_v13, %v1382_v2 }
 0x259   : > { %1521 = vadd.xlane.f32.xlu0 %v1520_v59  ;;  %4139 = vmatpush.bf16.msrb.mxu3 %v6916_v35  ;;  %v8808_v42 = vadd.f32 %v1417_v18, %v1383_v3  ;;  %v6968_v60 = vor.u32 %v7527_v32, %v6965_v49  ;;  %v1321_v61 = vrot.slane %v1320_v30, 5  ;;  %v1296_v2 = vmul.f32 0.70710677, %v1256_v24  ;;  %v1268_v24 = vld [vmem:[%s8511_s30 + $0x30] sm:$0xff]  ;;  %v7523_v35 = vld [vmem:[#allocation11 + $0x1c4] sm:$0xf] }
 0x25a   : > { %v1297_v11 = vmul.f32 0.70710677, %v1257_v25  ;;  %v1326_v3 = vsel %vm1325_vm10, %v8704_v7, %v8699_v47  ;;  %v1300_v18 = vmul.f32 0.70710677, %v1260_v22  ;;  %v1282_v22 = vunpack.c.l.bf16 %v1268_v24 }
 0x25b   : > { %v1338_v12 = vperm.slane %v1321_v61, 0  ;;  %v1339_v17 = vperm.slane %v1321_v61, 1  ;;  %v1505_v13 = vmul.f32 %v8808_v42, %v8808_v42  ;;  %v7521_v61 = vld [vmem:[#allocation11 + $0x1b4] sm:$0xf] }
 0x25c   : > { %v3599_v53 = vpop.f32.mrf.mxu0  ;;  %v3612_v54 = vpop.f32.mrf.mxu1 }
 0x25d   : > { %v3600_v14 = vadd.f32 %v3599_v53, %v3587_v15  ;;  %v1466_v15 = vmul.f32 %v8781_v16, %v8781_v16  ;;  %v1420_v53 = vperm.slane %v1405_v29, 0  ;;  %4184 = vmatpush.bf16.msra.mxu3 %v6976_v9  ;;  %v8827_v32 = vadd.f32 %v1338_v12, %v1296_v2 }
 0x25e   : > { %v8829_v49 = vadd.f32 %v1339_v17, %v1297_v11 }
 0x25f   : > { %v3613_v56 = vadd.f32 %v3612_v54, %v3600_v14  ;;  %v1421_v54 = vperm.slane %v1405_v29, 1  ;;  %v1261_v14 = vunpack.c.h.bf16 %v1245_v4  ;;  %v1486_v1 = vadd.f32 %v1467_v46, %v1466_v15  ;;  %v6949_v15 = vld [vmem:[#allocation11 + $0x1c8] sm:$0xf0] }
 0x260   : > { %v8811_v39 = vadd.f32 %v1420_v53, %v1386_v45  ;;  %1481 = vadd.xlane.f32.xlu2 %v1480_v6  ;;  %v1327_v4 = vrot.slane %v1326_v3, 7  ;;  %v6957_v45 = vld [vmem:[#allocation11 + $0x1d8] sm:$0xf0]  ;;  %v1406_v6 = vsel %vm1322_vm11, %v8702_v28, %v8706_v48  ;;  %v6952_v30 = vor.u32 %v7523_v35, %v6949_v15  ;;  %v7517_v35 = vld [vmem:[#allocation11 + $0x194] sm:$0xf] }
 0x261   : > { %v3696_v33 = vmax.f32 %v3613_v56, 0.0  ;;  %v8813_v59 = vadd.f32 %v1421_v54, %v1387_v34  ;;  %1487 = vadd.xlane.f32.xlu0 %v1486_v1  ;;  %v1504_v56 = vmul.f32 %v8806_v40, %v8806_v40  ;;  %4185 = vmatpush.bf16.msra.mxu3 %v6968_v60  ;;  %v1301_v20 = vmul.f32 0.70710677, %v1261_v14  ;;  %v6941_v14 = vld [vmem:[#allocation11 + $0x1b8] sm:$0xf0] }
 0x262   : > { %v6960_v23 = vor.u32 %v7525_v26, %v6957_v45  ;;  %v1508_v25 = vmul.f32 %v8811_v39, %v8811_v39  ;;  %v1342_v34 = vperm.slane %v1327_v4, 0  ;;  %v1343_v0 = vperm.slane %v1327_v4, 1  ;;  %v6925_v15 = vld [vmem:[#allocation11 + $0x198] sm:$0xf0] }
 0x263   : > { %v8797_v41 = vpack.c.bf16 %v3696_v33, %v3696_v33  ;;  %v1509_v33 = vmul.f32 %v8813_v59, %v8813_v59  ;;  %v1523_v9 = vadd.f32 %v1505_v13, %v1504_v56  ;;  %v2396_v1 = vperm.slane %v8639_v21, 3  ;;  %v7519_v13 = vld [vmem:[#allocation11 + $0x1a4] sm:$0xf] }
 0x264   : > { %v3601_v31 = vpop.f32.mrf.mxu0  ;;  %v3614_v58 = vpop.f32.mrf.mxu1  ;;  %v8834_v54 = vadd.f32 %v1342_v34, %v1300_v18  ;;  %v8836_v60 = vadd.f32 %v1343_v0, %v1301_v20  ;;  %v1468_v2 = vmul.f32 %v8827_v32, %v8827_v32  ;;  %v1469_v11 = vmul.f32 %v8829_v49, %v8829_v49  ;;  %v6933_v18 = vld [vmem:[#allocation11 + $0x1a8] sm:$0xf0] }
 0x265   : > { %v8799_v50 = vpop.f32.mrf.mxu2  ;;  %v8801_v51 = vpop.f32.mrf.mxu3  ;;  %4127 = vmatmul.bf16.vlgmr.msrb.gmra.mxu2 %v8797_v41  ;;  %4186 = vmatpush.bf16.msra.mxu3 %v6960_v23  ;;  %v1283_v31 = vunpack.c.h.bf16 %v1268_v24  ;;  %v1407_v58 = vrot.slane %v1406_v6, 6  ;;  %v1529_v53 = vadd.f32 %v1509_v33, %v1508_v25  ;;  %v1388_v3 = vmul.f32 0.70710677, %v1282_v22 }
 0x266   : > { %9842 = vst [vmem:[#allocation36_spill] sm:$0xff] %v8834_v54  ;;  %v8846_v26 = vsel %vm1307_vm2, %v8702_v28, %v8706_v48  ;;  %v6944_v4 = vor.u32 %v7521_v61, %v6941_v14  ;;  %v1472_v21 = vmul.f32 %v8834_v54, %v8834_v54  ;;  %v1473_v45 = vmul.f32 %v8836_v60, %v8836_v60 }
 0x267   : > { %9843 = vst [vmem:[#allocation37_spill] sm:$0xff] %v8836_v60  ;;  %v1389_v56 = vmul.f32 0.70710677, %v1283_v31  ;;  %v1422_v12 = vperm.slane %v1407_v58, 0  ;;  %v1423_v17 = vperm.slane %v1407_v58, 1  ;;  %v8855_v20 = vsel %vm1313_vm8, %v8699_v47, %v8704_v7 }
 0x268   : > { %1524 = vadd.xlane.f32.xlu2 %v1523_v9  ;;  %v3626_v23 = vadd.f32 %v8799_v50, %v2396_v1  ;;  %v1489_v24 = vadd.f32 %v1469_v11, %v1468_v2  ;;  %v6936_v34 = vor.u32 %v7519_v13, %v6933_v18  ;;  %v1495_v0 = vadd.f32 %v1473_v45, %v1472_v21  ;;  %v7515_v31 = vld [vmem:[#allocation11 + $0x184] sm:$0xf]  ;;  %v6917_v58 = vld [vmem:[#allocation11 + $0x188] sm:$0xf0] }
 0x269   : > { %1530 = vadd.xlane.f32.xlu0 %v1529_v53  ;;  %4187 = vmatpush.bf16.msra.mxu3 %v6952_v30  ;;  %v8859_v25 = vadd.f32 %v1422_v12, %v1388_v3  ;;  %v8861_v33 = vadd.f32 %v1423_v17, %v1389_v56  ;;  %v6928_v9 = vor.u32 %v7517_v35, %v6925_v15 }
 0x26a   : > { %v3639_v50 = vadd.f32 %v8801_v51, %v3626_v23  ;;  %v8876_v30 = vsel %vm1322_vm11, %v8699_v47, %v8704_v7  ;;  %v8881_v51 = vsel %vm1325_vm10, %v8706_v48, %v8702_v28  ;;  %v6920_v14 = vor.u32 %v7515_v31, %v6917_v58 }
 0x26b   : > { %9844 = vst [vmem:[#allocation38_spill] sm:$0xff] %v8859_v25  ;;  %v1510_v22 = vmul.f32 %v8859_v25, %v8859_v25  ;;  %v1511_v6 = vmul.f32 %v8861_v33, %v8861_v33 }
 0x26c   : > { %9845 = vst [vmem:[#allocation39_spill] sm:$0xff] %v8861_v33 }
 0x26d   : > { %v3627_v46 = vpop.f32.mrf.mxu2  ;;  %v3640_v29 = vpop.f32.mrf.mxu3  ;;  %4188 = vmatpush.bf16.msra.mxu3 %v6944_v4  ;;  %v1532_v61 = vadd.f32 %v1511_v6, %v1510_v22 }
 0x26e   : > { %v8866_v46 = vsel %vm1316_vm7, %v8702_v28, %v8706_v48  ;;  %v3767_v48 = vld [vmem:[#allocation19 + $0x3] ss:$8 sm:$0x3] }
 0x26f   : > { %v3769_v13 = vperm.slane %v3767_v48, 0  ;;  %v3770_v35 = vperm.slane %v3767_v48, 1 }
 0x270   : > { %1490 = vadd.xlane.f32.xlu2 %v1489_v24 }
 0x271   : > { %1496 = vadd.xlane.f32.xlu0 %v1495_v0  ;;  %4189 = vmatpush.bf16.msra.mxu3 %v6936_v34 }
 0x275   : > { %4179 = vmatmul.bf16.vlgmr.msra.gmra.mxu2 %v8797_v41  ;;  %4190 = vmatpush.bf16.msra.mxu3 %v6928_v9 }
 0x278   : > { %1533 = vadd.xlane.f32.xlu2 %v1532_v61 }
 0x279   : > { %4191 = vmatpush.bf16.msra.mxu3 %v6920_v14  ;;  %v1263_v14 = vld [vmem:[%s8511_s30 + $0x8] sm:$0xff] }
 0x27c   : > { %v3651_v29 = vpop.f32.mrf.mxu0  ;;  %v3664_v41 = vpop.f32.mrf.mxu1 }
 0x27d   : > { %v3652_v53 = vadd.f32 %v3651_v29, %v3639_v50 }
 0x27f   : > { %v3665_v1 = vadd.f32 %v3664_v41, %v3652_v53 }
 0x284   : > { %v3677_v2 = vpop.f32.mrf.mxu2  ;;  %v3690_v11 = vpop.f32.mrf.mxu3 }
 0x285   : > { %v3678_v3 = vadd.f32 %v3677_v2, %v3665_v1  ;;  %v3653_v56 = vpop.f32.mrf.mxu0  ;;  %v3666_v12 = vpop.f32.mrf.mxu1  ;;  %v1272_v1 = vunpack.c.l.bf16 %v1263_v14 }
 0x287   : > { %v3691_v47 = vadd.f32 %v3690_v11, %v3678_v3  ;;  %v1273_v11 = vunpack.c.h.bf16 %v1263_v14  ;;  %v1397_v3 = vrot.slane %v8846_v26, 1  ;;  %v1403_v14 = vrot.slane %v8866_v46, 4 }
 0x288   : > { %v1324_v46 = vrot.slane %v8876_v30, 6  ;;  %v1409_v30 = vrot.slane %v8881_v51, 7 }
 0x289   : > { %v3697_v7 = vmax.f32 %v3691_v47, 0.0 }
 0x28b   : > { %v3701_v17 = vpack.c.bf16 %v3697_v7, %v3697_v7  ;;  %v1378_v7 = vmul.f32 0.70710677, %v1272_v1 }
 0x28c   : > { %v3679_v4 = vpop.f32.mrf.mxu2  ;;  %v3692_v21 = vpop.f32.mrf.mxu3 }
 0x28d   : > { %4140 = vmatmul.bf16.vlgmr.msrb.gmra.mxu3 %v3701_v17  ;;  %v1379_v4 = vmul.f32 0.70710677, %v1273_v11  ;;  %v1412_v21 = vperm.slane %v1397_v3, 0 }
 0x29c   : > { %v4102_v45 = vpop.f32.mrf.mxu0 }
 0x29d   : > { %4192 = vmatmul.bf16.vlgmr.msra.gmra.mxu3 %v3701_v17  ;;  %v4103_v18 = vadd.f32 %v4102_v45, %v3769_v13  ;;  %v1413_v45 = vperm.slane %v1397_v3, 1 }
 0x2a4   : > { %v4104_v28 = vpop.f32.mrf.mxu0 }
 0x2a5   : > { %v1241_v28 = vld [vmem:[%s8504_s3 + $0x18] sm:$0xff] }
 0x2a6   : > { %v1253_v26 = vunpack.c.h.bf16 %v1241_v28 }
 0x2ab   : > { %v4115_v23 = vpop.f32.mrf.mxu1 }
 0x2ac   : > { %v4116_v24 = vadd.f32 %v4115_v23, %v4103_v18  ;;  %v1252_v18 = vunpack.c.l.bf16 %v1241_v28 }
 0x2b3   : > { %v4117_v0 = vpop.f32.mrf.mxu1 }
 0x2b4   : > { %v1315_v0 = vrot.slane %v8855_v20, 3 }
 0x2bc   : > { %v4154_v34 = vpop.f32.mrf.mxu0  ;;  %v4167_v29 = vpop.f32.mrf.mxu1 }
 0x2bd   : > { %v4155_v15 = vadd.f32 %v4154_v34, %v3770_v35  ;;  %v8896_v34 = vadd.f32 %v1413_v45, %v1379_v4 }
 0x2bf   : > { %v4168_v41 = vadd.f32 %v4167_v29, %v4155_v15  ;;  %v1292_v15 = vmul.f32 0.70710677, %v1252_v18 }
 0x2c4   : > { %v4156_v50 = vpop.f32.mrf.mxu0  ;;  %v4169_v22 = vpop.f32.mrf.mxu1 }
 0x2c5   : > { %v1293_v50 = vmul.f32 0.70710677, %v1253_v26  ;;  %v1334_v22 = vperm.slane %v1315_v0, 0 }
 0x2e8   : > { %v4128_v6 = vpop.f32.mrf.mxu2 }
 0x2e9   : > { %v4129_v2 = vadd.f32 %v4128_v6, %v4116_v24  ;;  %v8894_v24 = vadd.f32 %v1412_v21, %v1378_v7  ;;  %v1335_v6 = vperm.slane %v1315_v0, 1  ;;  %v1244_v7 = vld [vmem:[%s8504_s3 + $0x30] sm:$0xff]  ;;  %v1340_v0 = vperm.slane %v1324_v46, 0  ;;  %s8144_s3 = scalar_lea.hbm %s9751_s11, 16 }
 0x2ea   : > { %v1258_v4 = vunpack.c.l.bf16 %v1244_v7  ;;  %v1259_v21 = vunpack.c.h.bf16 %v1244_v7  ;;  %p8146_p3 = scmp.lt.s32.totalorder %s8144_s3, %s8140_s19 }
 0x2eb   : > { %v1500_v29 = vmul.f32 %v8894_v24, %v8894_v24  ;;  %v8906_v20 = vadd.f32 %v1335_v6, %v1293_v50 }
 0x2ec   : > { %v1299_v18 = vmul.f32 0.70710677, %v1259_v21  ;;  %p8147_p7 = por %p8146_p3, %p8145_p13 }
 0x2ed   : > { %v1465_v3 = vmul.f32 %v8906_v20, %v8906_v20 }
 0x2ee   : > { %p8148_p9 = pnand %p8147_p7, %p8143_p11 }
 0x2f0   : > { %v4130_v9 = vpop.f32.mrf.mxu2 }
 0x2f1   : > { %v1266_v9 = vld [vmem:[%s8511_s30 + $0x20] sm:$0xff] }
 0x2f8   : > { %v4180_v31 = vpop.f32.mrf.mxu2 }
 0x2f9   : > { %v4181_v56 = vadd.f32 %v4180_v31, %v4168_v41  ;;  %v1501_v41 = vmul.f32 %v8896_v34, %v8896_v34  ;;  %v1278_v31 = vunpack.c.l.bf16 %v1266_v9 }
 0x2fb   : > { %v1384_v1 = vmul.f32 0.70710677, %v1278_v31 }
 0x300   : > { %v4182_v58 = vpop.f32.mrf.mxu2 }
 0x301   : > { %v1279_v58 = vunpack.c.h.bf16 %v1266_v9  ;;  %v1476_v9 = vpop.xlane.xlu2 %1475 }
 0x310   : > { %v4141_v53 = vpop.f32.mrf.mxu3 }
 0x311   : > { %v8885_v12 = vadd.f32 %v4141_v53, %v4129_v2  ;;  %v1517_v53 = vadd.f32 %v1501_v41, %v1500_v29  ;;  %v1385_v2 = vmul.f32 0.70710677, %v1279_v58 }
 0x313   : > { %v4197_v48 = vmul.f32 %v8885_v12, %v8885_v12 }
 0x318   : > { %v4143_v61 = vpop.f32.mrf.mxu3 }
 0x319   : > { %v8904_v61 = vadd.f32 %v1334_v22, %v1292_v15  ;;  %v1269_v15 = vld [vmem:[%s8511_s30 + $0x38] sm:$0xff] }
 0x31a   : > { %v1284_v50 = vunpack.c.l.bf16 %v1269_v15  ;;  %v1285_v29 = vunpack.c.h.bf16 %v1269_v15 }
 0x31b   : > { %v1464_v11 = vmul.f32 %v8904_v61, %v8904_v61 }
 0x31c   : > { %v1390_v31 = vmul.f32 0.70710677, %v1284_v50  ;;  %v1391_v58 = vmul.f32 0.70710677, %v1285_v29 }
 0x31d   : > { %v1483_v45 = vadd.f32 %v1465_v3, %v1464_v11  ;;  %v2031_v11 = vpop.xlane.xlu0 %2030 }
 0x320   : > { %v4193_v47 = vpop.f32.mrf.mxu3 }
 0x321   : > { %v8887_v17 = vadd.f32 %v4193_v47, %v4181_v56  ;;  %v1418_v56 = vperm.slane %v1403_v14, 0  ;;  %v1419_v47 = vperm.slane %v1403_v14, 1 }
 0x323   : > { %v4198_v13 = vmul.f32 %v8887_v17, %v8887_v17  ;;  %v8914_v28 = vadd.f32 %v1418_v56, %v1384_v1  ;;  %v1424_v1 = vperm.slane %v1409_v30, 0 }
 0x325   : > { %v4199_v23 = vadd.f32 %v4198_v13, %v4197_v48  ;;  %9846 = vst [vmem:[#allocation40_spill] sm:$0xff] %v8914_v28  ;;  %v8916_v48 = vadd.f32 %v1419_v47, %v1385_v2  ;;  %v1298_v13 = vmul.f32 0.70710677, %v1258_v4  ;;  %v1506_v26 = vmul.f32 %v8914_v28, %v8914_v28  ;;  %v8941_v4 = vpop.xlane.xlu2 %1478  ;;  %v1516_v21 = vpop.xlane.xlu0 %1515 }
 0x326   : > { %v1425_v2 = vperm.slane %v1409_v30, 1  ;;  %v8933_v56 = vadd.f32 %v1424_v1, %v1390_v31  ;;  %v1538_v30 = vadd.f32 %v1516_v21, %v1476_v9 }
 0x327   : > { %4200 = vadd.xlane.f32.xlu1 %v4199_v23  ;;  %9847 = vst [vmem:[#allocation41_spill] sm:$0xff] %v8916_v48  ;;  %v1507_v23 = vmul.f32 %v8916_v48, %v8916_v48  ;;  %v8924_v22 = vadd.f32 %v1340_v0, %v1298_v13 }
 0x328   : > { %v4195_v35 = vpop.f32.mrf.mxu3  ;;  %9850 = vst [vmem:[#allocation44_spill] sm:$0xff] %v8933_v56  ;;  %v8935_v47 = vadd.f32 %v1425_v2, %v1391_v58  ;;  %v1512_v51 = vmul.f32 %v8933_v56, %v8933_v56 }
 0x329   : > { %v1341_v35 = vperm.slane %v1324_v46, 1  ;;  %v1526_v41 = vadd.f32 %v1507_v23, %v1506_v26  ;;  %9848 = vst [vmem:[#allocation42_spill] sm:$0xff] %v8924_v22  ;;  %v2179_v46 = vpop.xlane.xlu1 %2178  ;;  %v2032_v26 = vmax.f32 %v2031_v11, 1e-24 }
 0x32a   : > { %9851 = vst [vmem:[#allocation45_spill] sm:$0xff] %v8935_v47  ;;  %v1513_v7 = vmul.f32 %v8935_v47, %v8935_v47  ;;  %v2180_v13 = vmax.f32 %v2179_v46, 1e-24 }
 0x32b   : > { %v8926_v6 = vadd.f32 %v1341_v35, %v1299_v18  ;;  %vm2039_vm14 = vweird.f32 %v2032_v26 }
 0x32c   : > { %7745 = vrsqrt.f32 %v2180_v13  ;;  %vm2187_vm12 = vweird.f32 %v2180_v13 }
 0x32d   : > { %9849 = vst [vmem:[#allocation43_spill] sm:$0xff] %v8926_v6  ;;  %v1471_v14 = vmul.f32 %v8926_v6, %v8926_v6  ;;  %v1482_v18 = vpop.xlane.xlu2 %1481  ;;  %v1522_v23 = vpop.xlane.xlu0 %1521  ;;  %7747 = vrsqrt.f32 %v2032_v26 }
 0x32e   : > { %v1540_v1 = vadd.f32 %v1522_v23, %v1482_v18 }
 0x32f   : > { %1518 = vadd.xlane.f32.xlu1 %v1517_v53  ;;  %v1470_v53 = vmul.f32 %v8924_v22, %v8924_v22 }
 0x331   : > { %v1492_v3 = vadd.f32 %v1471_v14, %v1470_v53  ;;  %v1546_v53 = vmax.f32 %v1538_v30, 1e-24 }
 0x332   : > { %v7746_v0 = vpop.eup %7745 }
 0x333   : > { %v7748_v15 = vpop.eup %7747  ;;  %v2182_v50 = vmul.f32 %v7746_v0, %v2180_v13  ;;  %7749 = vrsqrt.f32 %v1546_v53  ;;  %vm2188_vm13 = vweird.f32 %v7746_v0 }
 0x334   : > { %vm2040_vm15 = vweird.f32 %v7748_v15  ;;  %vm2189_vm3 = vmor %vm2187_vm12, %vm2188_vm13  ;;  %vm1560_vm12 = vweird.f32 %v1546_v53 }
 0x335   : > { %v8943_v35 = vpop.xlane.xlu2 %1524  ;;  %v8945_v29 = vpop.xlane.xlu0 %1487  ;;  %v2183_v31 = vmul.f32 %v7746_v0, %v2182_v50  ;;  %vm2041_vm4 = vmor %vm2039_vm14, %vm2040_vm15 }
 0x337   : > { %1484 = vadd.xlane.f32.xlu1 %v1483_v45  ;;  %v1535_v45 = vadd.f32 %v1513_v7, %v1512_v51  ;;  %v2184_v14 = vmul.f32 0.5, %v2183_v31 }
 0x339   : > { %v2185_v7 = vsub.f32 1.5, %v2184_v14  ;;  %v7750_v56 = vpop.eup %7749 }
 0x33a   : > { %v1555_v18 = vmul.f32 %v7750_v56, %v1546_v53  ;;  %vm1561_vm5 = vweird.f32 %v7750_v56 }
 0x33b   : > { %v2186_v9 = vmul.f32 %v7746_v0, %v2185_v7  ;;  %vm1562_vm13 = vmor %vm1560_vm12, %vm1561_vm5 }
 0x33c   : > { %v1556_v13 = vmul.f32 %v7750_v56, %v1555_v18 }
 0x33d   : > { %v1491_v2 = vpop.xlane.xlu2 %1490  ;;  %v1531_v11 = vpop.xlane.xlu0 %1530  ;;  %v2190_v23 = vsel %vm2189_vm3, %v7746_v0, %v2186_v9 }
 0x33e   : > { %v1543_v51 = vadd.f32 %v1531_v11, %v1491_v2  ;;  %v2192_v30 = vmul.f32 %v2190_v23, %v8621_v27 }
 0x33f   : > { %1527 = vadd.xlane.f32.xlu1 %v1526_v41  ;;  %v2034_v41 = vmul.f32 %v7748_v15, %v2032_v26 }
 0x340   : > { %v8947_v47 = vmax.f32 %v1543_v51, 1e-24 }
 0x341   : > { %v2035_v58 = vmul.f32 %v7748_v15, %v2034_v41 }
 0x347   : > { %1493 = vadd.xlane.f32.xlu1 %v1492_v3  ;;  %v2036_v3 = vmul.f32 0.5, %v2035_v58 }
 0x349   : > { %v2037_v46 = vsub.f32 1.5, %v2036_v3  ;;  %v2191_v3 = vmul.f32 %v2190_v23, %v8619_v37 }
 0x34b   : > { %v2038_v21 = vmul.f32 %v7748_v15, %v2037_v46 }
 0x34d   : > { %v2042_v41 = vsel %vm2041_vm4, %v7748_v15, %v2038_v21 }
 0x34e   : > { %v2044_v58 = vmul.f32 %v2042_v41, %v8613_v63  ;;  %v2043_v51 = vmul.f32 %v2042_v41, %v8611_v62 }
 0x34f   : > { %1536 = vadd.xlane.f32.xlu1 %v1535_v45  ;;  %v1548_v45 = vmax.f32 %v1540_v1, 1e-24  ;;  %v1557_v1 = vmul.f32 0.5, %v1556_v13 }
 0x350   : > { %v2194_v26 = vadd.f32 %v2192_v30, %v2044_v58  ;;  %v2193_v15 = vadd.f32 %v2191_v3, %v2043_v51  ;;  %v8228_v58 = vmov 8.0  }
 0x351   : > { %7751 = vrsqrt.f32 %v1548_v45  ;;  %v1558_v0 = vsub.f32 1.5, %v1557_v1  ;;  %vm1580_vm15 = vweird.f32 %v1548_v45 }
 0x352   : > { %7753 = vrsqrt.f32 %v8947_v47  ;;  %v4217_v7 = vrot.slane %v2194_v26, 7 }
 0x353   : > { %v1559_v27 = vmul.f32 %v7750_v56, %v1558_v0  ;;  %7755 = vrcp.f32 %v8228_v58 }
 0x354   : > { %v4221_v21 = vsel %vm1310_vm6, %v2193_v15, %v4217_v7  ;;  %v4219_v13 = vsel %vm1307_vm2, %v2193_v15, %v4217_v7  ;;  %v8961_v1 = vsel %vm1305_vm1, %v2193_v15, %v4217_v7  ;;  %v4227_v53 = vsel %vm1319_vm9, %v2193_v15, %v4217_v7 }
 0x355   : > { %v4222_v30 = vrot.slane %v4221_v21, 2  ;;  %v1563_v37 = vsel %vm1562_vm13, %v7750_v56, %v1559_v27  ;;  %v4220_v41 = vrot.slane %v4219_v13, 1  ;;  %v4223_v56 = vsel %vm1313_vm8, %v2193_v15, %v4217_v7 }
 0x356   : > { %v1769_v3 = vmul.f32 %v1563_v37, %v8732_v10  ;;  %vm1610_vm1 = vweird.f32 %v8947_v47 }
 0x357   : > { %v7752_v50 = vpop.eup %7751  ;;  %v8958_v26 = vperm.slane %v4222_v30, 0  ;;  %v8974_v27 = vperm.slane %v4220_v41, 1 }
 0x358   : > { %v7754_v31 = vpop.eup %7753  ;;  %v1575_v14 = vmul.f32 %v7752_v50, %v1548_v45  ;;  %vm1581_vm14 = vweird.f32 %v7752_v50 }
 0x359   : > { %v1605_v2 = vmul.f32 %v7754_v31, %v8947_v47  ;;  %vm1582_vm3 = vmor %vm1580_vm15, %vm1581_vm14  ;;  %vm1611_vm4 = vweird.f32 %v7754_v31  ;;  %v8977_v10 = vpop.eup %7755 }
 0x35a   : > { %v1576_v11 = vmul.f32 %v7752_v50, %v1575_v14  ;;  %v1634_v14 = vmul.f32 %v1563_v37, %v8726_v5  ;;  %v1635_v5 = vmul.f32 %v1563_v37, %v8729_v8  ;;  %vm1612_vm5 = vmor %vm1610_vm1, %vm1611_vm4  ;;  %v4224_v8 = vrot.slane %v4223_v56, 3 }
 0x35b   : > { %v1606_v46 = vmul.f32 %v7754_v31, %v1605_v2  ;;  %v4225_v2 = vsel %vm1316_vm7, %v2193_v15, %v4217_v7 }
 0x35c   : > { %v1577_v9 = vmul.f32 0.5, %v1576_v11  ;;  %v1770_v11 = vmul.f32 %v1563_v37, %v8734_v57  ;;  %v1650_v45 = vrot.slane %v1634_v14, 4  ;;  %v9003_v25 = vperm.slane %v4224_v8, 0 }
 0x35d   : > { %v1607_v63 = vmul.f32 0.5, %v1606_v46  ;;  %v8969_v46 = vperm.slane %v4222_v30, 1 }
 0x35e   : > { %v1578_v18 = vsub.f32 1.5, %v1577_v9  ;;  %v8971_v9 = vperm.slane %v4220_v41, 0  ;;  %v1791_v30 = vrot.slane %v1770_v11, 4  ;;  %v1747_v41 = vmul.f32 8.0, %v8977_v10  ;;  %9852 = vst [vmem:[#allocation46_spill] sm:$0xff] %v9003_v25 }
 0x35f   : > { %v1608_v23 = vsub.f32 1.5, %v1607_v63  ;;  %v4228_v63 = vrot.slane %v4227_v53, 5  ;;  %v1651_v21 = vadd.f32 %v1650_v45, %v1634_v14 }
 0x360   : > { %v1579_v62 = vmul.f32 %v7752_v50, %v1578_v18  ;;  %v4226_v18 = vrot.slane %v4225_v2, 4  ;;  %v8989_v2 = vsel %vm1322_vm11, %v2193_v15, %v4217_v7 }
 0x361   : > { %v1609_v51 = vmul.f32 %v7754_v31, %v1608_v23  ;;  %v1656_v23 = vrot.slane %v1635_v5, 4 }
 0x362   : > { %v1583_v0 = vsel %vm1582_vm3, %v7752_v50, %v1579_v62  ;;  %v1785_v50 = vrot.slane %v1769_v3, 4  ;;  %v8984_v62 = vsel %vm1325_vm10, %v4217_v7, %v2193_v15  ;;  %v8997_v60 = vperm.slane %v4226_v18, 0 }
 0x363   : > { %v1638_v13 = vmul.f32 %v1583_v0, %v8776_v38  ;;  %v1613_v37 = vsel %vm1612_vm5, %v7754_v31, %v1609_v51  ;;  %v1773_v47 = vmul.f32 %v1583_v0, %v8756_v43  ;;  %v1774_v58 = vmul.f32 %v1583_v0, %v8758_v44 }
 0x364   : > { %v1639_v53 = vmul.f32 %v1583_v0, %v8778_v55  ;;  %v1779_v56 = vmul.f32 %v1613_v37, %v8811_v39  ;;  %v1780_v38 = vmul.f32 %v1613_v37, %v8813_v59  ;;  %v8993_v31 = vperm.slane %v4228_v63, 0 }
 0x365   : > { %v8995_v43 = vperm.slane %v4228_v63, 1  ;;  %v1786_v44 = vadd.f32 %v1785_v50, %v1769_v3  ;;  %v1792_v51 = vadd.f32 %v1791_v30, %v1770_v11  ;;  %v1674_v57 = vrot.slane %v1638_v13, 4 }
 0x366   : > { %v1657_v54 = vadd.f32 %v1656_v23, %v1635_v5  ;;  %v1809_v14 = vrot.slane %v1773_v47, 4  ;;  %v1815_v45 = vrot.slane %v1774_v58, 4  ;;  %v8999_v55 = vperm.slane %v4226_v18, 1 }
 0x367   : > { %v1748_v7 = vsub.f32 1.0, %v1747_v41  ;;  %v1652_v15 = vrot.slane %v1651_v21, 2  ;;  %v1680_v0 = vrot.slane %v1639_v53, 4  ;;  %v1644_v39 = vmul.f32 %v1613_v37, %v8827_v32 }
 0x368   : > { %v1645_v59 = vmul.f32 %v1613_v37, %v8829_v49  ;;  %v1845_v33 = vrot.slane %v1779_v56, 4  ;;  %v1851_v63 = vrot.slane %v1780_v38, 4  ;;  %v1787_v3 = vrot.slane %v1786_v44, 2 }
 0x369   : > { %v1793_v11 = vrot.slane %v1792_v51, 2  ;;  %v1675_v50 = vadd.f32 %v1674_v57, %v1638_v13  ;;  %v9005_v30 = vperm.slane %v4224_v8, 1  ;;  %v1658_v5 = vrot.slane %v1657_v54, 2 }
 0x36a   : > { %v1810_v23 = vadd.f32 %v1809_v14, %v1773_v47  ;;  %v1816_v18 = vadd.f32 %v1815_v45, %v1774_v58  ;;  %v4232_v41 = vrot.slane %v8984_v62, 7  ;;  %v1749_v6 = vmul.f32 %v8977_v10, %v1748_v7 }
 0x36b   : > { %v1653_v22 = vadd.f32 %v1652_v15, %v1651_v21  ;;  %v1681_v32 = vadd.f32 %v1680_v0, %v1639_v53  ;;  %v1710_v48 = vrot.slane %v1644_v39, 4  ;;  %v1716_v37 = vrot.slane %v1645_v59, 4 }
 0x36c   : > { %v1846_v28 = vadd.f32 %v1845_v33, %v1779_v56  ;;  %v1852_v52 = vadd.f32 %v1851_v63, %v1780_v38  ;;  %v1788_v25 = vadd.f32 %v1787_v3, %v1786_v44  ;;  %v1794_v57 = vadd.f32 %v1793_v11, %v1792_v51 }
 0x36d   : > { %v1676_v8 = vrot.slane %v1675_v50, 2  ;;  %v4230_v13 = vrot.slane %v8989_v2, 6  ;;  %v1659_v47 = vadd.f32 %v1658_v5, %v1657_v54  ;;  %v1811_v58 = vrot.slane %v1810_v23, 2 }
 0x36e   : > { %v1817_v14 = vrot.slane %v1816_v18, 2  ;;  %v1750_v21 = vadd.f32 %v8977_v10, %v1749_v6  ;;  %v1654_v62 = vrot.slane %v1653_v22, 1  ;;  %v1682_v53 = vrot.slane %v1681_v32, 2 }
 0x36f   : > { %v1711_v45 = vadd.f32 %v1710_v48, %v1644_v39  ;;  %vm1751_vm10 = vweird.f32 %v8977_v10  ;;  %v1717_v33 = vadd.f32 %v1716_v37, %v1645_v59  ;;  %v1847_v56 = vrot.slane %v1846_v28, 2 }
 0x370   : > { %v1853_v38 = vrot.slane %v1852_v52, 2  ;;  %v1789_v44 = vrot.slane %v1788_v25, 1  ;;  %v1795_v51 = vrot.slane %v1794_v57, 1  ;;  %v1677_v7 = vadd.f32 %v1676_v8, %v1675_v50 }
 0x371   : > { %v9015_v15 = vperm.slane %v4232_v41, 0  ;;  %v1660_v54 = vrot.slane %v1659_v47, 1  ;;  %v1812_v2 = vadd.f32 %v1811_v58, %v1810_v23  ;;  %v1818_v0 = vadd.f32 %v1817_v14, %v1816_v18 }
 0x372   : > { %v9017_v63 = vperm.slane %v4232_v41, 1  ;;  %v9020_v6 = vsel %vm1751_vm10, %v8977_v10, %v1750_v21  ;;  %v1655_v3 = vadd.f32 %v1654_v62, %v1653_v22  ;;  %v1683_v48 = vadd.f32 %v1682_v53, %v1681_v32 }
 0x373   : > { %9853 = vst [vmem:[#allocation47_spill] sm:$0xff] %v9015_v15  ;;  %v1712_v39 = vrot.slane %v1711_v45, 2  ;;  %v1718_v5 = vrot.slane %v1717_v33, 2  ;;  %v1854_v37 = vadd.f32 %v1853_v38, %v1852_v52  ;;  %v1790_v8 = vadd.f32 %v1789_v44, %v1788_v25 }
 0x374   : > { %v1796_v15 = vadd.f32 %v1795_v51, %v1794_v57  ;;  %v1678_v23 = vrot.slane %v1677_v7, 1  ;;  %v1661_v41 = vadd.f32 %v1660_v54, %v1659_v47  ;;  %v1813_v10 = vrot.slane %v1812_v2, 1 }
 0x375   : > { %v1819_v58 = vrot.slane %v1818_v0, 1  ;;  %v1753_v32 = vmul.f32 %v9020_v6, %v1655_v3  ;;  %v1684_v14 = vrot.slane %v1683_v48, 1  ;;  %v1713_v21 = vadd.f32 %v1712_v39, %v1711_v45 }
 0x376   : > { %v1719_v52 = vadd.f32 %v1718_v5, %v1717_v33  ;;  %v1881_v25 = vmul.f32 %v1790_v8, %v9020_v6  ;;  %v1882_v57 = vmul.f32 %v1796_v15, %v9020_v6  ;;  %v1679_v47 = vadd.f32 %v1678_v23, %v1677_v7 }
 0x377   : > { %v1820_v38 = vadd.f32 %v1819_v58, %v1818_v0  ;;  %v9034_v44 = vperm.slane %v4230_v13, 0  ;;  %v9036_v51 = vperm.slane %v4230_v13, 1  ;;  %v1754_v45 = vmul.f32 %v9020_v6, %v1661_v41 }
 0x378   : > { %v1685_v54 = vadd.f32 %v1684_v14, %v1683_v48  ;;  %v1714_v33 = vrot.slane %v1713_v21, 1  ;;  %v4537_v39 = vpack.c.bf16 %v1753_v32, %v1753_v32  ;;  %v4586_v15 = vpack.c.bf16 %v1882_v57, %v1882_v57 }
 0x379   : > { %v1757_v7 = vmul.f32 %v9020_v6, %v1679_v47  ;;  %v1886_v23 = vmul.f32 %v1820_v38, %v9020_v6  ;;  %v4538_v14 = vpack.c.bf16 %v1754_v45, %v1754_v45 }
 0x37a   : > { %v1758_v41 = vmul.f32 %v9020_v6, %v1685_v54  ;;  %v9056_v47 = vunpack.c.l.b16 %v4586_v15 }
 0x39a   : > { %v4201_v49 = vpop.xlane.xlu1 %4200 }
 0x39b   : > { %v9009_v16 = vmax.f32 %v4201_v49, 1e-24  ;;  %v1848_v49 = vadd.f32 %v1847_v56, %v1846_v28  ;;  %v1814_v56 = vadd.f32 %v1813_v10, %v1812_v2 }
 0x39d   : > { %7757 = vrsqrt.f32 %v9009_v16  ;;  %v1849_v62 = vrot.slane %v1848_v49, 1  ;;  %v1885_v13 = vmul.f32 %v1814_v56, %v9020_v6  ;;  %vm4209_vm13 = vweird.f32 %v9009_v16 }
 0x39e   : > { %v9059_v56 = vunpack.c.l.b16 %v4537_v39 }
 0x39f   : > { %v1850_v5 = vadd.f32 %v1849_v62, %v1848_v49  ;;  %v1715_v49 = vadd.f32 %v1714_v33, %v1713_v21  ;;  %v4589_v21 = vpack.c.bf16 %v1885_v13, %v1885_v13 }
 0x3a2   : > { %v1519_v11 = vpop.xlane.xlu1 %1518 }
 0x3a3   : > { %v9022_v59 = vpop.eup %7757  ;;  %v1539_v50 = vadd.f32 %v1519_v11, %v8941_v4  ;;  %v1855_v4 = vrot.slane %v1854_v37, 1  ;;  %v1720_v11 = vrot.slane %v1719_v52, 1 }
 0x3a4   : > { %v4204_v18 = vmul.f32 %v9022_v59, %v9009_v16  ;;  %vm4210_vm12 = vweird.f32 %v9022_v59  ;;  %v1763_v16 = vmul.f32 %v9020_v6, %v1715_v49 }
 0x3a5   : > { %v9027_v22 = vmax.f32 %v1539_v50, 1e-24  ;;  %v1856_v50 = vadd.f32 %v1855_v4, %v1854_v37  ;;  %v1721_v58 = vadd.f32 %v1720_v11, %v1719_v52  ;;  %vm4211_vm14 = vmor %vm4209_vm13, %vm4210_vm12  ;;  %v4541_v4 = vpack.c.bf16 %v1757_v7, %v1757_v7 }
 0x3a6   : > { %v4205_v28 = vmul.f32 %v9022_v59, %v4204_v18  ;;  %v4585_v18 = vpack.c.bf16 %v1881_v25, %v1881_v25  ;;  %v4590_v25 = vpack.c.bf16 %v1886_v23, %v1886_v23  ;;  %v4542_v52 = vpack.c.bf16 %v1758_v41, %v1758_v41 }
 0x3a7   : > { %7759 = vrsqrt.f32 %v9027_v22  ;;  %v1892_v32 = vmul.f32 %v1856_v50, %v9020_v6  ;;  %v9062_v38 = vmul.f32 %v9020_v6, %v1721_v58  ;;  %v9070_v11 = vunpack.c.l.b16 %v4538_v14 }
 0x3a8   : > { %v4206_v53 = vmul.f32 0.5, %v4205_v28  ;;  %v9052_v28 = vunpack.c.l.b16 %v4585_v18  ;;  %v9074_v50 = vunpack.c.l.b16 %v4590_v25  ;;  %v9076_v39 = vunpack.c.l.b16 %v4541_v4 }
 0x3a9   : > { %v4596_v54 = vpack.c.bf16 %v1892_v32, %v1892_v32  ;;  %9854 = vst [vmem:[#allocation48_spill] sm:$0xff] %v9070_v11  ;;  %v9078_v18 = vunpack.c.l.b16 %v4542_v52  ;;  %v4547_v15 = vpack.c.bf16 %v1763_v16, %v1763_v16  ;;  %vm1570_vm3 = vweird.f32 %v9027_v22 }
 0x3aa   : > { %v4207_v3 = vsub.f32 1.5, %v4206_v53  ;;  %v1485_v8 = vpop.xlane.xlu1 %1484 }
 0x3ab   : > { %v1541_v2 = vadd.f32 %v8943_v35, %v1485_v8  ;;  %v1891_v35 = vmul.f32 %v1850_v5, %v9020_v6  ;;  %v9072_v5 = vunpack.c.l.b16 %v4589_v21  ;;  %9855 = vst [vmem:[#allocation49_spill] sm:$0xff] %v9078_v18  ;;  %v9086_v23 = vunpack.c.l.b16 %v4596_v54  ;;  %v9426_v18 = vld [vmem:[#allocation14 + $0x24] sm:$0xf0] }
 0x3ac   : > { %v4208_v48 = vmul.f32 %v9022_v59, %v4207_v3 }
 0x3ad   : > { %v7760_v0 = vpop.eup %7759  ;;  %v9047_v10 = vmax.f32 %v1541_v2, 1e-24  ;;  %v4595_v45 = vpack.c.bf16 %v1891_v35, %v1891_v35 }
 0x3ae   : > { %v1565_v37 = vmul.f32 %v7760_v0, %v9027_v22  ;;  %v4212_v57 = vsel %vm4211_vm14, %v9022_v59, %v4208_v48  ;;  %vm1571_vm15 = vweird.f32 %v7760_v0 }
 0x3af   : > { %7761 = vrsqrt.f32 %v9047_v10  ;;  %v9065_v33 = vmul.f32 %v4212_v57, %v8885_v12  ;;  %v9068_v3 = vmul.f32 %v4212_v57, %v8887_v17  ;;  %v4548_v17 = vpack.c.bf16 %v9062_v38, %v9062_v38  ;;  %vm1572_vm4 = vmor %vm1570_vm3, %vm1571_vm15 }
 0x3b0   : > { %v1566_v62 = vmul.f32 %v7760_v0, %v1565_v37  ;;  %v9084_v13 = vunpack.c.l.b16 %v4595_v45  ;;  %vm1590_vm5 = vweird.f32 %v9047_v10 }
 0x3b1   : > { %v9091_v49 = vadd.f32 %v8958_v26, %v9065_v33  ;;  %v9095_v22 = vadd.f32 %v8969_v46, %v9068_v3 }
 0x3b2   : > { %v1567_v53 = vmul.f32 0.5, %v1566_v62  ;;  %v1528_v12 = vpop.xlane.xlu1 %1527 }
 0x3b3   : > { %v1542_v41 = vadd.f32 %v1528_v12, %v8945_v29  ;;  %9856 = vst [vmem:[#allocation50_spill] sm:$0xff] %v9091_v49  ;;  %v4285_v29 = vmul.f32 %v9091_v49, %v9091_v49  ;;  %v4286_v26 = vmul.f32 %v9095_v22, %v9095_v22  ;;  %v9314_v49 = vld [vmem:[#allocation14 + $0x78] sm:$0xf] }
 0x3b4   : > { %v1568_v59 = vsub.f32 1.5, %v1567_v53  ;;  %9857 = vst [vmem:[#allocation51_spill] sm:$0xff] %v9095_v22 }
 0x3b5   : > { %v7762_v8 = vpop.eup %7761  ;;  %v9109_v21 = vmax.f32 %v1542_v41, 1e-24 }
 0x3b6   : > { %v1569_v7 = vmul.f32 %v7760_v0, %v1568_v59  ;;  %v1585_v2 = vmul.f32 %v7762_v8, %v9047_v10  ;;  %vm1591_vm1 = vweird.f32 %v7762_v8  ;;  %v9863_v10 = vperm.slane %v8961_v1, 1 }
 0x3b7   : > { %7763 = vrsqrt.f32 %v9109_v21  ;;  %vm1592_vm10 = vmor %vm1590_vm5, %vm1591_vm1  ;;  %vm1600_vm12 = vweird.f32 %v9109_v21 }
 0x3b8   : > { %v1573_v48 = vsel %vm1572_vm4, %v7760_v0, %v1569_v7  ;;  %v1586_v14 = vmul.f32 %v7762_v8, %v1585_v2  ;;  %v9107_v0 = vadd.f32 %v8971_v9, %v9065_v33  ;;  %v9115_v9 = vadd.f32 %v8974_v27, %v9068_v3 }
 0x3b9   : > { %v1636_v37 = vmul.f32 %v1573_v48, %v8750_v19  ;;  %v1637_v58 = vmul.f32 %v1573_v48, %v8753_v36  ;;  %v1771_v35 = vmul.f32 %v1573_v48, %v8894_v24  ;;  %v1772_v32 = vmul.f32 %v1573_v48, %v8896_v34 }
 0x3ba   : > { %9858 = vst [vmem:[#allocation52_spill] sm:$0xff] %v9107_v0  ;;  %v1587_v36 = vmul.f32 0.5, %v1586_v14  ;;  %v4303_v24 = vadd.f32 %v4286_v26, %v4285_v29  ;;  %v9111_v34 = vunpack.c.l.b16 %v4547_v15  ;;  %v4283_v45 = vmul.f32 %v9107_v0, %v9107_v0 }
 0x3bb   : > { %v1662_v46 = vrot.slane %v1636_v37, 4  ;;  %v1668_v62 = vrot.slane %v1637_v58, 4  ;;  %v1797_v19 = vrot.slane %v1771_v35, 4  ;;  %v1803_v4 = vrot.slane %v1772_v32, 4  ;;  %9860 = vst [vmem:[#allocation54_spill] sm:$0xff] %v9115_v9 }
 0x3bc   : > { %9859 = vst [vmem:[#allocation53_spill] sm:$0xff] %v9111_v34  ;;  %v1588_v53 = vsub.f32 1.5, %v1587_v36  ;;  %4304 = vadd.xlane.f32.xlu1 %v4303_v24  ;;  %v4284_v2 = vmul.f32 %v9115_v9, %v9115_v9  ;;  %v9132_v29 = vadd.f32 %v9863_v10, %v9068_v3  ;;  %v9424_v34 = vld [vmem:[#allocation14 + $0x1c] sm:$0xf] }
 0x3bd   : > { %v1663_v25 = vadd.f32 %v1662_v46, %v1636_v37  ;;  %v1669_v57 = vadd.f32 %v1668_v62, %v1637_v58  ;;  %v1798_v52 = vadd.f32 %v1797_v19, %v1771_v35  ;;  %v1804_v16 = vadd.f32 %v1803_v4, %v1772_v32 }
 0x3be   : > { %v1589_v15 = vmul.f32 %v7762_v8, %v1588_v53  ;;  %v4300_v35 = vadd.f32 %v4284_v2, %v4283_v45  ;;  %v9861_v32 = vperm.slane %v8961_v1, 0  ;;  %9864 = vst [vmem:[#allocation56_spill] sm:$0xff] %v9132_v29  ;;  %v9138_v1 = vpop.eup %7763 }
 0x3bf   : > { %v1664_v54 = vrot.slane %v1663_v25, 2  ;;  %v1670_v59 = vrot.slane %v1669_v57, 2  ;;  %v1799_v7 = vrot.slane %v1798_v52, 2  ;;  %v1805_v12 = vrot.slane %v1804_v16, 2 }
 0x3c0   : > { %v1593_v58 = vsel %vm1592_vm10, %v7762_v8, %v1589_v15  ;;  %v9127_v14 = vadd.f32 %v9861_v32, %v9065_v33  ;;  %4301 = vadd.xlane.f32.xlu0 %v4300_v35  ;;  %vm1601_vm13 = vweird.f32 %v9138_v1 }
 0x3c1   : > { %v1665_v48 = vadd.f32 %v1664_v54, %v1663_v25  ;;  %v1671_v41 = vadd.f32 %v1670_v59, %v1669_v57  ;;  %v1800_v37 = vadd.f32 %v1799_v7, %v1798_v52  ;;  %v1806_v27 = vadd.f32 %v1805_v12, %v1804_v16  ;;  %v1494_v7 = vpop.xlane.xlu1 %1493  ;;  %v1534_v12 = vpop.xlane.xlu2 %1533  ;;  %vm1602_vm14 = vmor %vm1600_vm12, %vm1601_vm13 }
 0x3c2   : > { %9862 = vst [vmem:[#allocation55_spill] sm:$0xff] %v9127_v14  ;;  %v1640_v4 = vmul.f32 %v1593_v58, %v8904_v61  ;;  %v1641_v36 = vmul.f32 %v1593_v58, %v8906_v20  ;;  %v1775_v8 = vmul.f32 %v1593_v58, %v8806_v40  ;;  %v1776_v24 = vmul.f32 %v1593_v58, %v8808_v42 }
 0x3c3   : > { %v1666_v26 = vrot.slane %v1665_v48, 1  ;;  %v1672_v46 = vrot.slane %v1671_v41, 1  ;;  %v1801_v62 = vrot.slane %v1800_v37, 1  ;;  %v1807_v19 = vrot.slane %v1806_v27, 1 }
 0x3c4   : > { %v1686_v53 = vrot.slane %v1640_v4, 4  ;;  %v1692_v45 = vrot.slane %v1641_v36, 4  ;;  %v1821_v54 = vrot.slane %v1775_v8, 4  ;;  %v1827_v59 = vrot.slane %v1776_v24, 4 }
 0x3c5   : > { %v1667_v25 = vadd.f32 %v1666_v26, %v1665_v48  ;;  %v1673_v57 = vadd.f32 %v1672_v46, %v1671_v41  ;;  %v1802_v52 = vadd.f32 %v1801_v62, %v1800_v37  ;;  %v1808_v16 = vadd.f32 %v1807_v19, %v1806_v27 }
 0x3c6   : > { %v1687_v15 = vadd.f32 %v1686_v53, %v1640_v4  ;;  %v1693_v2 = vadd.f32 %v1692_v45, %v1641_v36  ;;  %v1822_v48 = vadd.f32 %v1821_v54, %v1775_v8  ;;  %v1828_v41 = vadd.f32 %v1827_v59, %v1776_v24 }
 0x3c7   : > { %v1755_v61 = vmul.f32 %v9020_v6, %v1667_v25  ;;  %v1756_v20 = vmul.f32 %v9020_v6, %v1673_v57  ;;  %v1883_v40 = vmul.f32 %v1802_v52, %v9020_v6  ;;  %v1884_v42 = vmul.f32 %v1808_v16, %v9020_v6 }
 0x3c8   : > { %v4281_v27 = vmul.f32 %v9127_v14, %v9127_v14  ;;  %v4282_v58 = vmul.f32 %v9132_v29, %v9132_v29  ;;  %v1544_v35 = vadd.f32 %v1534_v12, %v1494_v7  ;;  %v1688_v32 = vrot.slane %v1687_v15, 2  ;;  %v9306_v29 = vld [vmem:[#allocation14 + $0x7c] sm:$0xf] }
 0x3c9   : > { %v4587_v37 = vpack.c.bf16 %v1883_v40, %v1883_v40  ;;  %v1694_v10 = vrot.slane %v1693_v2, 2  ;;  %v1823_v26 = vrot.slane %v1822_v48, 2  ;;  %v1829_v46 = vrot.slane %v1828_v41, 2 }
 0x3ca   : > { %v4539_v62 = vpack.c.bf16 %v1755_v61, %v1755_v61  ;;  %v4540_v19 = vpack.c.bf16 %v1756_v20, %v1756_v20  ;;  %v4588_v25 = vpack.c.bf16 %v1884_v42, %v1884_v42  ;;  %v9151_v4 = vunpack.c.l.b16 %v4548_v17 }
 0x3cb   : > { %v1689_v36 = vadd.f32 %v1688_v32, %v1687_v15  ;;  %v1695_v8 = vadd.f32 %v1694_v10, %v1693_v2  ;;  %v1824_v24 = vadd.f32 %v1823_v26, %v1822_v48  ;;  %v1830_v57 = vadd.f32 %v1829_v46, %v1828_v41 }
 0x3cc   : > { %9865 = vst [vmem:[#allocation57_spill] sm:$0xff] %v9151_v4  ;;  %v9153_v52 = vunpack.c.l.b16 %v4587_v37  ;;  %v1595_v16 = vmul.f32 %v9138_v1, %v9109_v21  ;;  %v4297_v53 = vadd.f32 %v4282_v58, %v4281_v27  ;;  %v9158_v45 = vmax.f32 %v1544_v35, 1e-24 }
 0x3cd   : > { %v1690_v54 = vrot.slane %v1689_v36, 1  ;;  %v1696_v59 = vrot.slane %v1695_v8, 1  ;;  %v1825_v7 = vrot.slane %v1824_v24, 1  ;;  %v1831_v38 = vrot.slane %v1830_v57, 1 }
 0x3ce   : > { %v1596_v17 = vmul.f32 %v9138_v1, %v1595_v16  ;;  %4298 = vadd.xlane.f32.xlu2 %v4297_v53  ;;  %7765 = vrsqrt.f32 %v9158_v45  ;;  %v9165_v61 = vadd.f32 %v8993_v31, %v9065_v33  ;;  %v9169_v2 = vadd.f32 %v8995_v43, %v9068_v3  ;;  %v9871_v16 = vld [vmem:[#allocation46_spill] sm:$0xff] }
 0x3cf   : > { %v1691_v20 = vadd.f32 %v1690_v54, %v1689_v36  ;;  %v1697_v40 = vadd.f32 %v1696_v59, %v1695_v8  ;;  %v1826_v42 = vadd.f32 %v1825_v7, %v1824_v24  ;;  %v1832_v12 = vadd.f32 %v1831_v38, %v1830_v57  ;;  %v1537_v59 = vpop.xlane.xlu1 %1536 }
 0x3d0   : > { %9866 = vst [vmem:[#allocation58_spill] sm:$0xff] %v9165_v61  ;;  %v1597_v15 = vmul.f32 0.5, %v1596_v17  ;;  %v4291_v48 = vmul.f32 %v9165_v61, %v9165_v61  ;;  %v9175_v41 = vadd.f32 %v8997_v60, %v9065_v33  ;;  %v4292_v35 = vmul.f32 %v9169_v2, %v9169_v2 }
 0x3d1   : > { %9867 = vst [vmem:[#allocation59_spill] sm:$0xff] %v9169_v2  ;;  %v9178_v37 = vmul.f32 %v9020_v6, %v1691_v20  ;;  %v9181_v31 = vmul.f32 %v9020_v6, %v1697_v40  ;;  %v9184_v27 = vmul.f32 %v1826_v42, %v9020_v6  ;;  %v9187_v58 = vmul.f32 %v1832_v12, %v9020_v6  ;;  %v1497_v40 = vpop.xlane.xlu0 %1496  ;;  %v9874_v42 = vld [vmem:[#allocation34_spill] sm:$0xff]  ;;  %v9875_v12 = vld [vmem:[#allocation35_spill] sm:$0xff] }
 0x3d2   : > { %9868 = vst [vmem:[#allocation60_spill] sm:$0xff] %v9175_v41  ;;  %v1598_v43 = vsub.f32 1.5, %v1597_v15  ;;  %v9193_v60 = vadd.f32 %v8999_v55, %v9068_v3  ;;  %v4289_v32 = vmul.f32 %v9175_v41, %v9175_v41  ;;  %v9197_v10 = vunpack.c.l.b16 %v4588_v25 }
 0x3d3   : > { %v9199_v26 = vunpack.c.l.b16 %v4539_v62  ;;  %v9201_v46 = vunpack.c.l.b16 %v4540_v19  ;;  %v4543_v36 = vpack.c.bf16 %v9178_v37, %v9178_v37  ;;  %v4312_v57 = vadd.f32 %v4292_v35, %v4291_v48  ;;  %v9876_v48 = vld [vmem:[#allocation40_spill] sm:$0xff] }
 0x3d4   : > { %9869 = vst [vmem:[#allocation61_spill] sm:$0xff] %v9193_v60  ;;  %v7766_v8 = vpop.eup %7765  ;;  %v1599_v24 = vmul.f32 %v9138_v1, %v1598_v43  ;;  %v4290_v55 = vmul.f32 %v9193_v60, %v9193_v60  ;;  %v9210_v53 = vadd.f32 %v9871_v16, %v9065_v33  ;;  %v4544_v62 = vpack.c.bf16 %v9181_v31, %v9181_v31  ;;  %v9877_v31 = vld [vmem:[#allocation41_spill] sm:$0xff] }
 0x3d5   : > { %9870 = vst [vmem:[#allocation62_spill] sm:$0xff] %v9201_v46  ;;  %v1615_v54 = vmul.f32 %v7766_v8, %v9158_v45  ;;  %vm1620_vm15 = vweird.f32 %v9158_v45  ;;  %4313 = vadd.xlane.f32.xlu1 %v4312_v57  ;;  %v9227_v17 = vadd.f32 %v9005_v30, %v9068_v3  ;;  %v9878_v30 = vld [vmem:[#allocation47_spill] sm:$0xff]  ;;  %vm1621_vm3 = vweird.f32 %v7766_v8  ;;  %v9887_v45 = vld [vmem:[#allocation38_spill] sm:$0xff] }
 0x3d6   : > { %9872 = vst [vmem:[#allocation46_spill] sm:$0xff] %v9210_v53  ;;  %v1603_v7 = vsel %vm1602_vm14, %v9138_v1, %v1599_v24  ;;  %v4309_v38 = vadd.f32 %v4290_v55, %v4289_v32  ;;  %v4287_v20 = vmul.f32 %v9210_v53, %v9210_v53  ;;  %v1545_v32 = vadd.f32 %v1537_v59, %v1497_v40  ;;  %vm1622_vm4 = vmor %vm1620_vm15, %vm1621_vm3 }
 0x3d7   : > { %9873 = vst [vmem:[#allocation63_spill] sm:$0xff] %v9227_v17  ;;  %v1642_v21 = vmul.f32 %v1603_v7, %v9874_v42  ;;  %v1643_v15 = vmul.f32 %v1603_v7, %v9875_v12  ;;  %v1777_v37 = vmul.f32 %v1603_v7, %v9876_v48  ;;  %v1778_v1 = vmul.f32 %v1603_v7, %v9877_v31 }
 0x3d8   : > { %v1616_v43 = vmul.f32 %v7766_v8, %v1615_v54  ;;  %4310 = vadd.xlane.f32.xlu0 %v4309_v38  ;;  %v4288_v35 = vmul.f32 %v9227_v17, %v9227_v17  ;;  %v9239_v24 = vadd.f32 %v9878_v30, %v9065_v33  ;;  %v9241_v19 = vmax.f32 %v1545_v32, 1e-24  ;;  %v7546_v17 = vld [vmem:[#allocation14 + $0x170] sm:$0xf0] }
 0x3d9   : > { %v1698_v57 = vrot.slane %v1642_v21, 4  ;;  %v1704_v55 = vrot.slane %v1643_v15, 4  ;;  %v1833_v16 = vrot.slane %v1777_v37, 4  ;;  %v1839_v42 = vrot.slane %v1778_v1, 4 }
 0x3da   : > { %9879 = vst [vmem:[#allocation34_spill] sm:$0xff] %v9239_v24  ;;  %v1617_v25 = vmul.f32 0.5, %v1616_v43  ;;  %v4306_v12 = vadd.f32 %v4288_v35, %v4287_v20  ;;  %v9245_v54 = vadd.f32 %v9017_v63, %v9068_v3  ;;  %7767 = vrsqrt.f32 %v9241_v19 }
 0x3db   : > { %v1699_v7 = vadd.f32 %v1698_v57, %v1642_v21  ;;  %v1705_v38 = vadd.f32 %v1704_v55, %v1643_v15  ;;  %v1834_v48 = vadd.f32 %v1833_v16, %v1777_v37  ;;  %v1840_v59 = vadd.f32 %v1839_v42, %v1778_v1 }
 0x3dc   : > { %9880 = vst [vmem:[#allocation35_spill] sm:$0xff] %v9245_v54  ;;  %v1618_v40 = vsub.f32 1.5, %v1617_v25  ;;  %4307 = vadd.xlane.f32.xlu2 %v4306_v12  ;;  %v4295_v31 = vmul.f32 %v9239_v24, %v9239_v24  ;;  %v4296_v63 = vmul.f32 %v9245_v54, %v9245_v54  ;;  %v9254_v21 = vadd.f32 %v9034_v44, %v9065_v33  ;;  %v7039_v24 = vld [vmem:[#allocation14 + $0x16c] sm:$0xf] }
 0x3dd   : > { %v1700_v43 = vrot.slane %v1699_v7, 2  ;;  %v1706_v20 = vrot.slane %v1705_v38, 2  ;;  %v1835_v35 = vrot.slane %v1834_v48, 2  ;;  %v1841_v32 = vrot.slane %v1840_v59, 2 }
 0x3de   : > { %v1619_v30 = vmul.f32 %v7766_v8, %v1618_v40  ;;  %9881 = vst [vmem:[#allocation40_spill] sm:$0xff] %v9254_v21  ;;  %v9258_v25 = vadd.f32 %v9036_v51, %v9068_v3  ;;  %v9263_v55 = vunpack.c.l.b16 %v4543_v36  ;;  %v9265_v16 = vunpack.c.l.b16 %v4544_v62  ;;  %v9888_v36 = vld [vmem:[#allocation39_spill] sm:$0xff] }
 0x3df   : > { %v1701_v15 = vadd.f32 %v1700_v43, %v1699_v7  ;;  %v1707_v37 = vadd.f32 %v1706_v20, %v1705_v38  ;;  %v1836_v1 = vadd.f32 %v1835_v35, %v1834_v48  ;;  %v1842_v57 = vadd.f32 %v1841_v32, %v1840_v59  ;;  %v9885_v7 = vld [vmem:[#allocation42_spill] sm:$0xff]  ;;  %v9886_v48 = vld [vmem:[#allocation43_spill] sm:$0xff] }
 0x3e0   : > { %9882 = vst [vmem:[#allocation41_spill] sm:$0xff] %v9258_v25  ;;  %v1623_v42 = vsel %vm1622_vm4, %v7766_v8, %v1619_v30  ;;  %v4318_v12 = vadd.f32 %v4296_v63, %v4295_v31  ;;  %v4293_v51 = vmul.f32 %v9254_v21, %v9254_v21  ;;  %v9269_v3 = vpop.eup %7767  ;;  %v4294_v35 = vmul.f32 %v9258_v25, %v9258_v25  ;;  %v7562_v25 = vld [vmem:[#allocation14 + $0x174] sm:$0xf0]  ;;  %v7071_v21 = vld [vmem:[#allocation14 + $0xa8] sm:$0xf] }
 0x3e1   : > { %9883 = vst [vmem:[#allocation47_spill] sm:$0xff] %v9263_v55  ;;  %v1702_v44 = vrot.slane %v1701_v15, 1  ;;  %v1708_v33 = vrot.slane %v1707_v37, 1  ;;  %v1837_v40 = vrot.slane %v1836_v1, 1  ;;  %v1646_v38 = vmul.f32 %v1623_v42, %v9885_v7 }
 0x3e2   : > { %9884 = vst [vmem:[#allocation64_spill] sm:$0xff] %v9265_v16  ;;  %v1647_v59 = vmul.f32 %v1623_v42, %v9886_v48  ;;  %v1781_v43 = vmul.f32 %v1623_v42, %v9887_v45  ;;  %v1782_v20 = vmul.f32 %v1623_v42, %v9888_v36  ;;  %4319 = vadd.xlane.f32.xlu0 %v4318_v12  ;;  %v1843_v31 = vrot.slane %v1842_v57, 1  ;;  %v7554_v42 = vld [vmem:[#allocation14 + $0xb4] sm:$0xf0]  ;;  %v9422_v16 = vld [vmem:[#allocation14 + $0xf8] sm:$0xf0] }
 0x3e3   : > { %v1703_v62 = vadd.f32 %v1702_v44, %v1701_v15  ;;  %v1709_v8 = vadd.f32 %v1708_v33, %v1707_v37  ;;  %v1722_v32 = vrot.slane %v1646_v38, 4  ;;  %vm1630_vm1 = vweird.f32 %v9241_v19  ;;  %v7007_v37 = vld [vmem:[#allocation14 + $0xac] sm:$0xf] }
 0x3e4   : > { %v1728_v30 = vrot.slane %v1647_v59, 4  ;;  %v1857_v63 = vrot.slane %v1781_v43, 4  ;;  %v1863_v54 = vrot.slane %v1782_v20, 4  ;;  %v9282_v45 = vadd.f32 %v1837_v40, %v1836_v1  ;;  %v7538_v1 = vld [vmem:[#allocation14 + $0xb0] sm:$0xf0] }
 0x3e5   : > { %v1761_v7 = vmul.f32 %v9020_v6, %v1703_v62  ;;  %v9280_v48 = vmul.f32 %v9020_v6, %v1709_v8  ;;  %v1625_v15 = vmul.f32 %v9269_v3, %v9241_v19  ;;  %v1723_v12 = vadd.f32 %v1722_v32, %v1646_v38  ;;  %v7103_v40 = vld [vmem:[#allocation14 + $0x168] sm:$0xf]  ;;  %v7003_v38 = vld [vmem:[#allocation14 + $0x94] sm:$0xf]  ;;  %v9298_v32 = vld [vmem:[#allocation14 + $0x150] sm:$0xf] }
 0x3e6   : > { %v1729_v44 = vadd.f32 %v1728_v30, %v1647_v59  ;;  %v1858_v33 = vadd.f32 %v1857_v63, %v1781_v43  ;;  %v1864_v36 = vadd.f32 %v1863_v54, %v1782_v20  ;;  %v9286_v60 = vadd.f32 %v1843_v31, %v1842_v57  ;;  %v7553_v59 = vld [vmem:[#allocation14 + $0x9c] sm:$0xf0]  ;;  %v9289_v43 = vld [vmem:[#allocation14 + $0x154] sm:$0xf]  ;;  %v9296_v31 = vld [vmem:[#allocation14 + $0x90] sm:$0xf] }
 0x3e7   : > { %v4545_v62 = vpack.c.bf16 %v1761_v7, %v1761_v7  ;;  %v1626_v8 = vmul.f32 %v9269_v3, %v1625_v15  ;;  %v4315_v41 = vadd.f32 %v4294_v35, %v4293_v51  ;;  %v1724_v53 = vrot.slane %v1723_v12, 2  ;;  %v9291_v54 = vld [vmem:[#allocation14 + $0x15c] sm:$0xf0]  ;;  %v7537_v35 = vld [vmem:[#allocation14 + $0x98] sm:$0xf0] }
 0x3e8   : > { %v1730_v2 = vrot.slane %v1729_v44, 2  ;;  %v1859_v61 = vrot.slane %v1858_v33, 2  ;;  %v1865_v9 = vrot.slane %v1864_v36, 2  ;;  %vm1631_vm5 = vweird.f32 %v9269_v3  ;;  %v9300_v30 = vld [vmem:[#allocation14 + $0x158] sm:$0xf0] }
 0x3e9   : > { %v1627_v20 = vmul.f32 0.5, %v1626_v8  ;;  %4316 = vadd.xlane.f32.xlu2 %v4315_v41  ;;  %v7008_v51 = vor.u32 %v7554_v42, %v7007_v37  ;;  %v1725_v63 = vadd.f32 %v1724_v53, %v1723_v12  ;;  %v9308_v8 = vld [vmem:[#allocation14 + $0x84] sm:$0xf0]  ;;  %v9310_v57 = vld [vmem:[#allocation14 + $0x13c] sm:$0xf]  ;;  %v7040_v42 = vor.u32 %v7562_v25, %v7039_v24  ;;  %vm9335_vm10 = vmor %vm1630_vm1, %vm1631_vm5 }
 0x3ea   : > { %v1731_v7 = vadd.f32 %v1730_v2, %v1729_v44  ;;  %v9302_v15 = vadd.f32 %v1859_v61, %v1858_v33  ;;  %v9304_v0 = vadd.f32 %v1865_v9, %v1864_v36  ;;  %v9312_v41 = vld [vmem:[#allocation14 + $0x144] sm:$0xf0]  ;;  %v7072_v14 = vor.u32 %v7538_v1, %v7071_v21  ;;  %v9316_v2 = vld [vmem:[#allocation14 + $0x80] sm:$0xf0]  ;;  %v9321_v44 = vld [vmem:[#allocation14 + $0x138] sm:$0xf] }
 0x3eb   : > { %v1628_v37 = vsub.f32 1.5, %v1627_v20  ;;  %4780 = vmatpush.bf16.msrb.mxu0 %v7008_v51  ;;  %v7104_v22 = vor.u32 %v7546_v17, %v7103_v40  ;;  %v9318_v61 = vunpack.c.l.b16 %v4545_v62  ;;  %v1726_v9 = vrot.slane %v1725_v63, 1  ;;  %v9323_v33 = vld [vmem:[#allocation14 + $0x140] sm:$0xf0]  ;;  %v9327_v20 = vld [vmem:[#allocation14 + $0x6c] sm:$0xf0]  ;;  %4793 = vmatpush.bf16.msrb.mxu1 %v7040_v42 }
 0x3ec   : > { %v1732_v53 = vrot.slane %v1731_v7, 1  ;;  %v9325_v36 = vld [vmem:[#allocation14 + $0x64] sm:$0xf]  ;;  %4952 = vmatpush.bf16.msrb.mxu2 %v7072_v14  ;;  %v7004_v25 = vor.u32 %v7553_v59, %v7003_v38  ;;  %v7036_v62 = vor.u32 %v9291_v54, %v9289_v43  ;;  %v9343_v40 = vld [vmem:[#allocation14 + $0x12c] sm:$0xf0]  ;;  %v7068_v19 = vor.u32 %v7537_v35, %v9296_v31 }
 0x3ed   : > { %9889 = vst [vmem:[#allocation42_spill] sm:$0xff] %v9318_v61  ;;  %v1629_v24 = vmul.f32 %v9269_v3, %v1628_v37  ;;  %v9341_v1 = vld [vmem:[#allocation14 + $0x124] sm:$0xf]  ;;  %v9345_v51 = vadd.f32 %v1726_v9, %v1725_v63  ;;  %4965 = vmatpush.bf16.msrb.mxu3 %v7104_v22  ;;  %v7100_v17 = vor.u32 %v9300_v30, %v9298_v32  ;;  %v9352_v42 = vld [vmem:[#allocation14 + $0x60] sm:$0xf]  ;;  %vm4671_vm12 = vcmask 1047559  }
 0x3ee   : > { %v9347_v37 = vadd.f32 %v1732_v53, %v1731_v7  ;;  %v9354_v14 = vld [vmem:[#allocation14 + $0x68] sm:$0xf0]  ;;  %v9356_v38 = vld [vmem:[#allocation14 + $0x120] sm:$0xf]  ;;  %v7000_v22 = vor.u32 %v9308_v8, %v9306_v29  ;;  %v7032_v31 = vor.u32 %v9312_v41, %v9310_v57  ;;  %v7064_v35 = vor.u32 %v9316_v2, %v9314_v49  ;;  %v9371_v32 = vld [vmem:[#allocation14 + $0x54] sm:$0xf0] }
 0x3ef   : > { %v9358_v59 = vld [vmem:[#allocation14 + $0x128] sm:$0xf0]  ;;  %v1633_v54 = vsel %vm9335_vm10, %v9269_v3, %v1629_v24  ;;  %4781 = vmatpush.bf16.msrb.mxu0 %v7004_v25  ;;  %v9375_v63 = vld [vmem:[#allocation14 + $0x114] sm:$0xf0]  ;;  %v9892_v7 = vld [vmem:[#allocation36_spill] sm:$0xff]  ;;  %v9896_v49 = vpack.c.bf16 %v9280_v48, %v9280_v48  ;;  %4794 = vmatpush.bf16.msrb.mxu1 %v7036_v62 }
 0x3f0   : > { %v9360_v43 = vld [vmem:[#allocation14 + $0x4c] sm:$0xf]  ;;  %v1648_v9 = vmul.f32 %v1633_v54, %v9892_v7  ;;  %v9894_v24 = vld [vmem:[#allocation44_spill] sm:$0xff]  ;;  %v9381_v8 = vld [vmem:[#allocation14 + $0x48] sm:$0xf]  ;;  %4953 = vmatpush.bf16.msrb.mxu2 %v7068_v19  ;;  %v7096_v7 = vor.u32 %v9323_v33, %v9321_v44 }
 0x3f1   : > { %v9373_v30 = vld [vmem:[#allocation14 + $0x10c] sm:$0xf]  ;;  %v1783_v21 = vmul.f32 %v1633_v54, %v9894_v24  ;;  %v9383_v57 = vld [vmem:[#allocation14 + $0x50] sm:$0xf0]  ;;  %v9385_v41 = vld [vmem:[#allocation14 + $0x108] sm:$0xf]  ;;  %v9390_v2 = vunpack.c.l.b16 %v9896_v49  ;;  %4966 = vmatpush.bf16.msrb.mxu3 %v7100_v17  ;;  %v6992_v17 = vor.u32 %v9371_v32, %v9360_v43 }
 0x3f2   : > { %v9893_v53 = vld [vmem:[#allocation37_spill] sm:$0xff]  ;;  %v9398_v24 = vld [vmem:[#allocation14 + $0x110] sm:$0xf0]  ;;  %v9402_v12 = vld [vmem:[#allocation14 + $0x3c] sm:$0xf0]  ;;  %v1734_v48 = vrot.slane %v1648_v9, 4  ;;  %v7056_v43 = vor.u32 %v9383_v57, %v9381_v8 }
 0x3f3   : > { %v1649_v3 = vmul.f32 %v1633_v54, %v9893_v53  ;;  %v9895_v25 = vld [vmem:[#allocation45_spill] sm:$0xff]  ;;  %9897 = vst [vmem:[#allocation43_spill] sm:$0xff] %v9390_v2  ;;  %v6996_v53 = vor.u32 %v9327_v20, %v9325_v36  ;;  %v1869_v4 = vrot.slane %v1783_v21, 4  ;;  %v9404_v19 = vld [vmem:[#allocation14 + $0xf4] sm:$0xf]  ;;  %4782 = vmatpush.bf16.msrb.mxu0 %v7000_v22  ;;  %4795 = vmatpush.bf16.msrb.mxu1 %v7032_v31 }
 0x3f4   : > { %v1784_v29 = vmul.f32 %v1633_v54, %v9895_v25  ;;  %v7028_v54 = vor.u32 %v9343_v40, %v9341_v1  ;;  %v9400_v25 = vld [vmem:[#allocation14 + $0x34] sm:$0xf]  ;;  %v9406_v44 = vld [vmem:[#allocation14 + $0xfc] sm:$0xf0]  ;;  %v9408_v33 = vld [vmem:[#allocation14 + $0x30] sm:$0xf]  ;;  %v7060_v1 = vor.u32 %v9354_v14, %v9352_v42  ;;  %v7092_v40 = vor.u32 %v9358_v59, %v9356_v38  ;;  %4954 = vmatpush.bf16.msrb.mxu2 %v7064_v35 }
 0x3f5   : > { %v1740_v49 = vrot.slane %v1649_v3, 4  ;;  %v9410_v36 = vld [vmem:[#allocation14 + $0x38] sm:$0xf0]  ;;  %v9412_v20 = vld [vmem:[#allocation14 + $0xf0] sm:$0xf]  ;;  %v1735_v61 = vadd.f32 %v1734_v48, %v1648_v9  ;;  %v1870_v46 = vadd.f32 %v1869_v4, %v1783_v21  ;;  %v7088_v32 = vor.u32 %v9398_v24, %v9385_v41  ;;  %4967 = vmatpush.bf16.msrb.mxu3 %v7096_v7 }
 0x3f6   : > { %v1875_v62 = vrot.slane %v1784_v29, 4  ;;  %v9428_v42 = vld [vmem:[#allocation14 + $0xdc] sm:$0xf]  ;;  %v9430_v14 = vld [vmem:[#allocation14 + $0xe4] sm:$0xf0]  ;;  %v6988_v4 = vor.u32 %v9402_v12, %v9400_v25  ;;  %v7020_v12 = vor.u32 %v9406_v44, %v9404_v19  ;;  %v7052_v41 = vor.u32 %v9410_v36, %v9408_v33 }
 0x3f7   : > { %v1741_v22 = vadd.f32 %v1740_v49, %v1649_v3  ;;  %v9432_v38 = vld [vmem:[#allocation14 + $0x18] sm:$0xf]  ;;  %v9434_v59 = vld [vmem:[#allocation14 + $0x20] sm:$0xf0]  ;;  %v1736_v35 = vrot.slane %v1735_v61, 2  ;;  %v1871_v49 = vrot.slane %v1870_v46, 2  ;;  %4783 = vmatpush.bf16.msrb.mxu0 %v6996_v53  ;;  %v7084_v24 = vor.u32 %v9422_v16, %v9412_v20  ;;  %4796 = vmatpush.bf16.msrb.mxu1 %v7028_v54 }
 0x3f8   : > { %v1876_v11 = vadd.f32 %v1875_v62, %v1784_v29  ;;  %v9442_v9 = vld [vmem:[#allocation14 + $0xd8] sm:$0xf]  ;;  %v9444_v3 = vld [vmem:[#allocation14 + $0xe0] sm:$0xf0]  ;;  %v9898_v29 = vpack.c.bf16 %v9184_v27, %v9184_v27  ;;  %v9451_v57 = vld [vmem:[#allocation14 + $0xc] sm:$0xf0]  ;;  %v6984_v27 = vor.u32 %v9426_v18, %v9424_v34  ;;  %4955 = vmatpush.bf16.msrb.mxu2 %v7060_v1  ;;  %v7016_v16 = vor.u32 %v9430_v14, %v9428_v42 }
 0x3f9   : > { %v9446_v21 = vld [vmem:[#allocation14 + $0x4] sm:$0xf]  ;;  %v1742_v48 = vrot.slane %v1741_v22, 2  ;;  %v9463_v62 = vld [vmem:[#allocation14 + $0xcc] sm:$0xf0]  ;;  %v1872_v2 = vadd.f32 %v1871_v49, %v1870_v46  ;;  %v7048_v36 = vor.u32 %v9434_v59, %v9432_v38  ;;  %4968 = vmatpush.bf16.msrb.mxu3 %v7092_v40  ;;  %v9901_v49 = vor.u32 %v9375_v63, %v9373_v30 }
 0x3fa   : > { %v4655_v31 = vunpack.c.l.b16 %v9898_v29  ;;  %v1877_v8 = vrot.slane %v1876_v11, 2  ;;  %v9461_v25 = vld [vmem:[#allocation14 + $0xc4] sm:$0xf]  ;;  %v9465_v7 = vld [vmem:[#allocation14] sm:$0xf]  ;;  %v1737_v29 = vadd.f32 %v1736_v35, %v1735_v61  ;;  %v7080_v61 = vor.u32 %v9444_v3, %v9442_v9 }
 0x3fb   : > { %v1743_v53 = vadd.f32 %v1742_v48, %v1741_v22  ;;  %v9467_v19 = vld [vmem:[#allocation14 + $0x8] sm:$0xf0]  ;;  %v9469_v44 = vld [vmem:[#allocation14 + $0xc0] sm:$0xf]  ;;  %v6980_v54 = vor.u32 %v9451_v57, %v9446_v21  ;;  %v7012_v1 = vor.u32 %v9463_v62, %v9461_v25  ;;  %4784 = vmatpush.bf16.msrb.mxu0 %v6992_v17  ;;  %v1873_v59 = vrot.slane %v1872_v2, 1  ;;  %4797 = vmatpush.bf16.msrb.mxu1 %v9901_v49 }
 0x3fc   : > { %v1878_v55 = vadd.f32 %v1877_v8, %v1876_v11  ;;  %v9471_v33 = vld [vmem:[#allocation14 + $0xc8] sm:$0xf0]  ;;  %v9899_v11 = vpack.c.bf16 %v9187_v58, %v9187_v58  ;;  %v1738_v20 = vrot.slane %v1737_v29, 1  ;;  %v7044_v42 = vor.u32 %v9467_v19, %v9465_v7  ;;  %4956 = vmatpush.bf16.msrb.mxu2 %v7056_v43 }
 0x3fd   : > { %v1744_v22 = vrot.slane %v1743_v53, 1  ;;  %v7076_v14 = vor.u32 %v9471_v33, %v9469_v44  ;;  %v9900_v58 = vrot.slane %v9302_v15, 1  ;;  %v1889_v48 = vmul.f32 %v9282_v45, %v9020_v6  ;;  %4969 = vmatpush.bf16.msrb.mxu3 %v7088_v32 }
 0x3fe   : > { %v4656_v46 = vunpack.c.l.b16 %v9899_v11  ;;  %v1739_v40 = vadd.f32 %v1738_v20, %v1737_v29  ;;  %v4665_v17 = vsel %vm1307_vm2, %v9153_v52, %v9052_v28  ;;  %v1874_v8 = vadd.f32 %v1873_v59, %v1872_v2 }
 0x3ff   : > { %v1862_v38 = vadd.f32 %v9900_v58, %v9302_v15  ;;  %v1745_v35 = vadd.f32 %v1744_v22, %v1743_v53  ;;  %v4666_v15 = vsel %vm1310_vm6, %v9072_v5, %v4665_v17  ;;  %v1879_v29 = vrot.slane %v1878_v55, 1  ;;  %4785 = vmatpush.bf16.msrb.mxu0 %v6988_v4  ;;  %4798 = vmatpush.bf16.msrb.mxu1 %v7020_v12 }
 0x400   : > { %v4593_v53 = vpack.c.bf16 %v1889_v48, %v1889_v48  ;;  %v4667_v45 = vsel %vm1313_vm8, %v4655_v31, %v4666_v15  ;;  %v9902_v20 = vrot.slane %v9304_v0, 1  ;;  %v1890_v52 = vmul.f32 %v9286_v60, %v9020_v6  ;;  %4957 = vmatpush.bf16.msrb.mxu2 %v7052_v41 }
 0x401   : > { %v1893_v11 = vmul.f32 %v1862_v38, %v9020_v6  ;;  %v1895_v30 = vmul.f32 %v1874_v8, %v9020_v6  ;;  %v1880_v2 = vadd.f32 %v1879_v29, %v1878_v55  ;;  %v4673_v5 = vsel %vm1307_vm2, %v9197_v10, %v9056_v47  ;;  %4970 = vmatpush.bf16.msrb.mxu3 %v7084_v24 }
 0x402   : > { %v1868_v28 = vadd.f32 %v9902_v20, %v9304_v0  ;;  %v4657_v43 = vunpack.c.l.b16 %v4593_v53  ;;  %v4594_v31 = vpack.c.bf16 %v1890_v52, %v1890_v52  ;;  %v4674_v22 = vsel %vm1310_vm6, %v9074_v50, %v4673_v5  ;;  %v9910_v53 = vld [vmem:[#allocation43_spill] sm:$0xff] }
 0x403   : > { %v4597_v63 = vpack.c.bf16 %v1893_v11, %v1893_v11  ;;  %v4599_v0 = vpack.c.bf16 %v1895_v30, %v1895_v30  ;;  %v1896_v4 = vmul.f32 %v1880_v2, %v9020_v6  ;;  %v4675_v58 = vsel %vm1313_vm8, %v4656_v46, %v4674_v22  ;;  %4786 = vmatpush.bf16.msrb.mxu0 %v6984_v27  ;;  %v7793_v30 = vld [vmem:[%s8520_s22] sm:$0xff] }
 0x404   : > { %v1894_v32 = vmul.f32 %v1868_v28, %v9020_v6  ;;  %v4668_v55 = vsel %vm1316_vm7, %v4657_v43, %v4667_v45  ;;  %v4658_v47 = vunpack.c.l.b16 %v4594_v31  ;;  %v1765_v10 = vmul.f32 %v9020_v6, %v9345_v51  ;;  %4799 = vmatpush.bf16.msrb.mxu1 %v7016_v16  ;;  %4958 = vmatpush.bf16.msrb.mxu2 %v7048_v36 }
 0x405   : > { %v4661_v60 = vunpack.c.l.b16 %v4597_v63  ;;  %v4663_v50 = vunpack.c.l.b16 %v4599_v0  ;;  %v4669_v12 = vsel %vm1319_vm9, %v9084_v13, %v4668_v55  ;;  %v4600_v41 = vpack.c.bf16 %v1896_v4, %v1896_v4  ;;  %4971 = vmatpush.bf16.msrb.mxu3 %v7080_v61  ;;  %v9903_v61 = vld [vmem:[#allocation47_spill] sm:$0xff] }
 0x406   : > { %v4598_v38 = vpack.c.bf16 %v1894_v32, %v1894_v32  ;;  %v1767_v59 = vmul.f32 %v9020_v6, %v1739_v40  ;;  %v4676_v48 = vsel %vm1316_vm7, %v4658_v47, %v4675_v58  ;;  %v4549_v17 = vpack.c.bf16 %v1765_v10, %v1765_v10 }
 0x407   : > { %v4670_v24 = vsel %vm1322_vm11, %v4661_v60, %v4669_v12  ;;  %v4664_v49 = vunpack.c.l.b16 %v4600_v41  ;;  %v4677_v18 = vsel %vm1319_vm9, %v9086_v23, %v4676_v48  ;;  %v4838_v16 = vsel %vm1307_vm2, %v9199_v26, %v9059_v56  ;;  %4787 = vmatpush.bf16.msrb.mxu0 %v6980_v54  ;;  %v9904_v56 = vld [vmem:[#allocation48_spill] sm:$0xff]  ;;  %v9905_v26 = vld [vmem:[#allocation62_spill] sm:$0xff]  ;;  %v9907_v54 = vld [vmem:[#allocation49_spill] sm:$0xff] }
 0x408   : > { %v4662_v46 = vunpack.c.l.b16 %v4598_v38  ;;  %v4672_v51 = vsel %vm4671_vm12, %v4663_v50, %v4670_v24  ;;  %v4551_v34 = vpack.c.bf16 %v1767_v59, %v1767_v59  ;;  %v4834_v40 = vunpack.c.l.b16 %v4549_v17  ;;  %4800 = vmatpush.bf16.msrb.mxu1 %v7012_v1  ;;  %4959 = vmatpush.bf16.msrb.mxu2 %v7044_v42  ;;  %v9909_v1 = vld [vmem:[#allocation64_spill] sm:$0xff]  ;;  %v9912_v24 = vld [vmem:[#allocation50_spill] sm:$0xff]  ;;  %v9913_v48 = vld [vmem:[#allocation51_spill] sm:$0xff] }
 0x409   : > { %v4680_v13 = vpack.c.b16 %v4672_v51, %v4672_v51  ;;  %v4839_v8 = vsel %vm1310_vm6, %v9076_v39, %v4838_v16  ;;  %v1766_v9 = vmul.f32 %v9020_v6, %v9347_v37  ;;  %v1768_v15 = vmul.f32 %v9020_v6, %v1745_v35  ;;  %v9906_v39 = vld [vmem:[#allocation42_spill] sm:$0xff]  ;;  %4972 = vmatpush.bf16.msrb.mxu3 %v7076_v14  ;;  %v9908_v35 = vld [vmem:[#allocation53_spill] sm:$0xff] }
 0x40a   : > { %v4678_v27 = vsel %vm1322_vm11, %v4662_v46, %v4677_v18  ;;  %v4836_v23 = vunpack.c.l.b16 %v4551_v34  ;;  %v4840_v11 = vsel %vm1313_vm8, %v9903_v61, %v4839_v8  ;;  %v4845_v21 = vsel %vm1307_vm2, %v9905_v26, %v9904_v56  ;;  %v9911_v14 = vld [vmem:[#allocation57_spill] sm:$0xff] }
 0x40b   : > { %v4679_v36 = vsel %vm4671_vm12, %v4664_v49, %v4678_v27  ;;  %v4841_v37 = vsel %vm1316_vm7, %v9906_v39, %v4840_v11  ;;  %v4550_v57 = vpack.c.bf16 %v1766_v9, %v1766_v9  ;;  %v4846_v29 = vsel %vm1310_vm6, %v9907_v54, %v4845_v21  ;;  %4788 = vmatmul.bf16.vlgmr.msrb.gmra.mxu0 %v4680_v13 }
 0x40c   : > { %v4681_v3 = vpack.c.b16 %v4679_v36, %v4679_v36  ;;  %v4842_v25 = vsel %vm1319_vm9, %v9908_v35, %v4841_v37  ;;  %v4552_v62 = vpack.c.bf16 %v1768_v15, %v1768_v15  ;;  %v4847_v7 = vsel %vm1313_vm8, %v9909_v1, %v4846_v29 }
 0x40d   : > { %v4843_v19 = vsel %vm1322_vm11, %v4834_v40, %v4842_v25  ;;  %v4835_v42 = vunpack.c.l.b16 %v4550_v57  ;;  %v4848_v45 = vsel %vm1316_vm7, %v9910_v53, %v4847_v7  ;;  %v8229_v20 = vmov 17   ;;  %v9915_v53 = vld [vmem:[#allocation56_spill] sm:$0xff] }
 0x40e   : > { %7736 = vset.pattern.permute.xlu1 %v8229_v20  ;;  %v8230_v28 = vmov 19   ;;  %4801 = vmatmul.bf16.vlgmr.msrb.gmra.mxu1 %v4681_v3  ;;  %v4844_v44 = vsel %vm4671_vm12, %v4836_v23, %v4843_v19  ;;  %v4837_v33 = vunpack.c.l.b16 %v4552_v62  ;;  %v4849_v52 = vsel %vm1319_vm9, %v9911_v14, %v4848_v45  ;;  %v9914_v19 = vld [vmem:[#allocation55_spill] sm:$0xff] }
 0x40f   : > { %7738 = vset.pattern.permute.xlu0 %v8230_v28  ;;  %5207 = vperm.xlu1 %7736, %v7793_v30   ;;  %v4852_v63 = vpack.c.b16 %v4844_v44, %v4844_v44  ;;  %v4850_v2 = vsel %vm1322_vm11, %v4835_v42, %v4849_v52  ;;  %v8231_v5 = vmov 18   ;;  %v8232_v31 = vmov 21  }
 0x410   : > { %5239 = vperm.xlu0 %7738, %v7793_v30   ;;  %7737 = vset.pattern.permute.xlu2 %v8231_v5  ;;  %v4851_v43 = vsel %vm4671_vm12, %v4837_v33, %v4850_v2  ;;  %v8233_v22 = vmov 20   ;;  %v8234_v0 = vmov 16  }
 0x411   : > { %5223 = vperm.xlu2 %7737, %v7793_v30   ;;  %4960 = vmatmul.bf16.vlgmr.msrb.gmra.mxu2 %v4852_v63  ;;  %v4853_v32 = vpack.c.b16 %v4851_v43, %v4851_v43 }
 0x413   : > { %4973 = vmatmul.bf16.vlgmr.msrb.gmra.mxu3 %v4853_v32 }
 0x417   : > { %7740 = vset.pattern.permute.xlu1 %v8232_v31 }
 0x418   : > { %5271 = vperm.xlu1 %7740, %v7793_v30   ;;  %7742 = vset.pattern.permute.xlu0 %v8232_v31 }
 0x419   : > { %7739 = vset.pattern.permute.xlu2 %v8233_v22  ;;  %v9916_v22 = vld [vmem:[#allocation52_spill] sm:$0xff] }
 0x41a   : > { %5255 = vperm.xlu2 %7739, %v7793_v30  }
 0x422   : > { %7741 = vset.pattern.permute.xlu2 %v8234_v0 }
 0x423   : > { %5199 = vperm.xlu2 %7741, %v7793_v30  }
 0x42f   : > { %v4305_v60 = vpop.xlane.xlu1 %4304 }
 0x430   : > { %v4323_v4 = vmax.f32 %v4305_v60, 1e-24  ;;  %v9917_v60 = vld [vmem:[#allocation54_spill] sm:$0xff] }
 0x432   : > { %7769 = vrsqrt.f32 %v4323_v4  ;;  %vm4355_vm14 = vweird.f32 %v4323_v4 }
 0x433   : > { %v4302_v51 = vpop.xlane.xlu0 %4301 }
 0x434   : > { %v4322_v49 = vmax.f32 %v4302_v51, 1e-24 }
 0x436   : > { %vm4345_vm10 = vweird.f32 %v4322_v49 }
 0x438   : > { %v7770_v58 = vpop.eup %7769 }
 0x439   : > { %v4350_v55 = vmul.f32 %v7770_v58, %v4323_v4  ;;  %vm4356_vm13 = vweird.f32 %v7770_v58 }
 0x43a   : > { %vm4357_vm15 = vmor %vm4355_vm14, %vm4356_vm13 }
 0x43b   : > { %v4351_v38 = vmul.f32 %v7770_v58, %v4350_v55 }
 0x43d   : > { %v4352_v47 = vmul.f32 0.5, %v4351_v38 }
 0x43f   : > { %v4353_v10 = vsub.f32 1.5, %v4352_v47 }
 0x441   : > { %v4299_v50 = vpop.xlane.xlu2 %4298  ;;  %v4354_v12 = vmul.f32 %v7770_v58, %v4353_v10 }
 0x442   : > { %v4321_v41 = vmax.f32 %v4299_v50, 1e-24 }
 0x443   : > { %v4358_v59 = vsel %vm4357_vm15, %v7770_v58, %v4354_v12 }
 0x444   : > { %7771 = vrsqrt.f32 %v4321_v41  ;;  %v4413_v46 = vmul.f32 %v4358_v59, %v9912_v24  ;;  %v4414_v17 = vmul.f32 %v4358_v59, %v9913_v48  ;;  %vm4335_vm4 = vweird.f32 %v4321_v41 }
 0x445   : > { %7773 = vrsqrt.f32 %v4322_v49 }
 0x446   : > { %v4449_v18 = vrot.slane %v4413_v46, 4  ;;  %v4455_v34 = vrot.slane %v4414_v17, 4 }
 0x448   : > { %v4450_v27 = vadd.f32 %v4449_v18, %v4413_v46  ;;  %v4456_v16 = vadd.f32 %v4455_v34, %v4414_v17  ;;  %v4314_v23 = vpop.xlane.xlu1 %4313 }
 0x449   : > { %v9582_v3 = vmax.f32 %v4314_v23, 1e-24 }
 0x44a   : > { %v7772_v13 = vpop.eup %7771  ;;  %v4451_v61 = vrot.slane %v4450_v27, 2  ;;  %v4457_v26 = vrot.slane %v4456_v16, 2 }
 0x44b   : > { %v4330_v40 = vmul.f32 %v7772_v13, %v4321_v41  ;;  %v4311_v8 = vpop.xlane.xlu0 %4310  ;;  %v7774_v9 = vpop.eup %7773  ;;  %7775 = vrsqrt.f32 %v9582_v3  ;;  %vm4336_vm3 = vweird.f32 %v7772_v13  ;;  %vm4385_vm14 = vweird.f32 %v9582_v3 }
 0x44c   : > { %v4340_v15 = vmul.f32 %v7774_v9, %v4322_v49  ;;  %v9587_v39 = vmax.f32 %v4311_v8, 1e-24  ;;  %v4452_v35 = vadd.f32 %v4451_v61, %v4450_v27  ;;  %v9590_v25 = vadd.f32 %v4457_v26, %v4456_v16  ;;  %vm4337_vm1 = vmor %vm4335_vm4, %vm4336_vm3 }
 0x44d   : > { %v4331_v36 = vmul.f32 %v7772_v13, %v4330_v40  ;;  %vm4346_vm5 = vweird.f32 %v7774_v9 }
 0x44e   : > { %v4341_v57 = vmul.f32 %v7774_v9, %v4340_v15  ;;  %v4453_v33 = vrot.slane %v4452_v35, 1  ;;  %v4459_v14 = vrot.slane %v9590_v25, 1  ;;  %vm4347_vm13 = vmor %vm4345_vm10, %vm4346_vm5 }
 0x44f   : > { %v4332_v11 = vmul.f32 0.5, %v4331_v36  ;;  %v4308_v56 = vpop.xlane.xlu2 %4307 }
 0x450   : > { %v9585_v21 = vmax.f32 %v4308_v56, 1e-24  ;;  %v4342_v29 = vmul.f32 0.5, %v4341_v57  ;;  %v9918_v57 = vld [vmem:[#allocation58_spill] sm:$0xff] }
 0x451   : > { %v4333_v37 = vsub.f32 1.5, %v4332_v11  ;;  %v7776_v7 = vpop.eup %7775 }
 0x452   : > { %7777 = vrsqrt.f32 %v9585_v21  ;;  %v4343_v1 = vsub.f32 1.5, %v4342_v29  ;;  %v4380_v28 = vmul.f32 %v7776_v7, %v9582_v3  ;;  %vm4386_vm15 = vweird.f32 %v7776_v7  ;;  %v9919_v29 = vld [vmem:[#allocation59_spill] sm:$0xff] }
 0x453   : > { %v4334_v54 = vmul.f32 %v7772_v13, %v4333_v37  ;;  %7779 = vrsqrt.f32 %v9587_v39  ;;  %vm4387_vm4 = vmor %vm4385_vm14, %vm4386_vm15 }
 0x454   : > { %v4344_v20 = vmul.f32 %v7774_v9, %v4343_v1  ;;  %v4381_v2 = vmul.f32 %v7776_v7, %v4380_v28 }
 0x455   : > { %v4338_v62 = vsel %vm4337_vm1, %v7772_v13, %v4334_v54  ;;  %v4320_v40 = vpop.xlane.xlu0 %4319  ;;  %vm4365_vm1 = vweird.f32 %v9585_v21 }
 0x456   : > { %v4409_v42 = vmul.f32 %v4338_v62, %v9914_v19  ;;  %v4410_v45 = vmul.f32 %v4338_v62, %v9915_v53  ;;  %v4348_v63 = vsel %vm4347_vm13, %v7774_v9, %v4344_v20  ;;  %v4382_v58 = vmul.f32 0.5, %v4381_v2  ;;  %v9920_v53 = vld [vmem:[#allocation46_spill] sm:$0xff]  ;;  %v9921_v20 = vld [vmem:[#allocation63_spill] sm:$0xff] }
 0x457   : > { %v4411_v0 = vmul.f32 %v4348_v63, %v9916_v22  ;;  %v4412_v4 = vmul.f32 %v4348_v63, %v9917_v60  ;;  %v4454_v9 = vadd.f32 %v4453_v33, %v4452_v35  ;;  %v9613_v37 = vmax.f32 %v4320_v40, 1e-24 }
 0x458   : > { %v7778_v44 = vpop.eup %7777  ;;  %v4425_v52 = vrot.slane %v4409_v42, 4  ;;  %v4431_v30 = vrot.slane %v4410_v45, 4  ;;  %v4383_v59 = vsub.f32 1.5, %v4382_v58  ;;  %v4460_v33 = vadd.f32 %v4459_v14, %v9590_v25 }
 0x459   : > { %v4360_v5 = vmul.f32 %v7778_v44, %v9585_v21  ;;  %v9599_v43 = vpop.eup %7779  ;;  %v4437_v50 = vrot.slane %v4411_v0, 4  ;;  %v4443_v12 = vrot.slane %v4412_v4, 4  ;;  %vm4366_vm3 = vweird.f32 %v7778_v44 }
 0x45a   : > { %v4426_v32 = vadd.f32 %v4425_v52, %v4409_v42  ;;  %v4432_v31 = vadd.f32 %v4431_v30, %v4410_v45  ;;  %v4370_v38 = vmul.f32 %v9599_v43, %v9587_v39  ;;  %v4384_v18 = vmul.f32 %v7776_v7, %v4383_v59  ;;  %vm4367_vm5 = vmor %vm4365_vm1, %vm4366_vm3  ;;  %v9923_v59 = vld [vmem:[#allocation61_spill] sm:$0xff] }
 0x45b   : > { %v4361_v55 = vmul.f32 %v7778_v44, %v4360_v5  ;;  %v4438_v51 = vadd.f32 %v4437_v50, %v4411_v0  ;;  %v4444_v49 = vadd.f32 %v4443_v12, %v4412_v4  ;;  %vm4376_vm10 = vweird.f32 %v9599_v43  ;;  %v9922_v12 = vld [vmem:[#allocation60_spill] sm:$0xff] }
 0x45c   : > { %v4427_v47 = vrot.slane %v4426_v32, 2  ;;  %v4433_v10 = vrot.slane %v4432_v31, 2  ;;  %v4317_v41 = vpop.xlane.xlu2 %4316  ;;  %v4371_v46 = vmul.f32 %v9599_v43, %v4370_v38  ;;  %v4388_v61 = vsel %vm4387_vm4, %v7776_v7, %v4384_v18 }
 0x45d   : > { %v4362_v24 = vmul.f32 0.5, %v4361_v55  ;;  %v9606_v27 = vmax.f32 %v4317_v41, 1e-24  ;;  %v4439_v23 = vrot.slane %v4438_v51, 2  ;;  %v4445_v8 = vrot.slane %v4444_v49, 2 }
 0x45e   : > { %v4428_v48 = vadd.f32 %v4427_v47, %v4426_v32  ;;  %v4434_v17 = vadd.f32 %v4433_v10, %v4432_v31  ;;  %v4372_v13 = vmul.f32 0.5, %v4371_v46  ;;  %v4419_v54 = vmul.f32 %v4388_v61, %v9918_v57 }
 0x45f   : > { %v4363_v34 = vsub.f32 1.5, %v4362_v24  ;;  %v4440_v15 = vadd.f32 %v4439_v23, %v4438_v51  ;;  %v4446_v56 = vadd.f32 %v4445_v8, %v4444_v49  ;;  %v4420_v62 = vmul.f32 %v4388_v61, %v9919_v29 }
 0x460   : > { %v4429_v16 = vrot.slane %v4428_v48, 1  ;;  %v4435_v36 = vrot.slane %v4434_v17, 1  ;;  %v4373_v26 = vsub.f32 1.5, %v4372_v13  ;;  %7781 = vrsqrt.f32 %v9606_v27 }
 0x461   : > { %v4364_v11 = vmul.f32 %v7778_v44, %v4363_v34  ;;  %v4441_v7 = vrot.slane %v4440_v15, 1  ;;  %v4447_v19 = vrot.slane %v4446_v56, 1  ;;  %v4485_v42 = vrot.slane %v4419_v54, 4 }
 0x462   : > { %v4430_v3 = vadd.f32 %v4429_v16, %v4428_v48  ;;  %v4436_v35 = vadd.f32 %v4435_v36, %v4434_v17  ;;  %v4491_v21 = vrot.slane %v4420_v62, 4  ;;  %v4374_v30 = vmul.f32 %v9599_v43, %v4373_v26 }
 0x463   : > { %v4368_v1 = vsel %vm4367_vm5, %v7778_v44, %v4364_v11  ;;  %v4442_v52 = vadd.f32 %v4441_v7, %v4440_v15  ;;  %v4448_v44 = vadd.f32 %v4447_v19, %v4446_v56  ;;  %v4486_v63 = vadd.f32 %v4485_v42, %v4419_v54 }
 0x464   : > { %v4415_v45 = vmul.f32 %v4368_v1, %v9920_v53  ;;  %v4416_v28 = vmul.f32 %v4368_v1, %v9921_v20  ;;  %v4521_v32 = vmul.f32 %v4430_v3, %v9020_v6  ;;  %v4522_v31 = vmul.f32 %v4436_v35, %v9020_v6 }
 0x465   : > { %vm4375_vm13 = vweird.f32 %v9587_v39  ;;  %7783 = vrsqrt.f32 %v9613_v37  ;;  %v4523_v25 = vmul.f32 %v4442_v52, %v9020_v6  ;;  %v4492_v14 = vadd.f32 %v4491_v21, %v4420_v62  ;;  %v7570_v52 = vld [vmem:[#allocation14 + $0xb8] sm:$0xf0] }
 0x466   : > { %v4461_v2 = vrot.slane %v4415_v45, 4  ;;  %v4467_v5 = vrot.slane %v4416_v28, 4  ;;  %v9627_v22 = vpop.eup %7781  ;;  %vm4377_vm14 = vmor %vm4375_vm13, %vm4376_vm10  ;;  %v4525_v4 = vmul.f32 %v4454_v9, %v9020_v6  ;;  %v4526_v58 = vmul.f32 %v4460_v33, %v9020_v6  ;;  %v7135_v33 = vld [vmem:[#allocation14 + $0xb0] sm:$0xf] }
 0x467   : > { %v4378_v55 = vsel %vm4377_vm14, %v9599_v43, %v4374_v30  ;;  %v4524_v38 = vmul.f32 %v4448_v44, %v9020_v6  ;;  %v4487_v47 = vrot.slane %v4486_v63, 2  ;;  %v4978_v50 = vpack.c.bf16 %v4521_v32, %v4521_v32  ;;  %v7578_v32 = vld [vmem:[#allocation14 + $0x178] sm:$0xf0] }
 0x468   : > { %v4462_v0 = vadd.f32 %v4461_v2, %v4415_v45  ;;  %v4468_v60 = vadd.f32 %v4467_v5, %v4416_v28  ;;  %v4417_v41 = vmul.f32 %v4378_v55, %v9922_v12  ;;  %v4418_v24 = vmul.f32 %v4378_v55, %v9923_v59  ;;  %v7167_v5 = vld [vmem:[#allocation14 + $0x170] sm:$0xf] }
 0x469   : > { %v4390_v46 = vmul.f32 %v9627_v22, %v9606_v27  ;;  %v4979_v48 = vpack.c.bf16 %v4522_v31, %v4522_v31  ;;  %v4980_v17 = vpack.c.bf16 %v4523_v25, %v4523_v25  ;;  %v4493_v51 = vrot.slane %v4492_v14, 2 }
 0x46a   : > { %v4463_v39 = vrot.slane %v4462_v0, 2  ;;  %v4469_v10 = vrot.slane %v4468_v60, 2  ;;  %v4982_v43 = vpack.c.bf16 %v4525_v4, %v4525_v4  ;;  %v4473_v34 = vrot.slane %v4417_v41, 4 }
 0x46b   : > { %v9638_v18 = vpop.eup %7783  ;;  %v4479_v13 = vrot.slane %v4418_v24, 4  ;;  %v4983_v40 = vpack.c.bf16 %v4526_v58, %v4526_v58  ;;  %v4981_v16 = vpack.c.bf16 %v4524_v38, %v4524_v38  ;;  %v4488_v36 = vadd.f32 %v4487_v47, %v4486_v63  ;;  %v7163_v38 = vld [vmem:[#allocation14 + $0x158] sm:$0xf]  ;;  %v7577_v47 = vld [vmem:[#allocation14 + $0x160] sm:$0xf0] }
 0x46c   : > { %v4464_v49 = vadd.f32 %v4463_v39, %v4462_v0  ;;  %v4470_v23 = vadd.f32 %v4469_v10, %v4468_v60  ;;  %v5042_v8 = vunpack.c.l.b16 %v4978_v50  ;;  %v4474_v9 = vadd.f32 %v4473_v34, %v4417_v41  ;;  %v7569_v60 = vld [vmem:[#allocation14 + $0xa0] sm:$0xf0]  ;;  %v9925_v50 = vld [vmem:[#allocation41_spill] sm:$0xff] }
 0x46d   : > { %v4480_v61 = vadd.f32 %v4479_v13, %v4418_v24  ;;  %v4391_v11 = vmul.f32 %v9627_v22, %v4390_v46  ;;  %v5043_v15 = vunpack.c.l.b16 %v4979_v48  ;;  %v5044_v56 = vunpack.c.l.b16 %v4980_v17  ;;  %v9924_v39 = vld [vmem:[#allocation40_spill] sm:$0xff] }
 0x46e   : > { %v4494_v26 = vadd.f32 %v4493_v51, %v4492_v14  ;;  %v4465_v57 = vrot.slane %v4464_v49, 1  ;;  %v4475_v54 = vrot.slane %v4474_v9, 2  ;;  %v4400_v1 = vmul.f32 %v9638_v18, %v9613_v37  ;;  %v7127_v17 = vld [vmem:[#allocation14 + $0x80] sm:$0xf] }
 0x46f   : > { %v4481_v29 = vrot.slane %v4480_v61, 2  ;;  %v4392_v62 = vmul.f32 0.5, %v4391_v11  ;;  %v5045_v3 = vunpack.c.l.b16 %v4981_v16  ;;  %v4489_v35 = vrot.slane %v4488_v36, 1  ;;  %v7159_v13 = vld [vmem:[#allocation14 + $0x140] sm:$0xf] }
 0x470   : > { %v4471_v7 = vrot.slane %v4470_v23, 1  ;;  %vm4396_vm15 = vweird.f32 %v9627_v22  ;;  %v4476_v19 = vadd.f32 %v4475_v54, %v4474_v9  ;;  %v4401_v53 = vmul.f32 %v9638_v18, %v4400_v1  ;;  %v7567_v1 = vld [vmem:[#allocation14 + $0x70] sm:$0xf0] }
 0x471   : > { %v4482_v42 = vadd.f32 %v4481_v29, %v4480_v61  ;;  %v4393_v21 = vsub.f32 1.5, %v4392_v62  ;;  %v9645_v45 = vunpack.c.l.b16 %v4982_v43  ;;  %v9647_v20 = vunpack.c.l.b16 %v4983_v40  ;;  %v7576_v40 = vld [vmem:[#allocation14 + $0x148] sm:$0xf0]  ;;  %v9926_v61 = vld [vmem:[#allocation34_spill] sm:$0xff]  ;;  %v7123_v62 = vld [vmem:[#allocation14 + $0x68] sm:$0xf] }
 0x472   : > { %v4495_v28 = vrot.slane %v4494_v26, 1  ;;  %vm4395_vm3 = vweird.f32 %v9606_v27  ;;  %v9651_v30 = vsel %vm1307_vm2, %v5044_v56, %v5042_v8  ;;  %v4466_v44 = vadd.f32 %v4465_v57, %v4464_v49  ;;  %v7131_v27 = vld [vmem:[#allocation14 + $0x98] sm:$0xf] }
 0x473   : > { %v4394_v63 = vmul.f32 %v9627_v22, %v4393_v21  ;;  %v4402_v2 = vmul.f32 0.5, %v4401_v53  ;;  %v9655_v31 = vsel %vm1307_vm2, %v5045_v3, %v5043_v15  ;;  %v4490_v25 = vadd.f32 %v4489_v35, %v4488_v36  ;;  %vm4397_vm4 = vmor %vm4395_vm3, %vm4396_vm15  ;;  %v9927_v15 = vld [vmem:[#allocation35_spill] sm:$0xff]  ;;  %v7155_v3 = vld [vmem:[#allocation14 + $0x128] sm:$0xf] }
 0x474   : > { %v4472_v14 = vadd.f32 %v4471_v7, %v4470_v23  ;;  %v4477_v0 = vrot.slane %v4476_v19, 1  ;;  %v4483_v4 = vrot.slane %v4482_v42, 1  ;;  %vm4406_vm1 = vweird.f32 %v9638_v18 }
 0x475   : > { %v4398_v58 = vsel %vm4397_vm4, %v9627_v22, %v4394_v63  ;;  %v4403_v55 = vsub.f32 1.5, %v4402_v2  ;;  %v7136_v41 = vor.u32 %v7570_v52, %v7135_v33  ;;  %v7168_v59 = vor.u32 %v7578_v32, %v7167_v5  ;;  %v7568_v22 = vld [vmem:[#allocation14 + $0x88] sm:$0xf0] }
 0x476   : > { %v4421_v10 = vmul.f32 %v4398_v58, %v9924_v39  ;;  %v4422_v12 = vmul.f32 %v4398_v58, %v9925_v50  ;;  %v4496_v24 = vadd.f32 %v4495_v28, %v4494_v26  ;;  %v4527_v46 = vmul.f32 %v4466_v44, %v9020_v6 }
 0x477   : > { %v4404_v48 = vmul.f32 %v9638_v18, %v4403_v55  ;;  %vm4405_vm2 = vweird.f32 %v9613_v37  ;;  %5172 = vmatpush.bf16.msra.mxu0 %v7136_v41  ;;  %5185 = vmatpush.bf16.msra.mxu1 %v7168_v59  ;;  %v7132_v43 = vor.u32 %v7569_v60, %v7131_v27  ;;  %v7164_v34 = vor.u32 %v7577_v47, %v7163_v38  ;;  %v7566_v27 = vld [vmem:[#allocation14 + $0x58] sm:$0xf0]  ;;  %v7151_v60 = vld [vmem:[#allocation14 + $0x110] sm:$0xf] }
 0x478   : > { %v4497_v51 = vrot.slane %v4421_v10, 4  ;;  %v4503_v49 = vrot.slane %v4422_v12, 4  ;;  %vm4407_vm5 = vmor %vm4405_vm2, %vm4406_vm1  ;;  %v4528_v16 = vmul.f32 %v4472_v14, %v9020_v6  ;;  %v4478_v36 = vadd.f32 %v4477_v0, %v4476_v19  ;;  %v7119_v0 = vld [vmem:[#allocation14 + $0x50] sm:$0xf]  ;;  %v7574_v47 = vld [vmem:[#allocation14 + $0x118] sm:$0xf0] }
 0x479   : > { %v4484_v23 = vadd.f32 %v4483_v4, %v4482_v42  ;;  %v4408_v8 = vsel %vm4407_vm5, %v9638_v18, %v4404_v48  ;;  %v9673_v26 = vmul.f32 %v4490_v25, %v9020_v6  ;;  %v9676_v57 = vmul.f32 %v4496_v24, %v9020_v6  ;;  %v7575_v42 = vld [vmem:[#allocation14 + $0x130] sm:$0xf0] }
 0x47a   : > { %v4498_v37 = vadd.f32 %v4497_v51, %v4421_v10  ;;  %v4504_v9 = vadd.f32 %v4503_v49, %v4422_v12  ;;  %v4423_v11 = vmul.f32 %v4408_v8, %v9926_v61  ;;  %v4424_v56 = vmul.f32 %v4408_v8, %v9927_v15 }
 0x47b   : > { %v7128_v54 = vor.u32 %v7568_v22, %v7127_v17  ;;  %v7160_v29 = vor.u32 %v7576_v40, %v7159_v13  ;;  %5173 = vmatpush.bf16.msra.mxu0 %v7132_v43  ;;  %5186 = vmatpush.bf16.msra.mxu1 %v7164_v34  ;;  %v4984_v21 = vpack.c.bf16 %v4527_v46, %v4527_v46  ;;  %v7115_v40 = vld [vmem:[#allocation14 + $0x38] sm:$0xf] }
 0x47c   : > { %v4499_v35 = vrot.slane %v4498_v37, 2  ;;  %v4505_v7 = vrot.slane %v4504_v9, 2  ;;  %v4509_v18 = vrot.slane %v4423_v11, 4  ;;  %v4515_v19 = vrot.slane %v4424_v56, 4 }
 0x47d   : > { %v4985_v53 = vpack.c.bf16 %v4528_v16, %v4528_v16  ;;  %v4529_v28 = vmul.f32 %v4478_v36, %v9020_v6  ;;  %v4530_v33 = vmul.f32 %v4484_v23, %v9020_v6  ;;  %v4988_v5 = vpack.c.bf16 %v9673_v26, %v9673_v26  ;;  %v7565_v16 = vld [vmem:[#allocation14 + $0x40] sm:$0xf0]  ;;  %v7111_v26 = vld [vmem:[#allocation14 + $0x20] sm:$0xf] }
 0x47e   : > { %v4500_v52 = vadd.f32 %v4499_v35, %v4498_v37  ;;  %v4506_v44 = vadd.f32 %v4505_v7, %v4504_v9  ;;  %v4510_v63 = vadd.f32 %v4509_v18, %v4423_v11  ;;  %v4516_v2 = vadd.f32 %v4515_v19, %v4424_v56  ;;  %v7147_v37 = vld [vmem:[#allocation14 + $0xf8] sm:$0xf]  ;;  %v7573_v9 = vld [vmem:[#allocation14 + $0x100] sm:$0xf0] }
 0x47f   : > { %v4989_v32 = vpack.c.bf16 %v9676_v57, %v9676_v57  ;;  %v7124_v25 = vor.u32 %v7567_v1, %v7123_v62  ;;  %v7156_v14 = vor.u32 %v7575_v42, %v7155_v3  ;;  %5174 = vmatpush.bf16.msra.mxu0 %v7128_v54  ;;  %5187 = vmatpush.bf16.msra.mxu1 %v7160_v29  ;;  %v5048_v39 = vunpack.c.l.b16 %v4984_v21  ;;  %v7564_v62 = vld [vmem:[#allocation14 + $0x28] sm:$0xf0]  ;;  %v7143_v1 = vld [vmem:[#allocation14 + $0xe0] sm:$0xf] }
 0x480   : > { %v4501_v4 = vrot.slane %v4500_v52, 1  ;;  %v4507_v58 = vrot.slane %v4506_v44, 1  ;;  %v4511_v55 = vrot.slane %v4510_v63, 2  ;;  %v4517_v38 = vrot.slane %v4516_v2, 2  ;;  %v7572_v3 = vld [vmem:[#allocation14 + $0xe8] sm:$0xf0] }
 0x481   : > { %v5049_v10 = vunpack.c.l.b16 %v4985_v53  ;;  %v4986_v50 = vpack.c.bf16 %v4529_v28, %v4529_v28  ;;  %v4987_v12 = vpack.c.bf16 %v4530_v33, %v4530_v33  ;;  %v7120_v48 = vor.u32 %v7566_v27, %v7119_v0  ;;  %v5224_v53 = vpop.permute.xlu2 %5223 }
 0x482   : > { %v4502_v41 = vadd.f32 %v4501_v4, %v4500_v52  ;;  %v4508_v59 = vadd.f32 %v4507_v58, %v4506_v44  ;;  %v4512_v24 = vadd.f32 %v4511_v55, %v4510_v63  ;;  %v4518_v46 = vadd.f32 %v4517_v38, %v4516_v2  ;;  %v7563_v63 = vld [vmem:[#allocation14 + $0x10] sm:$0xf0]  ;;  %v7139_v2 = vld [vmem:[#allocation14 + $0xc8] sm:$0xf] }
 0x483   : > { %v7152_v17 = vor.u32 %v7574_v47, %v7151_v60  ;;  %v5059_v22 = vsel %vm1310_vm6, %v9645_v45, %v9651_v30  ;;  %v5066_v51 = vsel %vm1310_vm6, %v9647_v20, %v9655_v31  ;;  %5175 = vmatpush.bf16.msra.mxu0 %v7124_v25  ;;  %5188 = vmatpush.bf16.msra.mxu1 %v7156_v14  ;;  %v5050_v23 = vunpack.c.l.b16 %v4986_v50  ;;  %v7571_v25 = vld [vmem:[#allocation14 + $0xd0] sm:$0xf0] }
 0x484   : > { %v4533_v49 = vmul.f32 %v4502_v41, %v9020_v6  ;;  %v4534_v43 = vmul.f32 %v4508_v59, %v9020_v6  ;;  %v4513_v34 = vrot.slane %v4512_v24, 1  ;;  %v4519_v13 = vrot.slane %v4518_v46, 1  ;;  %v5240_v59 = vpop.permute.xlu0 %5239 }
 0x485   : > { %v5051_v8 = vunpack.c.l.b16 %v4987_v12  ;;  %v5060_v45 = vsel %vm1313_vm8, %v5048_v39, %v5059_v22  ;;  %v5067_v30 = vsel %vm1313_vm8, %v5049_v10, %v5066_v51  ;;  %v7116_v56 = vor.u32 %v7565_v16, %v7115_v40 }
 0x486   : > { %v4990_v20 = vpack.c.bf16 %v4533_v49, %v4533_v49  ;;  %v4991_v31 = vpack.c.bf16 %v4534_v43, %v4534_v43  ;;  %v4514_v61 = vadd.f32 %v4513_v34, %v4512_v24  ;;  %v4520_v11 = vadd.f32 %v4519_v13, %v4518_v46 }
 0x487   : > { %5176 = vmatpush.bf16.msra.mxu0 %v7120_v48  ;;  %5189 = vmatpush.bf16.msra.mxu1 %v7152_v17  ;;  %v7148_v29 = vor.u32 %v7573_v9, %v7147_v37  ;;  %v5061_v18 = vsel %vm1316_vm7, %v5050_v23, %v5060_v45  ;;  %v5068_v19 = vsel %vm1316_vm7, %v5051_v8, %v5067_v30  ;;  %v5052_v42 = vunpack.c.l.b16 %v4988_v5  ;;  %v5208_v17 = vpop.permute.xlu1 %5207 }
 0x488   : > { %v4789_v36 = vpop.f32.mrf.mxu0  ;;  %v4535_v57 = vmul.f32 %v4514_v61, %v9020_v6  ;;  %v4536_v54 = vmul.f32 %v4520_v11, %v9020_v6  ;;  %v5054_v35 = vunpack.c.l.b16 %v4990_v20  ;;  %v5055_v7 = vunpack.c.l.b16 %v4991_v31  ;;  %v7107_v6 = vld [vmem:[#allocation14 + $0x8] sm:$0xf] }
 0x489   : > { %v5053_v21 = vunpack.c.l.b16 %v4989_v32  ;;  %v7112_v52 = vor.u32 %v7564_v62, %v7111_v26  ;;  %v7144_v44 = vor.u32 %v7572_v3, %v7143_v1  ;;  %v5062_v0 = vsel %vm1319_vm9, %v5052_v42, %v5061_v18  ;;  %v5256_v22 = vpop.permute.xlu2 %5255 }
 0x48a   : > { %v4992_v28 = vpack.c.bf16 %v4535_v57, %v4535_v57  ;;  %v4993_v33 = vpack.c.bf16 %v4536_v54, %v4536_v54  ;;  %v5063_v5 = vsel %vm1322_vm11, %v5054_v35, %v5062_v0  ;;  %v7108_v38 = vor.u32 %v7563_v63, %v7107_v6 }
 0x48b   : > { %v4802_v15 = vpop.f32.mrf.mxu1  ;;  %5177 = vmatpush.bf16.msra.mxu0 %v7116_v56  ;;  %5190 = vmatpush.bf16.msra.mxu1 %v7148_v29  ;;  %v5069_v60 = vsel %vm1319_vm9, %v5053_v21, %v5068_v19  ;;  %v7140_v47 = vor.u32 %v7571_v25, %v7139_v2 }
 0x48c   : > { %v5056_v14 = vunpack.c.l.b16 %v4992_v28  ;;  %v5057_v27 = vunpack.c.l.b16 %v4993_v33  ;;  %v5070_v32 = vsel %vm1322_vm11, %v5055_v7, %v5069_v60  ;;  %v4803_v58 = vadd.f32 %v4802_v15, %v4789_v36 }
 0x48e   : > { %v5064_v10 = vsel %vm4671_vm12, %v5056_v14, %v5063_v5  ;;  %v5071_v50 = vsel %vm4671_vm12, %v5057_v27, %v5070_v32 }
 0x48f   : > { %5178 = vmatpush.bf16.msra.mxu0 %v7112_v52  ;;  %5191 = vmatpush.bf16.msra.mxu1 %v7144_v44  ;;  %v5072_v46 = vpack.c.b16 %v5064_v10, %v5064_v10  ;;  %v5073_v48 = vpack.c.b16 %v5071_v50, %v5071_v50  ;;  %v5272_v45 = vpop.permute.xlu1 %5271 }
 0x490   : > { %v4791_v4 = vpop.f32.mrf.mxu0 }
 0x491   : > { %v5200_v15 = vpop.permute.xlu2 %5199 }
 0x493   : > { %v4804_v55 = vpop.f32.mrf.mxu1  ;;  %5179 = vmatpush.bf16.msra.mxu0 %v7108_v38  ;;  %5192 = vmatpush.bf16.msra.mxu1 %v7140_v47 }
 0x494   : > { %v4961_v39 = vpop.f32.mrf.mxu2 }
 0x495   : > { %v4962_v12 = vadd.f32 %v4961_v39, %v4803_v58 }
 0x496   : > { %v4974_v41 = vpop.f32.mrf.mxu3  ;;  %5180 = vmatmul.bf16.vlgmr.msra.gmra.mxu0 %v5072_v46  ;;  %5193 = vmatmul.bf16.vlgmr.msra.gmra.mxu1 %v5073_v48 }
 0x497   : > { %v4975_v24 = vadd.f32 %v4974_v41, %v4962_v12 }
 0x499   : > { %v5242_v51 = vmul.f32 %v5240_v59, %v4975_v24  ;;  %v5258_v49 = vmul.f32 %v5256_v22, %v4975_v24  ;;  %v5210_v43 = vmul.f32 %v5208_v17, %v4975_v24  ;;  %v5226_v40 = vmul.f32 %v5224_v53, %v4975_v24 }
 0x49a   : > { %v5274_v31 = vmul.f32 %v5272_v45, %v4975_v24  ;;  %v5202_v29 = vmul.f32 %v5200_v15, %v4975_v24 }
 0x49b   : > { %5244 = vrot.lane.b32.xlu2 %v5242_v51, %s8235_s13  ;;  %5260 = vrot.lane.b32.xlu0 %v5258_v49, %s8236_s14 }
 0x49c   : > { %v4963_v34 = vpop.f32.mrf.mxu2  ;;  %5212 = vrot.lane.b32.xlu1 %v5210_v43, %s8237_s1 }
 0x49e   : > { %v4976_v13 = vpop.f32.mrf.mxu3 }
 0x4a4   : > { %5228 = vrot.lane.b32.xlu1 %v5226_v40, %s8238_s17 }
 0x4f5   : > { %v5245_v26 = vpop.permute.xlu2 %5244 }
 0x50d   : > { %v5261_v57 = vpop.permute.xlu0 %5260 }
 0x50e   : > { %v5213_v56 = vpop.permute.xlu1 %5212 }
 0x50f   : > { %v5215_v1 = vadd.f32 %v5213_v56, %v5202_v29 }
 0x513   : > { %v5181_v16 = vpop.f32.mrf.mxu0  ;;  %v5194_v36 = vpop.f32.mrf.mxu1 }
 0x514   : > { %v5195_v23 = vadd.f32 %v5194_v36, %v5181_v16 }
 0x516   : > { %v5232_v8 = vmul.f32 %v5224_v53, %v5195_v23  ;;  %v5248_v37 = vmul.f32 %v5240_v59, %v5195_v23  ;;  %v5216_v9 = vmul.f32 %v5208_v17, %v5195_v23  ;;  %v5280_v61 = vmul.f32 %v5272_v45, %v5195_v23  ;;  %v5229_v54 = vpop.permute.xlu1 %5228 }
 0x517   : > { %v5264_v11 = vmul.f32 %v5256_v22, %v5195_v23  ;;  %v5204_v3 = vmul.f32 %v5200_v15, %v5195_v23  ;;  %v5231_v35 = vadd.f32 %v5229_v54, %v5215_v1 }
 0x518   : > { %5234 = vrot.lane.b32.xlu0 %v5232_v8, %s8238_s17  ;;  %5250 = vrot.lane.b32.xlu1 %v5248_v37, %s8235_s13 }
 0x519   : > { %5218 = vrot.lane.b32.xlu2 %v5216_v9, %s8237_s1  ;;  %v5247_v21 = vadd.f32 %v5245_v26, %v5231_v35 }
 0x51b   : > { %v5183_v30 = vpop.f32.mrf.mxu0  ;;  %v5196_v20 = vpop.f32.mrf.mxu1  ;;  %v5263_v33 = vadd.f32 %v5261_v57, %v5247_v21 }
 0x520   : > { %5282 = vrot.lane.b32.xlu0 %v5280_v61, %s8239_s7  ;;  %5276 = vrot.lane.b32.xlu1 %v5274_v31, %s8239_s7 }
 0x521   : > { %5266 = vrot.lane.b32.xlu2 %v5264_v11, %s8236_s14 }
 0x573   : > { %v5219_v62 = vpop.permute.xlu2 %5218 }
 0x574   : > { %v5221_v7 = vadd.f32 %v5219_v62, %v5204_v3 }
 0x57b   : > { %v5267_v28 = vpop.permute.xlu2 %5266 }
 0x58a   : > { %v5251_v18 = vpop.permute.xlu1 %5250  ;;  %v5235_v19 = vpop.permute.xlu0 %5234 }
 0x58b   : > { %v5237_v42 = vadd.f32 %v5235_v19, %v5221_v7 }
 0x58d   : > { %v5253_v53 = vadd.f32 %v5251_v18, %v5237_v42 }
 0x58f   : > { %v5269_v52 = vadd.f32 %v5267_v28, %v5253_v53 }
 0x592   : > { %v5277_v44 = vpop.permute.xlu1 %5276  ;;  %v5283_v6 = vpop.permute.xlu0 %5282 }
 0x593   : > { %v5279_v63 = vadd.f32 %v5277_v44, %v5263_v33  ;;  %v5285_v2 = vadd.f32 %v5283_v6, %v5269_v52 }
 0x595   : > { %v7169_v25 = vmul.f32 -1.442695, %v5279_v63  ;;  %v7170_v14 = vmul.f32 -1.442695, %v5285_v2 }
 0x597   : > { %7785 = vpow2.f32 %v7169_v25 }
 0x598   : > { %7787 = vpow2.f32 %v7170_v14 }
 0x59d   : > { %v7786_v0 = vpop.eup %7785 }
 0x59e   : > { %v7788_v27 = vpop.eup %7787  ;;  %v5289_v60 = vadd.f32 1.0, %v7786_v0 }
 0x59f   : > { %v5308_v4 = vadd.f32 1.0, %v7788_v27 }
 0x5a0   : > { %7789 = vrcp.f32 %v5289_v60  ;;  %v5301_v47 = vand.u32 2147483648, %v5289_v60  ;;  %v5299_v50 = vand.u32 2147483647, %v5289_v60  ;;  %vm5295_vm8 = vweird.f32 %v5289_v60 }
 0x5a1   : > { %7791 = vrcp.f32 %v5308_v4  ;;  %v5320_v12 = vand.u32 2147483648, %v5308_v4  ;;  %v5318_v59 = vand.u32 2147483647, %v5308_v4  ;;  %vm5314_vm11 = vweird.f32 %v5308_v4 }
 0x5a2   : > { %v5302_v46 = vor.u32 1.1754944e-38, %v5301_v47  ;;  %vm5300_vm12 = vcmp.eq.f32.partialorder %v5299_v50, 8.507059e+37 }
 0x5a3   : > { %v5321_v17 = vor.u32 1.1754944e-38, %v5320_v12  ;;  %vm5319_vm13 = vcmp.eq.f32.partialorder %v5318_v59, 8.507059e+37 }
 0x5a6   : > { %v7790_v5 = vpop.eup %7789 }
 0x5a7   : > { %v7792_v32 = vpop.eup %7791  ;;  %v5291_v58 = vmul.f32 %v7790_v5, %v5289_v60  ;;  %vm5296_vm6 = vweird.f32 %v7790_v5 }
 0x5a8   : > { %v5310_v55 = vmul.f32 %v7792_v32, %v5308_v4  ;;  %vm5315_vm7 = vweird.f32 %v7792_v32  ;;  %vm5297_vm9 = vmor %vm5295_vm8, %vm5296_vm6 }
 0x5a9   : > { %v5292_v38 = vsub.f32 1.0, %v5291_v58  ;;  %vm5316_vm10 = vmor %vm5314_vm11, %vm5315_vm7 }
 0x5aa   : > { %v5311_v39 = vsub.f32 1.0, %v5310_v55 }
 0x5ab   : > { %v5293_v10 = vmul.f32 %v7790_v5, %v5292_v38 }
 0x5ac   : > { %v5312_v41 = vmul.f32 %v7792_v32, %v5311_v39 }
 0x5ad   : > { %v5294_v24 = vadd.f32 %v7790_v5, %v5293_v10 }
 0x5ae   : > { %v5313_v48 = vadd.f32 %v7792_v32, %v5312_v41 }
 0x5af   : > { %v5298_v22 = vsel %vm5297_vm9, %v7790_v5, %v5294_v24 }
 0x5b0   : > { %v5303_v51 = vsel %vm5300_vm12, %v5302_v46, %v5298_v22  ;;  %v5317_v49 = vsel %vm5316_vm10, %v7792_v32, %v5313_v48 }
 0x5b1   : > { %v5322_v43 = vsel %vm5319_vm13, %v5321_v17, %v5317_v49 }
 0x5b2   : > { %v5324_v34 = vadd.f32 %v5322_v43, %v5303_v51 }
 0x5b4   : > { %5325 = vst.msk [vmem:[%s614_s24] sm:$0xff] %vm636_vm0, %v5324_v34 }
 0x5b5   : > { %8151 = shalt.err (!%p8148_p9)
}
 0x5b6   : > { %7617 = dma.vmem_to_hbm [thread:$0]  (%p8391_p5), %s5340_s4, 128, %s5342_s6, %s5327_s27  }
 0x5b7 PF: > { %s9929_s8 = sld [smem:[#allocation28_spill]]  ;;  %p9931_p0 = scmp.ge.s32.totalorder %s8210_s20, 2 }
 0x5b9   : > { %p7655_p12 = pnand %p9931_p0, %p8395_p4 }
 0x5bb   : > { %p7656_p2 = pneg %p7655_p12 }
 0x5bd   : > { %s5353_s5 = sand.u32 1, %s9929_s8  }
 0x5be   : > { %s5354_s22 = scalar_lea.sflag [#allocation4], %s5353_s5 }
 0x5bf   : > { %8193 = dma.done.wait (%p7656_p2), %s5354_s22, 128  }
 0x5c0   : > { %8195 = vsyncadd (%p7656_p2), %s5354_s22, 4294967168  ;;  %s9932_s20 = sld [smem:[#allocation30_spill]]  ;;  %s9935_s17 = smov %s8202_s18 }
 0x5c1   : > { %s9933_s13 = sld [smem:[#allocation29_spill]] }
 0x5c2   : > { %s9934_s19 = sld [smem:[#allocation31_spill]] }
 0x5c6   : > { %p31_p1 = scmp.ge.s32.totalorder %s9932_s20, 4  }
 0x5c7   : > { %s9936_s18 = smov %s9933_s13 }
 0x5c8   :  { %33 = sbr.rel (!%p31_p1) target bundleno = 20 (0x14), region = 169 }
 0x5cd   :  { %5360 = vsyncpa [#allocation3], 1 }
 0x5ce   :  { %5362 = vsyncpa [#allocation3 + $0x1], 1 }
 0x5cf   :  { %5363 = vsyncpa [#allocation6], 1 }
 0x5d0   :  { %5365 = vsyncpa [#allocation6 + $0x1], 1 }
 0x5d1   :  { %5366 = vsyncpa [#allocation9], 1 }
 0x5d2   :  { %5367 = vsyncpa [#allocation12], 1 }
 0x5d3   :  { %5368 = vsyncpa [#allocation15], 1 }
 0x5d4   :  { %5369 = vsyncpa [#allocation18], 1 }
 0x5d5   :  { %5370 = vsyncpa [#allocation4], 1 }
 0x5d6   :  { %5372 = vsyncpa [#allocation4 + $0x1], 1 }

</bundles_post_ra>
